<compile_context>
chip_gen: v6e
topology: v6e:2x2x1
jax: 0.10.0
libtpu: 0.0.40
codegen_flags: <defaults>
</compile_context>

<pallas_src>
import functools

import jax
import jax.numpy as jnp
from jax.experimental import pallas as pl
from jax.experimental.pallas import tpu as pltpu  # noqa: F401  (TPU backend assumed)


# ----------------------------------------------------------------------------
# Single fused kernel: encoder recurrence -> decoder recurrence -> Linear(H,1)
#   refs = [x (T,B,in),
#           (w_ih, w_hh, b) for each encoder layer,
#           (w_ih, w_hh, b) for each decoder layer,
#           fc_w (1,H), fc_b (1,1),
#           out (B, output_length)]
# ----------------------------------------------------------------------------
def _seq2seq_kernel(num_layers, x_ref, *refs):
    enc_refs = refs[: 3 * num_layers]
    dec_refs = refs[3 * num_layers: 6 * num_layers]
    fc_w_ref = refs[6 * num_layers]
    fc_b_ref = refs[6 * num_layers + 1]
    out_ref = refs[6 * num_layers + 2]

    T, B, _ = x_ref.shape
    H = fc_w_ref.shape[1]
    L_out = out_ref.shape[1]

    def cell(inp, h_prev, c_prev, w_ih_ref, w_hh_ref, b_ref):
        # One lane-dense (B, 4H) gate pre-activation: two MXU dots + one bias add.
        gates = (
            jnp.dot(inp, w_ih_ref[...], preferred_element_type=jnp.float32)
            + jnp.dot(h_prev, w_hh_ref[...], preferred_element_type=jnp.float32)
            + b_ref[...]
        )
        i = jax.nn.sigmoid(gates[:, 0 * H:1 * H])
        f = jax.nn.sigmoid(gates[:, 1 * H:2 * H])
        g = jnp.tanh(gates[:, 2 * H:3 * H])
        o = jax.nn.sigmoid(gates[:, 3 * H:4 * H])
        c_new = f * c_prev + i * g
        h_new = o * jnp.tanh(c_new)
        return h_new, c_new

    # Initial encoder state (PyTorch default: zeros).
    h = [jnp.zeros((B, H), jnp.float32) for _ in range(num_layers)]
    c = [jnp.zeros((B, H), jnp.float32) for _ in range(num_layers)]

    # ---- Encoder: fully unrolled over time, state carried as SSA values ----
    for t in range(T):
        inp = x_ref[t]                                   # (B, input_size)
        for l in range(num_layers):
            w_ih, w_hh, b = enc_refs[3 * l: 3 * l + 3]
            h[l], c[l] = cell(inp, h[l], c[l], w_ih, w_hh, b)
            inp = h[l]

    # ---- Decoder + fused Linear(H -> 1), fully unrolled ----
    col_ids = jax.lax.broadcasted_iota(jnp.int32, (B, L_out), 1)   # hoisted
    out_acc = jnp.zeros((B, L_out), jnp.float32)
    dec_in = jnp.zeros((B, H), jnp.float32)                        # first decoder input
    for t in range(L_out):
        inp = dec_in
        for l in range(num_layers):
            w_ih, w_hh, b = dec_refs[3 * l: 3 * l + 3]
            h[l], c[l] = cell(inp, h[l], c[l], w_ih, w_hh, b)
            inp = h[l]
        dec_in = h[-1]
        # Linear(H -> 1) as a lane reduction (XLU), bias broadcast from (1,1).
        y = jnp.sum(h[-1] * fc_w_ref[...], axis=-1, keepdims=True) + fc_b_ref[...]
        out_acc = out_acc + jnp.where(col_ids == t, y, 0.0)

    out_ref[...] = out_acc                               # single lane store


# ----------------------------------------------------------------------------
# Parameters (PyTorch-style U(-1/sqrt(H), 1/sqrt(H)); lane-dense fused layouts)
#   w_ih: (in_features, 4H), w_hh: (H, 4H), b = b_ih + b_hh: (1, 4H)
#   Gate order along the 4H axis: i, f, g, o (PyTorch order).
# ----------------------------------------------------------------------------
def init_params(key, input_size, hidden_size, num_layers):
    H = hidden_size
    bound = 1.0 / (H ** 0.5)

    def uni(k, shape):
        return jax.random.uniform(k, shape, jnp.float32, -bound, bound)

    params = {"enc": [], "dec": []}
    for which, in0 in (("enc", input_size), ("dec", hidden_size)):
        for layer in range(num_layers):
            in_f = in0 if layer == 0 else H
            key, k1, k2, k3, k4 = jax.random.split(key, 5)
            w_ih = uni(k1, (in_f, 4 * H))
            w_hh = uni(k2, (H, 4 * H))
            b = uni(k3, (1, 4 * H)) + uni(k4, (1, 4 * H))
            params[which].append((w_ih, w_hh, b))

    key, k1, k2 = jax.random.split(key, 3)
    params["fc_w"] = uni(k1, (1, H))
    params["fc_b"] = uni(k2, (1, 1))
    return params


# ----------------------------------------------------------------------------
# Forward pass: one pallas_call (no grid -> whole arrays resident in VMEM)
# ----------------------------------------------------------------------------
@functools.partial(jax.jit, static_argnames=("num_layers", "output_length"))
def lstm_seq2seq_forward(x, params, *, num_layers, output_length):
    """x: (B, T, input_size) float32 -> (B, output_length) float32."""
    B, T, _ = x.shape

    x_tbi = jnp.transpose(x, (1, 0, 2))                  # (T, B, in): step t = leading index

    inputs = [x_tbi]
    for which in ("enc", "dec"):
        for (w_ih, w_hh, b) in params[which]:
            inputs += [w_ih, w_hh, b]
    inputs += [params["fc_w"], params["fc_b"]]

    # grid=() + default BlockSpecs: every operand is one whole-array VMEM block
    # (the full working set is a few tens of KB), one launch for the whole model.
    out = pl.pallas_call(
        functools.partial(_seq2seq_kernel, num_layers),
        out_shape=jax.ShapeDtypeStruct((B, output_length), jnp.float32),
    )(*inputs)
    return out


# ----------------------------------------------------------------------------
# Pure-JAX reference (same math, no Pallas) for validation
# ----------------------------------------------------------------------------
def _reference_forward(x, params, num_layers, output_length):
    B, T, _ = x.shape
    H = params["fc_w"].shape[1]
    prec = jax.lax.Precision.HIGHEST

    def cell(inp, h, c, w_ih, w_hh, b):
        gates = (jnp.dot(inp, w_ih, precision=prec)
                 + jnp.dot(h, w_hh, precision=prec) + b)
        i = jax.nn.sigmoid(gates[:, 0 * H:1 * H])
        f = jax.nn.sigmoid(gates[:, 1 * H:2 * H])
        g = jnp.tanh(gates[:, 2 * H:3 * H])
        o = jax.nn.sigmoid(gates[:, 3 * H:4 * H])
        c = f * c + i * g
        return o * jnp.tanh(c), c

    h = [jnp.zeros((B, H), jnp.float32) for _ in range(num_layers)]
    c = [jnp.zeros((B, H), jnp.float32) for _ in range(num_layers)]
    for t in range(T):
        inp = x[:, t, :]
        for l in range(num_layers):
            w_ih, w_hh, b = params["enc"][l]
            h[l], c[l] = cell(inp, h[l], c[l], w_ih, w_hh, b)
            inp = h[l]
    dec_in = jnp.zeros((B, H), jnp.float32)
    outs = []
    for _ in range(output_length):
        inp = dec_in
        for l in range(num_layers):
            w_ih, w_hh, b = params["dec"][l]
            h[l], c[l] = cell(inp, h[l], c[l], w_ih, w_hh, b)
            inp = h[l]
        dec_in = h[-1]
        outs.append(jnp.sum(h[-1] * params["fc_w"], axis=-1) + params["fc_b"][0, 0])
    return jnp.stack(outs, axis=1)


if __name__ == "__main__":
    BATCH = 2
    SEQ = 8
    INPUT_SIZE = 4
    HIDDEN = 32
    NUM_LAYERS = 2
    OUTPUT_LENGTH = 5

    key = jax.random.PRNGKey(0)
    key, kx = jax.random.split(key)
    x = jax.random.normal(kx, (BATCH, SEQ, INPUT_SIZE), jnp.float32)
    params = init_params(key, INPUT_SIZE, HIDDEN, NUM_LAYERS)

    y = lstm_seq2seq_forward(x, params, num_layers=NUM_LAYERS,
                             output_length=OUTPUT_LENGTH)
    y = jax.block_until_ready(y)
    assert y.shape == (BATCH, OUTPUT_LENGTH), y.shape
    assert bool(jnp.all(jnp.isfinite(y)))

    y_ref = _reference_forward(x, params, NUM_LAYERS, OUTPUT_LENGTH)
    max_err = float(jnp.max(jnp.abs(y - y_ref)))
    assert max_err < 5e-3, f"mismatch vs pure-JAX reference: {max_err}"
    print("KERNEL_OK")
</pallas_src>

<mosaic_0001>
module attributes {stable_mosaic.version = 11 : i64} {
  func.func @_seq2seq_kernel(%arg0: memref<8x2x4xf32, #tpu.memory_space<vmem>>, %arg1: memref<4x128xf32, #tpu.memory_space<vmem>>, %arg2: memref<32x128xf32, #tpu.memory_space<vmem>>, %arg3: memref<1x128xf32, #tpu.memory_space<vmem>>, %arg4: memref<32x128xf32, #tpu.memory_space<vmem>>, %arg5: memref<32x128xf32, #tpu.memory_space<vmem>>, %arg6: memref<1x128xf32, #tpu.memory_space<vmem>>, %arg7: memref<32x128xf32, #tpu.memory_space<vmem>>, %arg8: memref<32x128xf32, #tpu.memory_space<vmem>>, %arg9: memref<1x128xf32, #tpu.memory_space<vmem>>, %arg10: memref<32x128xf32, #tpu.memory_space<vmem>>, %arg11: memref<32x128xf32, #tpu.memory_space<vmem>>, %arg12: memref<1x128xf32, #tpu.memory_space<vmem>>, %arg13: memref<1x32xf32, #tpu.memory_space<vmem>>, %arg14: memref<1x1xf32, #tpu.memory_space<vmem>>, %arg15: memref<2x5xf32, #tpu.memory_space<vmem>>) attributes {dimension_semantics = [], scalar_prefetch = 0 : i64, scratch_operands = 0 : i64, tpu.core_type = #tpu.core_type<tc>} {
    %cst = arith.constant 0.000000e+00 : f32
    %0 = vector.broadcast %cst : f32 to vector<2x32xf32>
    %cst_0 = arith.constant 0.000000e+00 : f32
    %1 = vector.broadcast %cst_0 : f32 to vector<2x32xf32>
    %cst_1 = arith.constant 0.000000e+00 : f32
    %2 = vector.broadcast %cst_1 : f32 to vector<2x32xf32>
    %cst_2 = arith.constant 0.000000e+00 : f32
    %3 = vector.broadcast %cst_2 : f32 to vector<2x32xf32>
    %c0 = arith.constant 0 : index
    %c0_3 = arith.constant 0 : index
    %c0_4 = arith.constant 0 : index
    %4 = vector.load %arg0[%c0, %c0_3, %c0_4] : memref<8x2x4xf32, #tpu.memory_space<vmem>>, vector<1x2x4xf32>
    %5 = vector.shape_cast %4 : vector<1x2x4xf32> to vector<2x4xf32>
    %c0_5 = arith.constant 0 : index
    %c0_6 = arith.constant 0 : index
    %6 = vector.load %arg1[%c0_5, %c0_6] : memref<4x128xf32, #tpu.memory_space<vmem>>, vector<4x128xf32>
    %cst_7 = arith.constant dense<0.000000e+00> : vector<2x128xf32>
    %7 = tpu.matmul %5, %6, %cst_7 {dimension_numbers = #tpu.dot_dimension_numbers<[1], [0], [0], [1], [0, 0, 1, 1], [], []>} : vector<2x4xf32>, vector<4x128xf32>, vector<2x128xf32> -> vector<2x128xf32>
    %c0_8 = arith.constant 0 : index
    %c0_9 = arith.constant 0 : index
    %8 = vector.load %arg2[%c0_8, %c0_9] : memref<32x128xf32, #tpu.memory_space<vmem>>, vector<32x128xf32>
    %cst_10 = arith.constant dense<0.000000e+00> : vector<2x128xf32>
    %9 = tpu.matmul %0, %8, %cst_10 {dimension_numbers = #tpu.dot_dimension_numbers<[1], [0], [0], [1], [0, 0, 1, 1], [], []>} : vector<2x32xf32>, vector<32x128xf32>, vector<2x128xf32> -> vector<2x128xf32>
    %10 = arith.addf %7, %9 : vector<2x128xf32>
    %c0_11 = arith.constant 0 : index
    %c0_12 = arith.constant 0 : index
    %11 = vector.load %arg3[%c0_11, %c0_12] : memref<1x128xf32, #tpu.memory_space<vmem>>, vector<1x128xf32>
    %12 = vector.broadcast %11 : vector<1x128xf32> to vector<2x128xf32>
    %13 = arith.addf %10, %12 : vector<2x128xf32>
    %14 = vector.extract_strided_slice %13 {offsets = [0, 0], sizes = [2, 32], strides = [1, 1]} : vector<2x128xf32> to vector<2x32xf32>
    %15 = arith.negf %14 : vector<2x32xf32>
    %16 = math.exp %15 : vector<2x32xf32>
    %cst_13 = arith.constant 1.000000e+00 : f32
    %17 = vector.broadcast %cst_13 : f32 to vector<2x32xf32>
    %18 = arith.addf %17, %16 : vector<2x32xf32>
    %19 = arith.divf %17, %18 : vector<2x32xf32>
    %20 = vector.extract_strided_slice %13 {offsets = [0, 32], sizes = [2, 32], strides = [1, 1]} : vector<2x128xf32> to vector<2x32xf32>
    %21 = arith.negf %20 : vector<2x32xf32>
    %22 = math.exp %21 : vector<2x32xf32>
    %cst_14 = arith.constant 1.000000e+00 : f32
    %23 = vector.broadcast %cst_14 : f32 to vector<2x32xf32>
    %24 = arith.addf %23, %22 : vector<2x32xf32>
    %25 = arith.divf %23, %24 : vector<2x32xf32>
    %26 = vector.extract_strided_slice %13 {offsets = [0, 64], sizes = [2, 32], strides = [1, 1]} : vector<2x128xf32> to vector<2x32xf32>
    %27 = math.tanh %26 : vector<2x32xf32>
    %28 = vector.extract_strided_slice %13 {offsets = [0, 96], sizes = [2, 32], strides = [1, 1]} : vector<2x128xf32> to vector<2x32xf32>
    %29 = arith.negf %28 : vector<2x32xf32>
    %30 = math.exp %29 : vector<2x32xf32>
    %cst_15 = arith.constant 1.000000e+00 : f32
    %31 = vector.broadcast %cst_15 : f32 to vector<2x32xf32>
    %32 = arith.addf %31, %30 : vector<2x32xf32>
    %33 = arith.divf %31, %32 : vector<2x32xf32>
    %34 = arith.mulf %25, %2 : vector<2x32xf32>
    %35 = arith.mulf %19, %27 : vector<2x32xf32>
    %36 = arith.addf %34, %35 : vector<2x32xf32>
    %37 = math.tanh %36 : vector<2x32xf32>
    %38 = arith.mulf %33, %37 : vector<2x32xf32>
    %c0_16 = arith.constant 0 : index
    %c0_17 = arith.constant 0 : index
    %39 = vector.load %arg4[%c0_16, %c0_17] : memref<32x128xf32, #tpu.memory_space<vmem>>, vector<32x128xf32>
    %cst_18 = arith.constant dense<0.000000e+00> : vector<2x128xf32>
    %40 = tpu.matmul %38, %39, %cst_18 {dimension_numbers = #tpu.dot_dimension_numbers<[1], [0], [0], [1], [0, 0, 1, 1], [], []>} : vector<2x32xf32>, vector<32x128xf32>, vector<2x128xf32> -> vector<2x128xf32>
    %c0_19 = arith.constant 0 : index
    %c0_20 = arith.constant 0 : index
    %41 = vector.load %arg5[%c0_19, %c0_20] : memref<32x128xf32, #tpu.memory_space<vmem>>, vector<32x128xf32>
    %cst_21 = arith.constant dense<0.000000e+00> : vector<2x128xf32>
    %42 = tpu.matmul %1, %41, %cst_21 {dimension_numbers = #tpu.dot_dimension_numbers<[1], [0], [0], [1], [0, 0, 1, 1], [], []>} : vector<2x32xf32>, vector<32x128xf32>, vector<2x128xf32> -> vector<2x128xf32>
    %43 = arith.addf %40, %42 : vector<2x128xf32>
    %c0_22 = arith.constant 0 : index
    %c0_23 = arith.constant 0 : index
    %44 = vector.load %arg6[%c0_22, %c0_23] : memref<1x128xf32, #tpu.memory_space<vmem>>, vector<1x128xf32>
    %45 = vector.broadcast %44 : vector<1x128xf32> to vector<2x128xf32>
    %46 = arith.addf %43, %45 : vector<2x128xf32>
    %47 = vector.extract_strided_slice %46 {offsets = [0, 0], sizes = [2, 32], strides = [1, 1]} : vector<2x128xf32> to vector<2x32xf32>
    %48 = arith.negf %47 : vector<2x32xf32>
    %49 = math.exp %48 : vector<2x32xf32>
    %cst_24 = arith.constant 1.000000e+00 : f32
    %50 = vector.broadcast %cst_24 : f32 to vector<2x32xf32>
    %51 = arith.addf %50, %49 : vector<2x32xf32>
    %52 = arith.divf %50, %51 : vector<2x32xf32>
    %53 = vector.extract_strided_slice %46 {offsets = [0, 32], sizes = [2, 32], strides = [1, 1]} : vector<2x128xf32> to vector<2x32xf32>
    %54 = arith.negf %53 : vector<2x32xf32>
    %55 = math.exp %54 : vector<2x32xf32>
    %cst_25 = arith.constant 1.000000e+00 : f32
    %56 = vector.broadcast %cst_25 : f32 to vector<2x32xf32>
    %57 = arith.addf %56, %55 : vector<2x32xf32>
    %58 = arith.divf %56, %57 : vector<2x32xf32>
    %59 = vector.extract_strided_slice %46 {offsets = [0, 64], sizes = [2, 32], strides = [1, 1]} : vector<2x128xf32> to vector<2x32xf32>
    %60 = math.tanh %59 : vector<2x32xf32>
    %61 = vector.extract_strided_slice %46 {offsets = [0, 96], sizes = [2, 32], strides = [1, 1]} : vector<2x128xf32> to vector<2x32xf32>
    %62 = arith.negf %61 : vector<2x32xf32>
    %63 = math.exp %62 : vector<2x32xf32>
    %cst_26 = arith.constant 1.000000e+00 : f32
    %64 = vector.broadcast %cst_26 : f32 to vector<2x32xf32>
    %65 = arith.addf %64, %63 : vector<2x32xf32>
    %66 = arith.divf %64, %65 : vector<2x32xf32>
    %67 = arith.mulf %58, %3 : vector<2x32xf32>
    %68 = arith.mulf %52, %60 : vector<2x32xf32>
    %69 = arith.addf %67, %68 : vector<2x32xf32>
    %70 = math.tanh %69 : vector<2x32xf32>
    %71 = arith.mulf %66, %70 : vector<2x32xf32>
    %c1 = arith.constant 1 : index
    %c0_27 = arith.constant 0 : index
    %c0_28 = arith.constant 0 : index
    %72 = vector.load %arg0[%c1, %c0_27, %c0_28] : memref<8x2x4xf32, #tpu.memory_space<vmem>>, vector<1x2x4xf32>
    %73 = vector.shape_cast %72 : vector<1x2x4xf32> to vector<2x4xf32>
    %c0_29 = arith.constant 0 : index
    %c0_30 = arith.constant 0 : index
    %74 = vector.load %arg1[%c0_29, %c0_30] : memref<4x128xf32, #tpu.memory_space<vmem>>, vector<4x128xf32>
    %cst_31 = arith.constant dense<0.000000e+00> : vector<2x128xf32>
    %75 = tpu.matmul %73, %74, %cst_31 {dimension_numbers = #tpu.dot_dimension_numbers<[1], [0], [0], [1], [0, 0, 1, 1], [], []>} : vector<2x4xf32>, vector<4x128xf32>, vector<2x128xf32> -> vector<2x128xf32>
    %c0_32 = arith.constant 0 : index
    %c0_33 = arith.constant 0 : index
    %76 = vector.load %arg2[%c0_32, %c0_33] : memref<32x128xf32, #tpu.memory_space<vmem>>, vector<32x128xf32>
    %cst_34 = arith.constant dense<0.000000e+00> : vector<2x128xf32>
    %77 = tpu.matmul %38, %76, %cst_34 {dimension_numbers = #tpu.dot_dimension_numbers<[1], [0], [0], [1], [0, 0, 1, 1], [], []>} : vector<2x32xf32>, vector<32x128xf32>, vector<2x128xf32> -> vector<2x128xf32>
    %78 = arith.addf %75, %77 : vector<2x128xf32>
    %c0_35 = arith.constant 0 : index
    %c0_36 = arith.constant 0 : index
    %79 = vector.load %arg3[%c0_35, %c0_36] : memref<1x128xf32, #tpu.memory_space<vmem>>, vector<1x128xf32>
    %80 = vector.broadcast %79 : vector<1x128xf32> to vector<2x128xf32>
    %81 = arith.addf %78, %80 : vector<2x128xf32>
    %82 = vector.extract_strided_slice %81 {offsets = [0, 0], sizes = [2, 32], strides = [1, 1]} : vector<2x128xf32> to vector<2x32xf32>
    %83 = arith.negf %82 : vector<2x32xf32>
    %84 = math.exp %83 : vector<2x32xf32>
    %cst_37 = arith.constant 1.000000e+00 : f32
    %85 = vector.broadcast %cst_37 : f32 to vector<2x32xf32>
    %86 = arith.addf %85, %84 : vector<2x32xf32>
    %87 = arith.divf %85, %86 : vector<2x32xf32>
    %88 = vector.extract_strided_slice %81 {offsets = [0, 32], sizes = [2, 32], strides = [1, 1]} : vector<2x128xf32> to vector<2x32xf32>
    %89 = arith.negf %88 : vector<2x32xf32>
    %90 = math.exp %89 : vector<2x32xf32>
    %cst_38 = arith.constant 1.000000e+00 : f32
    %91 = vector.broadcast %cst_38 : f32 to vector<2x32xf32>
    %92 = arith.addf %91, %90 : vector<2x32xf32>
    %93 = arith.divf %91, %92 : vector<2x32xf32>
    %94 = vector.extract_strided_slice %81 {offsets = [0, 64], sizes = [2, 32], strides = [1, 1]} : vector<2x128xf32> to vector<2x32xf32>
    %95 = math.tanh %94 : vector<2x32xf32>
    %96 = vector.extract_strided_slice %81 {offsets = [0, 96], sizes = [2, 32], strides = [1, 1]} : vector<2x128xf32> to vector<2x32xf32>
    %97 = arith.negf %96 : vector<2x32xf32>
    %98 = math.exp %97 : vector<2x32xf32>
    %cst_39 = arith.constant 1.000000e+00 : f32
    %99 = vector.broadcast %cst_39 : f32 to vector<2x32xf32>
    %100 = arith.addf %99, %98 : vector<2x32xf32>
    %101 = arith.divf %99, %100 : vector<2x32xf32>
    %102 = arith.mulf %93, %36 : vector<2x32xf32>
    %103 = arith.mulf %87, %95 : vector<2x32xf32>
    %104 = arith.addf %102, %103 : vector<2x32xf32>
    %105 = math.tanh %104 : vector<2x32xf32>
    %106 = arith.mulf %101, %105 : vector<2x32xf32>
    %c0_40 = arith.constant 0 : index
    %c0_41 = arith.constant 0 : index
    %107 = vector.load %arg4[%c0_40, %c0_41] : memref<32x128xf32, #tpu.memory_space<vmem>>, vector<32x128xf32>
    %cst_42 = arith.constant dense<0.000000e+00> : vector<2x128xf32>
    %108 = tpu.matmul %106, %107, %cst_42 {dimension_numbers = #tpu.dot_dimension_numbers<[1], [0], [0], [1], [0, 0, 1, 1], [], []>} : vector<2x32xf32>, vector<32x128xf32>, vector<2x128xf32> -> vector<2x128xf32>
    %c0_43 = arith.constant 0 : index
    %c0_44 = arith.constant 0 : index
    %109 = vector.load %arg5[%c0_43, %c0_44] : memref<32x128xf32, #tpu.memory_space<vmem>>, vector<32x128xf32>
    %cst_45 = arith.constant dense<0.000000e+00> : vector<2x128xf32>
    %110 = tpu.matmul %71, %109, %cst_45 {dimension_numbers = #tpu.dot_dimension_numbers<[1], [0], [0], [1], [0, 0, 1, 1], [], []>} : vector<2x32xf32>, vector<32x128xf32>, vector<2x128xf32> -> vector<2x128xf32>
    %111 = arith.addf %108, %110 : vector<2x128xf32>
    %c0_46 = arith.constant 0 : index
    %c0_47 = arith.constant 0 : index
    %112 = vector.load %arg6[%c0_46, %c0_47] : memref<1x128xf32, #tpu.memory_space<vmem>>, vector<1x128xf32>
    %113 = vector.broadcast %112 : vector<1x128xf32> to vector<2x128xf32>
    %114 = arith.addf %111, %113 : vector<2x128xf32>
    %115 = vector.extract_strided_slice %114 {offsets = [0, 0], sizes = [2, 32], strides = [1, 1]} : vector<2x128xf32> to vector<2x32xf32>
    %116 = arith.negf %115 : vector<2x32xf32>
    %117 = math.exp %116 : vector<2x32xf32>
    %cst_48 = arith.constant 1.000000e+00 : f32
    %118 = vector.broadcast %cst_48 : f32 to vector<2x32xf32>
    %119 = arith.addf %118, %117 : vector<2x32xf32>
    %120 = arith.divf %118, %119 : vector<2x32xf32>
    %121 = vector.extract_strided_slice %114 {offsets = [0, 32], sizes = [2, 32], strides = [1, 1]} : vector<2x128xf32> to vector<2x32xf32>
    %122 = arith.negf %121 : vector<2x32xf32>
    %123 = math.exp %122 : vector<2x32xf32>
    %cst_49 = arith.constant 1.000000e+00 : f32
    %124 = vector.broadcast %cst_49 : f32 to vector<2x32xf32>
    %125 = arith.addf %124, %123 : vector<2x32xf32>
    %126 = arith.divf %124, %125 : vector<2x32xf32>
    %127 = vector.extract_strided_slice %114 {offsets = [0, 64], sizes = [2, 32], strides = [1, 1]} : vector<2x128xf32> to vector<2x32xf32>
    %128 = math.tanh %127 : vector<2x32xf32>
    %129 = vector.extract_strided_slice %114 {offsets = [0, 96], sizes = [2, 32], strides = [1, 1]} : vector<2x128xf32> to vector<2x32xf32>
    %130 = arith.negf %129 : vector<2x32xf32>
    %131 = math.exp %130 : vector<2x32xf32>
    %cst_50 = arith.constant 1.000000e+00 : f32
    %132 = vector.broadcast %cst_50 : f32 to vector<2x32xf32>
    %133 = arith.addf %132, %131 : vector<2x32xf32>
    %134 = arith.divf %132, %133 : vector<2x32xf32>
    %135 = arith.mulf %126, %69 : vector<2x32xf32>
    %136 = arith.mulf %120, %128 : vector<2x32xf32>
    %137 = arith.addf %135, %136 : vector<2x32xf32>
    %138 = math.tanh %137 : vector<2x32xf32>
    %139 = arith.mulf %134, %138 : vector<2x32xf32>
    %c2 = arith.constant 2 : index
    %c0_51 = arith.constant 0 : index
    %c0_52 = arith.constant 0 : index
    %140 = vector.load %arg0[%c2, %c0_51, %c0_52] : memref<8x2x4xf32, #tpu.memory_space<vmem>>, vector<1x2x4xf32>
    %141 = vector.shape_cast %140 : vector<1x2x4xf32> to vector<2x4xf32>
    %c0_53 = arith.constant 0 : index
    %c0_54 = arith.constant 0 : index
    %142 = vector.load %arg1[%c0_53, %c0_54] : memref<4x128xf32, #tpu.memory_space<vmem>>, vector<4x128xf32>
    %cst_55 = arith.constant dense<0.000000e+00> : vector<2x128xf32>
    %143 = tpu.matmul %141, %142, %cst_55 {dimension_numbers = #tpu.dot_dimension_numbers<[1], [0], [0], [1], [0, 0, 1, 1], [], []>} : vector<2x4xf32>, vector<4x128xf32>, vector<2x128xf32> -> vector<2x128xf32>
    %c0_56 = arith.constant 0 : index
    %c0_57 = arith.constant 0 : index
    %144 = vector.load %arg2[%c0_56, %c0_57] : memref<32x128xf32, #tpu.memory_space<vmem>>, vector<32x128xf32>
    %cst_58 = arith.constant dense<0.000000e+00> : vector<2x128xf32>
    %145 = tpu.matmul %106, %144, %cst_58 {dimension_numbers = #tpu.dot_dimension_numbers<[1], [0], [0], [1], [0, 0, 1, 1], [], []>} : vector<2x32xf32>, vector<32x128xf32>, vector<2x128xf32> -> vector<2x128xf32>
    %146 = arith.addf %143, %145 : vector<2x128xf32>
    %c0_59 = arith.constant 0 : index
    %c0_60 = arith.constant 0 : index
    %147 = vector.load %arg3[%c0_59, %c0_60] : memref<1x128xf32, #tpu.memory_space<vmem>>, vector<1x128xf32>
    %148 = vector.broadcast %147 : vector<1x128xf32> to vector<2x128xf32>
    %149 = arith.addf %146, %148 : vector<2x128xf32>
    %150 = vector.extract_strided_slice %149 {offsets = [0, 0], sizes = [2, 32], strides = [1, 1]} : vector<2x128xf32> to vector<2x32xf32>
    %151 = arith.negf %150 : vector<2x32xf32>
    %152 = math.exp %151 : vector<2x32xf32>
    %cst_61 = arith.constant 1.000000e+00 : f32
    %153 = vector.broadcast %cst_61 : f32 to vector<2x32xf32>
    %154 = arith.addf %153, %152 : vector<2x32xf32>
    %155 = arith.divf %153, %154 : vector<2x32xf32>
    %156 = vector.extract_strided_slice %149 {offsets = [0, 32], sizes = [2, 32], strides = [1, 1]} : vector<2x128xf32> to vector<2x32xf32>
    %157 = arith.negf %156 : vector<2x32xf32>
    %158 = math.exp %157 : vector<2x32xf32>
    %cst_62 = arith.constant 1.000000e+00 : f32
    %159 = vector.broadcast %cst_62 : f32 to vector<2x32xf32>
    %160 = arith.addf %159, %158 : vector<2x32xf32>
    %161 = arith.divf %159, %160 : vector<2x32xf32>
    %162 = vector.extract_strided_slice %149 {offsets = [0, 64], sizes = [2, 32], strides = [1, 1]} : vector<2x128xf32> to vector<2x32xf32>
    %163 = math.tanh %162 : vector<2x32xf32>
    %164 = vector.extract_strided_slice %149 {offsets = [0, 96], sizes = [2, 32], strides = [1, 1]} : vector<2x128xf32> to vector<2x32xf32>
    %165 = arith.negf %164 : vector<2x32xf32>
    %166 = math.exp %165 : vector<2x32xf32>
    %cst_63 = arith.constant 1.000000e+00 : f32
    %167 = vector.broadcast %cst_63 : f32 to vector<2x32xf32>
    %168 = arith.addf %167, %166 : vector<2x32xf32>
    %169 = arith.divf %167, %168 : vector<2x32xf32>
    %170 = arith.mulf %161, %104 : vector<2x32xf32>
    %171 = arith.mulf %155, %163 : vector<2x32xf32>
    %172 = arith.addf %170, %171 : vector<2x32xf32>
    %173 = math.tanh %172 : vector<2x32xf32>
    %174 = arith.mulf %169, %173 : vector<2x32xf32>
    %c0_64 = arith.constant 0 : index
    %c0_65 = arith.constant 0 : index
    %175 = vector.load %arg4[%c0_64, %c0_65] : memref<32x128xf32, #tpu.memory_space<vmem>>, vector<32x128xf32>
    %cst_66 = arith.constant dense<0.000000e+00> : vector<2x128xf32>
    %176 = tpu.matmul %174, %175, %cst_66 {dimension_numbers = #tpu.dot_dimension_numbers<[1], [0], [0], [1], [0, 0, 1, 1], [], []>} : vector<2x32xf32>, vector<32x128xf32>, vector<2x128xf32> -> vector<2x128xf32>
    %c0_67 = arith.constant 0 : index
    %c0_68 = arith.constant 0 : index
    %177 = vector.load %arg5[%c0_67, %c0_68] : memref<32x128xf32, #tpu.memory_space<vmem>>, vector<32x128xf32>
    %cst_69 = arith.constant dense<0.000000e+00> : vector<2x128xf32>
    %178 = tpu.matmul %139, %177, %cst_69 {dimension_numbers = #tpu.dot_dimension_numbers<[1], [0], [0], [1], [0, 0, 1, 1], [], []>} : vector<2x32xf32>, vector<32x128xf32>, vector<2x128xf32> -> vector<2x128xf32>
    %179 = arith.addf %176, %178 : vector<2x128xf32>
    %c0_70 = arith.constant 0 : index
    %c0_71 = arith.constant 0 : index
    %180 = vector.load %arg6[%c0_70, %c0_71] : memref<1x128xf32, #tpu.memory_space<vmem>>, vector<1x128xf32>
    %181 = vector.broadcast %180 : vector<1x128xf32> to vector<2x128xf32>
    %182 = arith.addf %179, %181 : vector<2x128xf32>
    %183 = vector.extract_strided_slice %182 {offsets = [0, 0], sizes = [2, 32], strides = [1, 1]} : vector<2x128xf32> to vector<2x32xf32>
    %184 = arith.negf %183 : vector<2x32xf32>
    %185 = math.exp %184 : vector<2x32xf32>
    %cst_72 = arith.constant 1.000000e+00 : f32
    %186 = vector.broadcast %cst_72 : f32 to vector<2x32xf32>
    %187 = arith.addf %186, %185 : vector<2x32xf32>
    %188 = arith.divf %186, %187 : vector<2x32xf32>
    %189 = vector.extract_strided_slice %182 {offsets = [0, 32], sizes = [2, 32], strides = [1, 1]} : vector<2x128xf32> to vector<2x32xf32>
    %190 = arith.negf %189 : vector<2x32xf32>
    %191 = math.exp %190 : vector<2x32xf32>
    %cst_73 = arith.constant 1.000000e+00 : f32
    %192 = vector.broadcast %cst_73 : f32 to vector<2x32xf32>
    %193 = arith.addf %192, %191 : vector<2x32xf32>
    %194 = arith.divf %192, %193 : vector<2x32xf32>
    %195 = vector.extract_strided_slice %182 {offsets = [0, 64], sizes = [2, 32], strides = [1, 1]} : vector<2x128xf32> to vector<2x32xf32>
    %196 = math.tanh %195 : vector<2x32xf32>
    %197 = vector.extract_strided_slice %182 {offsets = [0, 96], sizes = [2, 32], strides = [1, 1]} : vector<2x128xf32> to vector<2x32xf32>
    %198 = arith.negf %197 : vector<2x32xf32>
    %199 = math.exp %198 : vector<2x32xf32>
    %cst_74 = arith.constant 1.000000e+00 : f32
    %200 = vector.broadcast %cst_74 : f32 to vector<2x32xf32>
    %201 = arith.addf %200, %199 : vector<2x32xf32>
    %202 = arith.divf %200, %201 : vector<2x32xf32>
    %203 = arith.mulf %194, %137 : vector<2x32xf32>
    %204 = arith.mulf %188, %196 : vector<2x32xf32>
    %205 = arith.addf %203, %204 : vector<2x32xf32>
    %206 = math.tanh %205 : vector<2x32xf32>
    %207 = arith.mulf %202, %206 : vector<2x32xf32>
    %c3 = arith.constant 3 : index
    %c0_75 = arith.constant 0 : index
    %c0_76 = arith.constant 0 : index
    %208 = vector.load %arg0[%c3, %c0_75, %c0_76] : memref<8x2x4xf32, #tpu.memory_space<vmem>>, vector<1x2x4xf32>
    %209 = vector.shape_cast %208 : vector<1x2x4xf32> to vector<2x4xf32>
    %c0_77 = arith.constant 0 : index
    %c0_78 = arith.constant 0 : index
    %210 = vector.load %arg1[%c0_77, %c0_78] : memref<4x128xf32, #tpu.memory_space<vmem>>, vector<4x128xf32>
    %cst_79 = arith.constant dense<0.000000e+00> : vector<2x128xf32>
    %211 = tpu.matmul %209, %210, %cst_79 {dimension_numbers = #tpu.dot_dimension_numbers<[1], [0], [0], [1], [0, 0, 1, 1], [], []>} : vector<2x4xf32>, vector<4x128xf32>, vector<2x128xf32> -> vector<2x128xf32>
    %c0_80 = arith.constant 0 : index
    %c0_81 = arith.constant 0 : index
    %212 = vector.load %arg2[%c0_80, %c0_81] : memref<32x128xf32, #tpu.memory_space<vmem>>, vector<32x128xf32>
    %cst_82 = arith.constant dense<0.000000e+00> : vector<2x128xf32>
    %213 = tpu.matmul %174, %212, %cst_82 {dimension_numbers = #tpu.dot_dimension_numbers<[1], [0], [0], [1], [0, 0, 1, 1], [], []>} : vector<2x32xf32>, vector<32x128xf32>, vector<2x128xf32> -> vector<2x128xf32>
    %214 = arith.addf %211, %213 : vector<2x128xf32>
    %c0_83 = arith.constant 0 : index
    %c0_84 = arith.constant 0 : index
    %215 = vector.load %arg3[%c0_83, %c0_84] : memref<1x128xf32, #tpu.memory_space<vmem>>, vector<1x128xf32>
    %216 = vector.broadcast %215 : vector<1x128xf32> to vector<2x128xf32>
    %217 = arith.addf %214, %216 : vector<2x128xf32>
    %218 = vector.extract_strided_slice %217 {offsets = [0, 0], sizes = [2, 32], strides = [1, 1]} : vector<2x128xf32> to vector<2x32xf32>
    %219 = arith.negf %218 : vector<2x32xf32>
    %220 = math.exp %219 : vector<2x32xf32>
    %cst_85 = arith.constant 1.000000e+00 : f32
    %221 = vector.broadcast %cst_85 : f32 to vector<2x32xf32>
    %222 = arith.addf %221, %220 : vector<2x32xf32>
    %223 = arith.divf %221, %222 : vector<2x32xf32>
    %224 = vector.extract_strided_slice %217 {offsets = [0, 32], sizes = [2, 32], strides = [1, 1]} : vector<2x128xf32> to vector<2x32xf32>
    %225 = arith.negf %224 : vector<2x32xf32>
    %226 = math.exp %225 : vector<2x32xf32>
    %cst_86 = arith.constant 1.000000e+00 : f32
    %227 = vector.broadcast %cst_86 : f32 to vector<2x32xf32>
    %228 = arith.addf %227, %226 : vector<2x32xf32>
    %229 = arith.divf %227, %228 : vector<2x32xf32>
    %230 = vector.extract_strided_slice %217 {offsets = [0, 64], sizes = [2, 32], strides = [1, 1]} : vector<2x128xf32> to vector<2x32xf32>
    %231 = math.tanh %230 : vector<2x32xf32>
    %232 = vector.extract_strided_slice %217 {offsets = [0, 96], sizes = [2, 32], strides = [1, 1]} : vector<2x128xf32> to vector<2x32xf32>
    %233 = arith.negf %232 : vector<2x32xf32>
    %234 = math.exp %233 : vector<2x32xf32>
    %cst_87 = arith.constant 1.000000e+00 : f32
    %235 = vector.broadcast %cst_87 : f32 to vector<2x32xf32>
    %236 = arith.addf %235, %234 : vector<2x32xf32>
    %237 = arith.divf %235, %236 : vector<2x32xf32>
    %238 = arith.mulf %229, %172 : vector<2x32xf32>
    %239 = arith.mulf %223, %231 : vector<2x32xf32>
    %240 = arith.addf %238, %239 : vector<2x32xf32>
    %241 = math.tanh %240 : vector<2x32xf32>
    %242 = arith.mulf %237, %241 : vector<2x32xf32>
    %c0_88 = arith.constant 0 : index
    %c0_89 = arith.constant 0 : index
    %243 = vector.load %arg4[%c0_88, %c0_89] : memref<32x128xf32, #tpu.memory_space<vmem>>, vector<32x128xf32>
    %cst_90 = arith.constant dense<0.000000e+00> : vector<2x128xf32>
    %244 = tpu.matmul %242, %243, %cst_90 {dimension_numbers = #tpu.dot_dimension_numbers<[1], [0], [0], [1], [0, 0, 1, 1], [], []>} : vector<2x32xf32>, vector<32x128xf32>, vector<2x128xf32> -> vector<2x128xf32>
    %c0_91 = arith.constant 0 : index
    %c0_92 = arith.constant 0 : index
    %245 = vector.load %arg5[%c0_91, %c0_92] : memref<32x128xf32, #tpu.memory_space<vmem>>, vector<32x128xf32>
    %cst_93 = arith.constant dense<0.000000e+00> : vector<2x128xf32>
    %246 = tpu.matmul %207, %245, %cst_93 {dimension_numbers = #tpu.dot_dimension_numbers<[1], [0], [0], [1], [0, 0, 1, 1], [], []>} : vector<2x32xf32>, vector<32x128xf32>, vector<2x128xf32> -> vector<2x128xf32>
    %247 = arith.addf %244, %246 : vector<2x128xf32>
    %c0_94 = arith.constant 0 : index
    %c0_95 = arith.constant 0 : index
    %248 = vector.load %arg6[%c0_94, %c0_95] : memref<1x128xf32, #tpu.memory_space<vmem>>, vector<1x128xf32>
    %249 = vector.broadcast %248 : vector<1x128xf32> to vector<2x128xf32>
    %250 = arith.addf %247, %249 : vector<2x128xf32>
    %251 = vector.extract_strided_slice %250 {offsets = [0, 0], sizes = [2, 32], strides = [1, 1]} : vector<2x128xf32> to vector<2x32xf32>
    %252 = arith.negf %251 : vector<2x32xf32>
    %253 = math.exp %252 : vector<2x32xf32>
    %cst_96 = arith.constant 1.000000e+00 : f32
    %254 = vector.broadcast %cst_96 : f32 to vector<2x32xf32>
    %255 = arith.addf %254, %253 : vector<2x32xf32>
    %256 = arith.divf %254, %255 : vector<2x32xf32>
    %257 = vector.extract_strided_slice %250 {offsets = [0, 32], sizes = [2, 32], strides = [1, 1]} : vector<2x128xf32> to vector<2x32xf32>
    %258 = arith.negf %257 : vector<2x32xf32>
    %259 = math.exp %258 : vector<2x32xf32>
    %cst_97 = arith.constant 1.000000e+00 : f32
    %260 = vector.broadcast %cst_97 : f32 to vector<2x32xf32>
    %261 = arith.addf %260, %259 : vector<2x32xf32>
    %262 = arith.divf %260, %261 : vector<2x32xf32>
    %263 = vector.extract_strided_slice %250 {offsets = [0, 64], sizes = [2, 32], strides = [1, 1]} : vector<2x128xf32> to vector<2x32xf32>
    %264 = math.tanh %263 : vector<2x32xf32>
    %265 = vector.extract_strided_slice %250 {offsets = [0, 96], sizes = [2, 32], strides = [1, 1]} : vector<2x128xf32> to vector<2x32xf32>
    %266 = arith.negf %265 : vector<2x32xf32>
    %267 = math.exp %266 : vector<2x32xf32>
    %cst_98 = arith.constant 1.000000e+00 : f32
    %268 = vector.broadcast %cst_98 : f32 to vector<2x32xf32>
    %269 = arith.addf %268, %267 : vector<2x32xf32>
    %270 = arith.divf %268, %269 : vector<2x32xf32>
    %271 = arith.mulf %262, %205 : vector<2x32xf32>
    %272 = arith.mulf %256, %264 : vector<2x32xf32>
    %273 = arith.addf %271, %272 : vector<2x32xf32>
    %274 = math.tanh %273 : vector<2x32xf32>
    %275 = arith.mulf %270, %274 : vector<2x32xf32>
    %c4 = arith.constant 4 : index
    %c0_99 = arith.constant 0 : index
    %c0_100 = arith.constant 0 : index
    %276 = vector.load %arg0[%c4, %c0_99, %c0_100] : memref<8x2x4xf32, #tpu.memory_space<vmem>>, vector<1x2x4xf32>
    %277 = vector.shape_cast %276 : vector<1x2x4xf32> to vector<2x4xf32>
    %c0_101 = arith.constant 0 : index
    %c0_102 = arith.constant 0 : index
    %278 = vector.load %arg1[%c0_101, %c0_102] : memref<4x128xf32, #tpu.memory_space<vmem>>, vector<4x128xf32>
    %cst_103 = arith.constant dense<0.000000e+00> : vector<2x128xf32>
    %279 = tpu.matmul %277, %278, %cst_103 {dimension_numbers = #tpu.dot_dimension_numbers<[1], [0], [0], [1], [0, 0, 1, 1], [], []>} : vector<2x4xf32>, vector<4x128xf32>, vector<2x128xf32> -> vector<2x128xf32>
    %c0_104 = arith.constant 0 : index
    %c0_105 = arith.constant 0 : index
    %280 = vector.load %arg2[%c0_104, %c0_105] : memref<32x128xf32, #tpu.memory_space<vmem>>, vector<32x128xf32>
    %cst_106 = arith.constant dense<0.000000e+00> : vector<2x128xf32>
    %281 = tpu.matmul %242, %280, %cst_106 {dimension_numbers = #tpu.dot_dimension_numbers<[1], [0], [0], [1], [0, 0, 1, 1], [], []>} : vector<2x32xf32>, vector<32x128xf32>, vector<2x128xf32> -> vector<2x128xf32>
    %282 = arith.addf %279, %281 : vector<2x128xf32>
    %c0_107 = arith.constant 0 : index
    %c0_108 = arith.constant 0 : index
    %283 = vector.load %arg3[%c0_107, %c0_108] : memref<1x128xf32, #tpu.memory_space<vmem>>, vector<1x128xf32>
    %284 = vector.broadcast %283 : vector<1x128xf32> to vector<2x128xf32>
    %285 = arith.addf %282, %284 : vector<2x128xf32>
    %286 = vector.extract_strided_slice %285 {offsets = [0, 0], sizes = [2, 32], strides = [1, 1]} : vector<2x128xf32> to vector<2x32xf32>
    %287 = arith.negf %286 : vector<2x32xf32>
    %288 = math.exp %287 : vector<2x32xf32>
    %cst_109 = arith.constant 1.000000e+00 : f32
    %289 = vector.broadcast %cst_109 : f32 to vector<2x32xf32>
    %290 = arith.addf %289, %288 : vector<2x32xf32>
    %291 = arith.divf %289, %290 : vector<2x32xf32>
    %292 = vector.extract_strided_slice %285 {offsets = [0, 32], sizes = [2, 32], strides = [1, 1]} : vector<2x128xf32> to vector<2x32xf32>
    %293 = arith.negf %292 : vector<2x32xf32>
    %294 = math.exp %293 : vector<2x32xf32>
    %cst_110 = arith.constant 1.000000e+00 : f32
    %295 = vector.broadcast %cst_110 : f32 to vector<2x32xf32>
    %296 = arith.addf %295, %294 : vector<2x32xf32>
    %297 = arith.divf %295, %296 : vector<2x32xf32>
    %298 = vector.extract_strided_slice %285 {offsets = [0, 64], sizes = [2, 32], strides = [1, 1]} : vector<2x128xf32> to vector<2x32xf32>
    %299 = math.tanh %298 : vector<2x32xf32>
    %300 = vector.extract_strided_slice %285 {offsets = [0, 96], sizes = [2, 32], strides = [1, 1]} : vector<2x128xf32> to vector<2x32xf32>
    %301 = arith.negf %300 : vector<2x32xf32>
    %302 = math.exp %301 : vector<2x32xf32>
    %cst_111 = arith.constant 1.000000e+00 : f32
    %303 = vector.broadcast %cst_111 : f32 to vector<2x32xf32>
    %304 = arith.addf %303, %302 : vector<2x32xf32>
    %305 = arith.divf %303, %304 : vector<2x32xf32>
    %306 = arith.mulf %297, %240 : vector<2x32xf32>
    %307 = arith.mulf %291, %299 : vector<2x32xf32>
    %308 = arith.addf %306, %307 : vector<2x32xf32>
    %309 = math.tanh %308 : vector<2x32xf32>
    %310 = arith.mulf %305, %309 : vector<2x32xf32>
    %c0_112 = arith.constant 0 : index
    %c0_113 = arith.constant 0 : index
    %311 = vector.load %arg4[%c0_112, %c0_113] : memref<32x128xf32, #tpu.memory_space<vmem>>, vector<32x128xf32>
    %cst_114 = arith.constant dense<0.000000e+00> : vector<2x128xf32>
    %312 = tpu.matmul %310, %311, %cst_114 {dimension_numbers = #tpu.dot_dimension_numbers<[1], [0], [0], [1], [0, 0, 1, 1], [], []>} : vector<2x32xf32>, vector<32x128xf32>, vector<2x128xf32> -> vector<2x128xf32>
    %c0_115 = arith.constant 0 : index
    %c0_116 = arith.constant 0 : index
    %313 = vector.load %arg5[%c0_115, %c0_116] : memref<32x128xf32, #tpu.memory_space<vmem>>, vector<32x128xf32>
    %cst_117 = arith.constant dense<0.000000e+00> : vector<2x128xf32>
    %314 = tpu.matmul %275, %313, %cst_117 {dimension_numbers = #tpu.dot_dimension_numbers<[1], [0], [0], [1], [0, 0, 1, 1], [], []>} : vector<2x32xf32>, vector<32x128xf32>, vector<2x128xf32> -> vector<2x128xf32>
    %315 = arith.addf %312, %314 : vector<2x128xf32>
    %c0_118 = arith.constant 0 : index
    %c0_119 = arith.constant 0 : index
    %316 = vector.load %arg6[%c0_118, %c0_119] : memref<1x128xf32, #tpu.memory_space<vmem>>, vector<1x128xf32>
    %317 = vector.broadcast %316 : vector<1x128xf32> to vector<2x128xf32>
    %318 = arith.addf %315, %317 : vector<2x128xf32>
    %319 = vector.extract_strided_slice %318 {offsets = [0, 0], sizes = [2, 32], strides = [1, 1]} : vector<2x128xf32> to vector<2x32xf32>
    %320 = arith.negf %319 : vector<2x32xf32>
    %321 = math.exp %320 : vector<2x32xf32>
    %cst_120 = arith.constant 1.000000e+00 : f32
    %322 = vector.broadcast %cst_120 : f32 to vector<2x32xf32>
    %323 = arith.addf %322, %321 : vector<2x32xf32>
    %324 = arith.divf %322, %323 : vector<2x32xf32>
    %325 = vector.extract_strided_slice %318 {offsets = [0, 32], sizes = [2, 32], strides = [1, 1]} : vector<2x128xf32> to vector<2x32xf32>
    %326 = arith.negf %325 : vector<2x32xf32>
    %327 = math.exp %326 : vector<2x32xf32>
    %cst_121 = arith.constant 1.000000e+00 : f32
    %328 = vector.broadcast %cst_121 : f32 to vector<2x32xf32>
    %329 = arith.addf %328, %327 : vector<2x32xf32>
    %330 = arith.divf %328, %329 : vector<2x32xf32>
    %331 = vector.extract_strided_slice %318 {offsets = [0, 64], sizes = [2, 32], strides = [1, 1]} : vector<2x128xf32> to vector<2x32xf32>
    %332 = math.tanh %331 : vector<2x32xf32>
    %333 = vector.extract_strided_slice %318 {offsets = [0, 96], sizes = [2, 32], strides = [1, 1]} : vector<2x128xf32> to vector<2x32xf32>
    %334 = arith.negf %333 : vector<2x32xf32>
    %335 = math.exp %334 : vector<2x32xf32>
    %cst_122 = arith.constant 1.000000e+00 : f32
    %336 = vector.broadcast %cst_122 : f32 to vector<2x32xf32>
    %337 = arith.addf %336, %335 : vector<2x32xf32>
    %338 = arith.divf %336, %337 : vector<2x32xf32>
    %339 = arith.mulf %330, %273 : vector<2x32xf32>
    %340 = arith.mulf %324, %332 : vector<2x32xf32>
    %341 = arith.addf %339, %340 : vector<2x32xf32>
    %342 = math.tanh %341 : vector<2x32xf32>
    %343 = arith.mulf %338, %342 : vector<2x32xf32>
    %c5 = arith.constant 5 : index
    %c0_123 = arith.constant 0 : index
    %c0_124 = arith.constant 0 : index
    %344 = vector.load %arg0[%c5, %c0_123, %c0_124] : memref<8x2x4xf32, #tpu.memory_space<vmem>>, vector<1x2x4xf32>
    %345 = vector.shape_cast %344 : vector<1x2x4xf32> to vector<2x4xf32>
    %c0_125 = arith.constant 0 : index
    %c0_126 = arith.constant 0 : index
    %346 = vector.load %arg1[%c0_125, %c0_126] : memref<4x128xf32, #tpu.memory_space<vmem>>, vector<4x128xf32>
    %cst_127 = arith.constant dense<0.000000e+00> : vector<2x128xf32>
    %347 = tpu.matmul %345, %346, %cst_127 {dimension_numbers = #tpu.dot_dimension_numbers<[1], [0], [0], [1], [0, 0, 1, 1], [], []>} : vector<2x4xf32>, vector<4x128xf32>, vector<2x128xf32> -> vector<2x128xf32>
    %c0_128 = arith.constant 0 : index
    %c0_129 = arith.constant 0 : index
    %348 = vector.load %arg2[%c0_128, %c0_129] : memref<32x128xf32, #tpu.memory_space<vmem>>, vector<32x128xf32>
    %cst_130 = arith.constant dense<0.000000e+00> : vector<2x128xf32>
    %349 = tpu.matmul %310, %348, %cst_130 {dimension_numbers = #tpu.dot_dimension_numbers<[1], [0], [0], [1], [0, 0, 1, 1], [], []>} : vector<2x32xf32>, vector<32x128xf32>, vector<2x128xf32> -> vector<2x128xf32>
    %350 = arith.addf %347, %349 : vector<2x128xf32>
    %c0_131 = arith.constant 0 : index
    %c0_132 = arith.constant 0 : index
    %351 = vector.load %arg3[%c0_131, %c0_132] : memref<1x128xf32, #tpu.memory_space<vmem>>, vector<1x128xf32>
    %352 = vector.broadcast %351 : vector<1x128xf32> to vector<2x128xf32>
    %353 = arith.addf %350, %352 : vector<2x128xf32>
    %354 = vector.extract_strided_slice %353 {offsets = [0, 0], sizes = [2, 32], strides = [1, 1]} : vector<2x128xf32> to vector<2x32xf32>
    %355 = arith.negf %354 : vector<2x32xf32>
    %356 = math.exp %355 : vector<2x32xf32>
    %cst_133 = arith.constant 1.000000e+00 : f32
    %357 = vector.broadcast %cst_133 : f32 to vector<2x32xf32>
    %358 = arith.addf %357, %356 : vector<2x32xf32>
    %359 = arith.divf %357, %358 : vector<2x32xf32>
    %360 = vector.extract_strided_slice %353 {offsets = [0, 32], sizes = [2, 32], strides = [1, 1]} : vector<2x128xf32> to vector<2x32xf32>
    %361 = arith.negf %360 : vector<2x32xf32>
    %362 = math.exp %361 : vector<2x32xf32>
    %cst_134 = arith.constant 1.000000e+00 : f32
    %363 = vector.broadcast %cst_134 : f32 to vector<2x32xf32>
    %364 = arith.addf %363, %362 : vector<2x32xf32>
    %365 = arith.divf %363, %364 : vector<2x32xf32>
    %366 = vector.extract_strided_slice %353 {offsets = [0, 64], sizes = [2, 32], strides = [1, 1]} : vector<2x128xf32> to vector<2x32xf32>
    %367 = math.tanh %366 : vector<2x32xf32>
    %368 = vector.extract_strided_slice %353 {offsets = [0, 96], sizes = [2, 32], strides = [1, 1]} : vector<2x128xf32> to vector<2x32xf32>
    %369 = arith.negf %368 : vector<2x32xf32>
    %370 = math.exp %369 : vector<2x32xf32>
    %cst_135 = arith.constant 1.000000e+00 : f32
    %371 = vector.broadcast %cst_135 : f32 to vector<2x32xf32>
    %372 = arith.addf %371, %370 : vector<2x32xf32>
    %373 = arith.divf %371, %372 : vector<2x32xf32>
    %374 = arith.mulf %365, %308 : vector<2x32xf32>
    %375 = arith.mulf %359, %367 : vector<2x32xf32>
    %376 = arith.addf %374, %375 : vector<2x32xf32>
    %377 = math.tanh %376 : vector<2x32xf32>
    %378 = arith.mulf %373, %377 : vector<2x32xf32>
    %c0_136 = arith.constant 0 : index
    %c0_137 = arith.constant 0 : index
    %379 = vector.load %arg4[%c0_136, %c0_137] : memref<32x128xf32, #tpu.memory_space<vmem>>, vector<32x128xf32>
    %cst_138 = arith.constant dense<0.000000e+00> : vector<2x128xf32>
    %380 = tpu.matmul %378, %379, %cst_138 {dimension_numbers = #tpu.dot_dimension_numbers<[1], [0], [0], [1], [0, 0, 1, 1], [], []>} : vector<2x32xf32>, vector<32x128xf32>, vector<2x128xf32> -> vector<2x128xf32>
    %c0_139 = arith.constant 0 : index
    %c0_140 = arith.constant 0 : index
    %381 = vector.load %arg5[%c0_139, %c0_140] : memref<32x128xf32, #tpu.memory_space<vmem>>, vector<32x128xf32>
    %cst_141 = arith.constant dense<0.000000e+00> : vector<2x128xf32>
    %382 = tpu.matmul %343, %381, %cst_141 {dimension_numbers = #tpu.dot_dimension_numbers<[1], [0], [0], [1], [0, 0, 1, 1], [], []>} : vector<2x32xf32>, vector<32x128xf32>, vector<2x128xf32> -> vector<2x128xf32>
    %383 = arith.addf %380, %382 : vector<2x128xf32>
    %c0_142 = arith.constant 0 : index
    %c0_143 = arith.constant 0 : index
    %384 = vector.load %arg6[%c0_142, %c0_143] : memref<1x128xf32, #tpu.memory_space<vmem>>, vector<1x128xf32>
    %385 = vector.broadcast %384 : vector<1x128xf32> to vector<2x128xf32>
    %386 = arith.addf %383, %385 : vector<2x128xf32>
    %387 = vector.extract_strided_slice %386 {offsets = [0, 0], sizes = [2, 32], strides = [1, 1]} : vector<2x128xf32> to vector<2x32xf32>
    %388 = arith.negf %387 : vector<2x32xf32>
    %389 = math.exp %388 : vector<2x32xf32>
    %cst_144 = arith.constant 1.000000e+00 : f32
    %390 = vector.broadcast %cst_144 : f32 to vector<2x32xf32>
    %391 = arith.addf %390, %389 : vector<2x32xf32>
    %392 = arith.divf %390, %391 : vector<2x32xf32>
    %393 = vector.extract_strided_slice %386 {offsets = [0, 32], sizes = [2, 32], strides = [1, 1]} : vector<2x128xf32> to vector<2x32xf32>
    %394 = arith.negf %393 : vector<2x32xf32>
    %395 = math.exp %394 : vector<2x32xf32>
    %cst_145 = arith.constant 1.000000e+00 : f32
    %396 = vector.broadcast %cst_145 : f32 to vector<2x32xf32>
    %397 = arith.addf %396, %395 : vector<2x32xf32>
    %398 = arith.divf %396, %397 : vector<2x32xf32>
    %399 = vector.extract_strided_slice %386 {offsets = [0, 64], sizes = [2, 32], strides = [1, 1]} : vector<2x128xf32> to vector<2x32xf32>
    %400 = math.tanh %399 : vector<2x32xf32>
    %401 = vector.extract_strided_slice %386 {offsets = [0, 96], sizes = [2, 32], strides = [1, 1]} : vector<2x128xf32> to vector<2x32xf32>
    %402 = arith.negf %401 : vector<2x32xf32>
    %403 = math.exp %402 : vector<2x32xf32>
    %cst_146 = arith.constant 1.000000e+00 : f32
    %404 = vector.broadcast %cst_146 : f32 to vector<2x32xf32>
    %405 = arith.addf %404, %403 : vector<2x32xf32>
    %406 = arith.divf %404, %405 : vector<2x32xf32>
    %407 = arith.mulf %398, %341 : vector<2x32xf32>
    %408 = arith.mulf %392, %400 : vector<2x32xf32>
    %409 = arith.addf %407, %408 : vector<2x32xf32>
    %410 = math.tanh %409 : vector<2x32xf32>
    %411 = arith.mulf %406, %410 : vector<2x32xf32>
    %c6 = arith.constant 6 : index
    %c0_147 = arith.constant 0 : index
    %c0_148 = arith.constant 0 : index
    %412 = vector.load %arg0[%c6, %c0_147, %c0_148] : memref<8x2x4xf32, #tpu.memory_space<vmem>>, vector<1x2x4xf32>
    %413 = vector.shape_cast %412 : vector<1x2x4xf32> to vector<2x4xf32>
    %c0_149 = arith.constant 0 : index
    %c0_150 = arith.constant 0 : index
    %414 = vector.load %arg1[%c0_149, %c0_150] : memref<4x128xf32, #tpu.memory_space<vmem>>, vector<4x128xf32>
    %cst_151 = arith.constant dense<0.000000e+00> : vector<2x128xf32>
    %415 = tpu.matmul %413, %414, %cst_151 {dimension_numbers = #tpu.dot_dimension_numbers<[1], [0], [0], [1], [0, 0, 1, 1], [], []>} : vector<2x4xf32>, vector<4x128xf32>, vector<2x128xf32> -> vector<2x128xf32>
    %c0_152 = arith.constant 0 : index
    %c0_153 = arith.constant 0 : index
    %416 = vector.load %arg2[%c0_152, %c0_153] : memref<32x128xf32, #tpu.memory_space<vmem>>, vector<32x128xf32>
    %cst_154 = arith.constant dense<0.000000e+00> : vector<2x128xf32>
    %417 = tpu.matmul %378, %416, %cst_154 {dimension_numbers = #tpu.dot_dimension_numbers<[1], [0], [0], [1], [0, 0, 1, 1], [], []>} : vector<2x32xf32>, vector<32x128xf32>, vector<2x128xf32> -> vector<2x128xf32>
    %418 = arith.addf %415, %417 : vector<2x128xf32>
    %c0_155 = arith.constant 0 : index
    %c0_156 = arith.constant 0 : index
    %419 = vector.load %arg3[%c0_155, %c0_156] : memref<1x128xf32, #tpu.memory_space<vmem>>, vector<1x128xf32>
    %420 = vector.broadcast %419 : vector<1x128xf32> to vector<2x128xf32>
    %421 = arith.addf %418, %420 : vector<2x128xf32>
    %422 = vector.extract_strided_slice %421 {offsets = [0, 0], sizes = [2, 32], strides = [1, 1]} : vector<2x128xf32> to vector<2x32xf32>
    %423 = arith.negf %422 : vector<2x32xf32>
    %424 = math.exp %423 : vector<2x32xf32>
    %cst_157 = arith.constant 1.000000e+00 : f32
    %425 = vector.broadcast %cst_157 : f32 to vector<2x32xf32>
    %426 = arith.addf %425, %424 : vector<2x32xf32>
    %427 = arith.divf %425, %426 : vector<2x32xf32>
    %428 = vector.extract_strided_slice %421 {offsets = [0, 32], sizes = [2, 32], strides = [1, 1]} : vector<2x128xf32> to vector<2x32xf32>
    %429 = arith.negf %428 : vector<2x32xf32>
    %430 = math.exp %429 : vector<2x32xf32>
    %cst_158 = arith.constant 1.000000e+00 : f32
    %431 = vector.broadcast %cst_158 : f32 to vector<2x32xf32>
    %432 = arith.addf %431, %430 : vector<2x32xf32>
    %433 = arith.divf %431, %432 : vector<2x32xf32>
    %434 = vector.extract_strided_slice %421 {offsets = [0, 64], sizes = [2, 32], strides = [1, 1]} : vector<2x128xf32> to vector<2x32xf32>
    %435 = math.tanh %434 : vector<2x32xf32>
    %436 = vector.extract_strided_slice %421 {offsets = [0, 96], sizes = [2, 32], strides = [1, 1]} : vector<2x128xf32> to vector<2x32xf32>
    %437 = arith.negf %436 : vector<2x32xf32>
    %438 = math.exp %437 : vector<2x32xf32>
    %cst_159 = arith.constant 1.000000e+00 : f32
    %439 = vector.broadcast %cst_159 : f32 to vector<2x32xf32>
    %440 = arith.addf %439, %438 : vector<2x32xf32>
    %441 = arith.divf %439, %440 : vector<2x32xf32>
    %442 = arith.mulf %433, %376 : vector<2x32xf32>
    %443 = arith.mulf %427, %435 : vector<2x32xf32>
    %444 = arith.addf %442, %443 : vector<2x32xf32>
    %445 = math.tanh %444 : vector<2x32xf32>
    %446 = arith.mulf %441, %445 : vector<2x32xf32>
    %c0_160 = arith.constant 0 : index
    %c0_161 = arith.constant 0 : index
    %447 = vector.load %arg4[%c0_160, %c0_161] : memref<32x128xf32, #tpu.memory_space<vmem>>, vector<32x128xf32>
    %cst_162 = arith.constant dense<0.000000e+00> : vector<2x128xf32>
    %448 = tpu.matmul %446, %447, %cst_162 {dimension_numbers = #tpu.dot_dimension_numbers<[1], [0], [0], [1], [0, 0, 1, 1], [], []>} : vector<2x32xf32>, vector<32x128xf32>, vector<2x128xf32> -> vector<2x128xf32>
    %c0_163 = arith.constant 0 : index
    %c0_164 = arith.constant 0 : index
    %449 = vector.load %arg5[%c0_163, %c0_164] : memref<32x128xf32, #tpu.memory_space<vmem>>, vector<32x128xf32>
    %cst_165 = arith.constant dense<0.000000e+00> : vector<2x128xf32>
    %450 = tpu.matmul %411, %449, %cst_165 {dimension_numbers = #tpu.dot_dimension_numbers<[1], [0], [0], [1], [0, 0, 1, 1], [], []>} : vector<2x32xf32>, vector<32x128xf32>, vector<2x128xf32> -> vector<2x128xf32>
    %451 = arith.addf %448, %450 : vector<2x128xf32>
    %c0_166 = arith.constant 0 : index
    %c0_167 = arith.constant 0 : index
    %452 = vector.load %arg6[%c0_166, %c0_167] : memref<1x128xf32, #tpu.memory_space<vmem>>, vector<1x128xf32>
    %453 = vector.broadcast %452 : vector<1x128xf32> to vector<2x128xf32>
    %454 = arith.addf %451, %453 : vector<2x128xf32>
    %455 = vector.extract_strided_slice %454 {offsets = [0, 0], sizes = [2, 32], strides = [1, 1]} : vector<2x128xf32> to vector<2x32xf32>
    %456 = arith.negf %455 : vector<2x32xf32>
    %457 = math.exp %456 : vector<2x32xf32>
    %cst_168 = arith.constant 1.000000e+00 : f32
    %458 = vector.broadcast %cst_168 : f32 to vector<2x32xf32>
    %459 = arith.addf %458, %457 : vector<2x32xf32>
    %460 = arith.divf %458, %459 : vector<2x32xf32>
    %461 = vector.extract_strided_slice %454 {offsets = [0, 32], sizes = [2, 32], strides = [1, 1]} : vector<2x128xf32> to vector<2x32xf32>
    %462 = arith.negf %461 : vector<2x32xf32>
    %463 = math.exp %462 : vector<2x32xf32>
    %cst_169 = arith.constant 1.000000e+00 : f32
    %464 = vector.broadcast %cst_169 : f32 to vector<2x32xf32>
    %465 = arith.addf %464, %463 : vector<2x32xf32>
    %466 = arith.divf %464, %465 : vector<2x32xf32>
    %467 = vector.extract_strided_slice %454 {offsets = [0, 64], sizes = [2, 32], strides = [1, 1]} : vector<2x128xf32> to vector<2x32xf32>
    %468 = math.tanh %467 : vector<2x32xf32>
    %469 = vector.extract_strided_slice %454 {offsets = [0, 96], sizes = [2, 32], strides = [1, 1]} : vector<2x128xf32> to vector<2x32xf32>
    %470 = arith.negf %469 : vector<2x32xf32>
    %471 = math.exp %470 : vector<2x32xf32>
    %cst_170 = arith.constant 1.000000e+00 : f32
    %472 = vector.broadcast %cst_170 : f32 to vector<2x32xf32>
    %473 = arith.addf %472, %471 : vector<2x32xf32>
    %474 = arith.divf %472, %473 : vector<2x32xf32>
    %475 = arith.mulf %466, %409 : vector<2x32xf32>
    %476 = arith.mulf %460, %468 : vector<2x32xf32>
    %477 = arith.addf %475, %476 : vector<2x32xf32>
    %478 = math.tanh %477 : vector<2x32xf32>
    %479 = arith.mulf %474, %478 : vector<2x32xf32>
    %c7 = arith.constant 7 : index
    %c0_171 = arith.constant 0 : index
    %c0_172 = arith.constant 0 : index
    %480 = vector.load %arg0[%c7, %c0_171, %c0_172] : memref<8x2x4xf32, #tpu.memory_space<vmem>>, vector<1x2x4xf32>
    %481 = vector.shape_cast %480 : vector<1x2x4xf32> to vector<2x4xf32>
    %c0_173 = arith.constant 0 : index
    %c0_174 = arith.constant 0 : index
    %482 = vector.load %arg1[%c0_173, %c0_174] : memref<4x128xf32, #tpu.memory_space<vmem>>, vector<4x128xf32>
    %cst_175 = arith.constant dense<0.000000e+00> : vector<2x128xf32>
    %483 = tpu.matmul %481, %482, %cst_175 {dimension_numbers = #tpu.dot_dimension_numbers<[1], [0], [0], [1], [0, 0, 1, 1], [], []>} : vector<2x4xf32>, vector<4x128xf32>, vector<2x128xf32> -> vector<2x128xf32>
    %c0_176 = arith.constant 0 : index
    %c0_177 = arith.constant 0 : index
    %484 = vector.load %arg2[%c0_176, %c0_177] : memref<32x128xf32, #tpu.memory_space<vmem>>, vector<32x128xf32>
    %cst_178 = arith.constant dense<0.000000e+00> : vector<2x128xf32>
    %485 = tpu.matmul %446, %484, %cst_178 {dimension_numbers = #tpu.dot_dimension_numbers<[1], [0], [0], [1], [0, 0, 1, 1], [], []>} : vector<2x32xf32>, vector<32x128xf32>, vector<2x128xf32> -> vector<2x128xf32>
    %486 = arith.addf %483, %485 : vector<2x128xf32>
    %c0_179 = arith.constant 0 : index
    %c0_180 = arith.constant 0 : index
    %487 = vector.load %arg3[%c0_179, %c0_180] : memref<1x128xf32, #tpu.memory_space<vmem>>, vector<1x128xf32>
    %488 = vector.broadcast %487 : vector<1x128xf32> to vector<2x128xf32>
    %489 = arith.addf %486, %488 : vector<2x128xf32>
    %490 = vector.extract_strided_slice %489 {offsets = [0, 0], sizes = [2, 32], strides = [1, 1]} : vector<2x128xf32> to vector<2x32xf32>
    %491 = arith.negf %490 : vector<2x32xf32>
    %492 = math.exp %491 : vector<2x32xf32>
    %cst_181 = arith.constant 1.000000e+00 : f32
    %493 = vector.broadcast %cst_181 : f32 to vector<2x32xf32>
    %494 = arith.addf %493, %492 : vector<2x32xf32>
    %495 = arith.divf %493, %494 : vector<2x32xf32>
    %496 = vector.extract_strided_slice %489 {offsets = [0, 32], sizes = [2, 32], strides = [1, 1]} : vector<2x128xf32> to vector<2x32xf32>
    %497 = arith.negf %496 : vector<2x32xf32>
    %498 = math.exp %497 : vector<2x32xf32>
    %cst_182 = arith.constant 1.000000e+00 : f32
    %499 = vector.broadcast %cst_182 : f32 to vector<2x32xf32>
    %500 = arith.addf %499, %498 : vector<2x32xf32>
    %501 = arith.divf %499, %500 : vector<2x32xf32>
    %502 = vector.extract_strided_slice %489 {offsets = [0, 64], sizes = [2, 32], strides = [1, 1]} : vector<2x128xf32> to vector<2x32xf32>
    %503 = math.tanh %502 : vector<2x32xf32>
    %504 = vector.extract_strided_slice %489 {offsets = [0, 96], sizes = [2, 32], strides = [1, 1]} : vector<2x128xf32> to vector<2x32xf32>
    %505 = arith.negf %504 : vector<2x32xf32>
    %506 = math.exp %505 : vector<2x32xf32>
    %cst_183 = arith.constant 1.000000e+00 : f32
    %507 = vector.broadcast %cst_183 : f32 to vector<2x32xf32>
    %508 = arith.addf %507, %506 : vector<2x32xf32>
    %509 = arith.divf %507, %508 : vector<2x32xf32>
    %510 = arith.mulf %501, %444 : vector<2x32xf32>
    %511 = arith.mulf %495, %503 : vector<2x32xf32>
    %512 = arith.addf %510, %511 : vector<2x32xf32>
    %513 = math.tanh %512 : vector<2x32xf32>
    %514 = arith.mulf %509, %513 : vector<2x32xf32>
    %c0_184 = arith.constant 0 : index
    %c0_185 = arith.constant 0 : index
    %515 = vector.load %arg4[%c0_184, %c0_185] : memref<32x128xf32, #tpu.memory_space<vmem>>, vector<32x128xf32>
    %cst_186 = arith.constant dense<0.000000e+00> : vector<2x128xf32>
    %516 = tpu.matmul %514, %515, %cst_186 {dimension_numbers = #tpu.dot_dimension_numbers<[1], [0], [0], [1], [0, 0, 1, 1], [], []>} : vector<2x32xf32>, vector<32x128xf32>, vector<2x128xf32> -> vector<2x128xf32>
    %c0_187 = arith.constant 0 : index
    %c0_188 = arith.constant 0 : index
    %517 = vector.load %arg5[%c0_187, %c0_188] : memref<32x128xf32, #tpu.memory_space<vmem>>, vector<32x128xf32>
    %cst_189 = arith.constant dense<0.000000e+00> : vector<2x128xf32>
    %518 = tpu.matmul %479, %517, %cst_189 {dimension_numbers = #tpu.dot_dimension_numbers<[1], [0], [0], [1], [0, 0, 1, 1], [], []>} : vector<2x32xf32>, vector<32x128xf32>, vector<2x128xf32> -> vector<2x128xf32>
    %519 = arith.addf %516, %518 : vector<2x128xf32>
    %c0_190 = arith.constant 0 : index
    %c0_191 = arith.constant 0 : index
    %520 = vector.load %arg6[%c0_190, %c0_191] : memref<1x128xf32, #tpu.memory_space<vmem>>, vector<1x128xf32>
    %521 = vector.broadcast %520 : vector<1x128xf32> to vector<2x128xf32>
    %522 = arith.addf %519, %521 : vector<2x128xf32>
    %523 = vector.extract_strided_slice %522 {offsets = [0, 0], sizes = [2, 32], strides = [1, 1]} : vector<2x128xf32> to vector<2x32xf32>
    %524 = arith.negf %523 : vector<2x32xf32>
    %525 = math.exp %524 : vector<2x32xf32>
    %cst_192 = arith.constant 1.000000e+00 : f32
    %526 = vector.broadcast %cst_192 : f32 to vector<2x32xf32>
    %527 = arith.addf %526, %525 : vector<2x32xf32>
    %528 = arith.divf %526, %527 : vector<2x32xf32>
    %529 = vector.extract_strided_slice %522 {offsets = [0, 32], sizes = [2, 32], strides = [1, 1]} : vector<2x128xf32> to vector<2x32xf32>
    %530 = arith.negf %529 : vector<2x32xf32>
    %531 = math.exp %530 : vector<2x32xf32>
    %cst_193 = arith.constant 1.000000e+00 : f32
    %532 = vector.broadcast %cst_193 : f32 to vector<2x32xf32>
    %533 = arith.addf %532, %531 : vector<2x32xf32>
    %534 = arith.divf %532, %533 : vector<2x32xf32>
    %535 = vector.extract_strided_slice %522 {offsets = [0, 64], sizes = [2, 32], strides = [1, 1]} : vector<2x128xf32> to vector<2x32xf32>
    %536 = math.tanh %535 : vector<2x32xf32>
    %537 = vector.extract_strided_slice %522 {offsets = [0, 96], sizes = [2, 32], strides = [1, 1]} : vector<2x128xf32> to vector<2x32xf32>
    %538 = arith.negf %537 : vector<2x32xf32>
    %539 = math.exp %538 : vector<2x32xf32>
    %cst_194 = arith.constant 1.000000e+00 : f32
    %540 = vector.broadcast %cst_194 : f32 to vector<2x32xf32>
    %541 = arith.addf %540, %539 : vector<2x32xf32>
    %542 = arith.divf %540, %541 : vector<2x32xf32>
    %543 = arith.mulf %534, %477 : vector<2x32xf32>
    %544 = arith.mulf %528, %536 : vector<2x32xf32>
    %545 = arith.addf %543, %544 : vector<2x32xf32>
    %546 = math.tanh %545 : vector<2x32xf32>
    %547 = arith.mulf %542, %546 : vector<2x32xf32>
    %548 = tpu.iota {dimensions = array<i32: 1>} : vector<2x5xi32>
    %cst_195 = arith.constant 0.000000e+00 : f32
    %549 = vector.broadcast %cst_195 : f32 to vector<2x5xf32>
    %cst_196 = arith.constant 0.000000e+00 : f32
    %550 = vector.broadcast %cst_196 : f32 to vector<2x32xf32>
    %c0_197 = arith.constant 0 : index
    %c0_198 = arith.constant 0 : index
    %551 = vector.load %arg7[%c0_197, %c0_198] : memref<32x128xf32, #tpu.memory_space<vmem>>, vector<32x128xf32>
    %cst_199 = arith.constant dense<0.000000e+00> : vector<2x128xf32>
    %552 = tpu.matmul %550, %551, %cst_199 {dimension_numbers = #tpu.dot_dimension_numbers<[1], [0], [0], [1], [0, 0, 1, 1], [], []>} : vector<2x32xf32>, vector<32x128xf32>, vector<2x128xf32> -> vector<2x128xf32>
    %c0_200 = arith.constant 0 : index
    %c0_201 = arith.constant 0 : index
    %553 = vector.load %arg8[%c0_200, %c0_201] : memref<32x128xf32, #tpu.memory_space<vmem>>, vector<32x128xf32>
    %cst_202 = arith.constant dense<0.000000e+00> : vector<2x128xf32>
    %554 = tpu.matmul %514, %553, %cst_202 {dimension_numbers = #tpu.dot_dimension_numbers<[1], [0], [0], [1], [0, 0, 1, 1], [], []>} : vector<2x32xf32>, vector<32x128xf32>, vector<2x128xf32> -> vector<2x128xf32>
    %555 = arith.addf %552, %554 : vector<2x128xf32>
    %c0_203 = arith.constant 0 : index
    %c0_204 = arith.constant 0 : index
    %556 = vector.load %arg9[%c0_203, %c0_204] : memref<1x128xf32, #tpu.memory_space<vmem>>, vector<1x128xf32>
    %557 = vector.broadcast %556 : vector<1x128xf32> to vector<2x128xf32>
    %558 = arith.addf %555, %557 : vector<2x128xf32>
    %559 = vector.extract_strided_slice %558 {offsets = [0, 0], sizes = [2, 32], strides = [1, 1]} : vector<2x128xf32> to vector<2x32xf32>
    %560 = arith.negf %559 : vector<2x32xf32>
    %561 = math.exp %560 : vector<2x32xf32>
    %cst_205 = arith.constant 1.000000e+00 : f32
    %562 = vector.broadcast %cst_205 : f32 to vector<2x32xf32>
    %563 = arith.addf %562, %561 : vector<2x32xf32>
    %564 = arith.divf %562, %563 : vector<2x32xf32>
    %565 = vector.extract_strided_slice %558 {offsets = [0, 32], sizes = [2, 32], strides = [1, 1]} : vector<2x128xf32> to vector<2x32xf32>
    %566 = arith.negf %565 : vector<2x32xf32>
    %567 = math.exp %566 : vector<2x32xf32>
    %cst_206 = arith.constant 1.000000e+00 : f32
    %568 = vector.broadcast %cst_206 : f32 to vector<2x32xf32>
    %569 = arith.addf %568, %567 : vector<2x32xf32>
    %570 = arith.divf %568, %569 : vector<2x32xf32>
    %571 = vector.extract_strided_slice %558 {offsets = [0, 64], sizes = [2, 32], strides = [1, 1]} : vector<2x128xf32> to vector<2x32xf32>
    %572 = math.tanh %571 : vector<2x32xf32>
    %573 = vector.extract_strided_slice %558 {offsets = [0, 96], sizes = [2, 32], strides = [1, 1]} : vector<2x128xf32> to vector<2x32xf32>
    %574 = arith.negf %573 : vector<2x32xf32>
    %575 = math.exp %574 : vector<2x32xf32>
    %cst_207 = arith.constant 1.000000e+00 : f32
    %576 = vector.broadcast %cst_207 : f32 to vector<2x32xf32>
    %577 = arith.addf %576, %575 : vector<2x32xf32>
    %578 = arith.divf %576, %577 : vector<2x32xf32>
    %579 = arith.mulf %570, %512 : vector<2x32xf32>
    %580 = arith.mulf %564, %572 : vector<2x32xf32>
    %581 = arith.addf %579, %580 : vector<2x32xf32>
    %582 = math.tanh %581 : vector<2x32xf32>
    %583 = arith.mulf %578, %582 : vector<2x32xf32>
    %c0_208 = arith.constant 0 : index
    %c0_209 = arith.constant 0 : index
    %584 = vector.load %arg10[%c0_208, %c0_209] : memref<32x128xf32, #tpu.memory_space<vmem>>, vector<32x128xf32>
    %cst_210 = arith.constant dense<0.000000e+00> : vector<2x128xf32>
    %585 = tpu.matmul %583, %584, %cst_210 {dimension_numbers = #tpu.dot_dimension_numbers<[1], [0], [0], [1], [0, 0, 1, 1], [], []>} : vector<2x32xf32>, vector<32x128xf32>, vector<2x128xf32> -> vector<2x128xf32>
    %c0_211 = arith.constant 0 : index
    %c0_212 = arith.constant 0 : index
    %586 = vector.load %arg11[%c0_211, %c0_212] : memref<32x128xf32, #tpu.memory_space<vmem>>, vector<32x128xf32>
    %cst_213 = arith.constant dense<0.000000e+00> : vector<2x128xf32>
    %587 = tpu.matmul %547, %586, %cst_213 {dimension_numbers = #tpu.dot_dimension_numbers<[1], [0], [0], [1], [0, 0, 1, 1], [], []>} : vector<2x32xf32>, vector<32x128xf32>, vector<2x128xf32> -> vector<2x128xf32>
    %588 = arith.addf %585, %587 : vector<2x128xf32>
    %c0_214 = arith.constant 0 : index
    %c0_215 = arith.constant 0 : index
    %589 = vector.load %arg12[%c0_214, %c0_215] : memref<1x128xf32, #tpu.memory_space<vmem>>, vector<1x128xf32>
    %590 = vector.broadcast %589 : vector<1x128xf32> to vector<2x128xf32>
    %591 = arith.addf %588, %590 : vector<2x128xf32>
    %592 = vector.extract_strided_slice %591 {offsets = [0, 0], sizes = [2, 32], strides = [1, 1]} : vector<2x128xf32> to vector<2x32xf32>
    %593 = arith.negf %592 : vector<2x32xf32>
    %594 = math.exp %593 : vector<2x32xf32>
    %cst_216 = arith.constant 1.000000e+00 : f32
    %595 = vector.broadcast %cst_216 : f32 to vector<2x32xf32>
    %596 = arith.addf %595, %594 : vector<2x32xf32>
    %597 = arith.divf %595, %596 : vector<2x32xf32>
    %598 = vector.extract_strided_slice %591 {offsets = [0, 32], sizes = [2, 32], strides = [1, 1]} : vector<2x128xf32> to vector<2x32xf32>
    %599 = arith.negf %598 : vector<2x32xf32>
    %600 = math.exp %599 : vector<2x32xf32>
    %cst_217 = arith.constant 1.000000e+00 : f32
    %601 = vector.broadcast %cst_217 : f32 to vector<2x32xf32>
    %602 = arith.addf %601, %600 : vector<2x32xf32>
    %603 = arith.divf %601, %602 : vector<2x32xf32>
    %604 = vector.extract_strided_slice %591 {offsets = [0, 64], sizes = [2, 32], strides = [1, 1]} : vector<2x128xf32> to vector<2x32xf32>
    %605 = math.tanh %604 : vector<2x32xf32>
    %606 = vector.extract_strided_slice %591 {offsets = [0, 96], sizes = [2, 32], strides = [1, 1]} : vector<2x128xf32> to vector<2x32xf32>
    %607 = arith.negf %606 : vector<2x32xf32>
    %608 = math.exp %607 : vector<2x32xf32>
    %cst_218 = arith.constant 1.000000e+00 : f32
    %609 = vector.broadcast %cst_218 : f32 to vector<2x32xf32>
    %610 = arith.addf %609, %608 : vector<2x32xf32>
    %611 = arith.divf %609, %610 : vector<2x32xf32>
    %612 = arith.mulf %603, %545 : vector<2x32xf32>
    %613 = arith.mulf %597, %605 : vector<2x32xf32>
    %614 = arith.addf %612, %613 : vector<2x32xf32>
    %615 = math.tanh %614 : vector<2x32xf32>
    %616 = arith.mulf %611, %615 : vector<2x32xf32>
    %c0_219 = arith.constant 0 : index
    %c0_220 = arith.constant 0 : index
    %617 = vector.load %arg13[%c0_219, %c0_220] : memref<1x32xf32, #tpu.memory_space<vmem>>, vector<1x32xf32>
    %618 = vector.broadcast %617 : vector<1x32xf32> to vector<2x32xf32>
    %619 = arith.mulf %616, %618 : vector<2x32xf32>
    %cst_221 = arith.constant dense<0.000000e+00> : vector<2xf32>
    %620 = vector.multi_reduction <add>, %619, %cst_221 [1] : vector<2x32xf32> to vector<2xf32>
    %621 = vector.shape_cast %620 : vector<2xf32> to vector<2x1xf32>
    %c0_222 = arith.constant 0 : index
    %c0_223 = arith.constant 0 : index
    %622 = vector.load %arg14[%c0_222, %c0_223] : memref<1x1xf32, #tpu.memory_space<vmem>>, vector<1x1xf32>
    %623 = vector.broadcast %622 : vector<1x1xf32> to vector<2x1xf32>
    %624 = arith.addf %621, %623 : vector<2x1xf32>
    %c0_i32 = arith.constant 0 : i32
    %625 = vector.broadcast %c0_i32 : i32 to vector<2x5xi32>
    %626 = arith.cmpi eq, %548, %625 : vector<2x5xi32>
    %cst_224 = arith.constant 0.000000e+00 : f32
    %627 = vector.shape_cast %624 : vector<2x1xf32> to vector<2x1xf32>
    %628 = vector.broadcast %627 : vector<2x1xf32> to vector<2x5xf32>
    %629 = vector.broadcast %cst_224 : f32 to vector<2x5xf32>
    %630 = arith.select %626, %628, %629 : vector<2x5xi1>, vector<2x5xf32>
    %631 = arith.addf %549, %630 : vector<2x5xf32>
    %c0_225 = arith.constant 0 : index
    %c0_226 = arith.constant 0 : index
    %632 = vector.load %arg7[%c0_225, %c0_226] : memref<32x128xf32, #tpu.memory_space<vmem>>, vector<32x128xf32>
    %cst_227 = arith.constant dense<0.000000e+00> : vector<2x128xf32>
    %633 = tpu.matmul %616, %632, %cst_227 {dimension_numbers = #tpu.dot_dimension_numbers<[1], [0], [0], [1], [0, 0, 1, 1], [], []>} : vector<2x32xf32>, vector<32x128xf32>, vector<2x128xf32> -> vector<2x128xf32>
    %c0_228 = arith.constant 0 : index
    %c0_229 = arith.constant 0 : index
    %634 = vector.load %arg8[%c0_228, %c0_229] : memref<32x128xf32, #tpu.memory_space<vmem>>, vector<32x128xf32>
    %cst_230 = arith.constant dense<0.000000e+00> : vector<2x128xf32>
    %635 = tpu.matmul %583, %634, %cst_230 {dimension_numbers = #tpu.dot_dimension_numbers<[1], [0], [0], [1], [0, 0, 1, 1], [], []>} : vector<2x32xf32>, vector<32x128xf32>, vector<2x128xf32> -> vector<2x128xf32>
    %636 = arith.addf %633, %635 : vector<2x128xf32>
    %c0_231 = arith.constant 0 : index
    %c0_232 = arith.constant 0 : index
    %637 = vector.load %arg9[%c0_231, %c0_232] : memref<1x128xf32, #tpu.memory_space<vmem>>, vector<1x128xf32>
    %638 = vector.broadcast %637 : vector<1x128xf32> to vector<2x128xf32>
    %639 = arith.addf %636, %638 : vector<2x128xf32>
    %640 = vector.extract_strided_slice %639 {offsets = [0, 0], sizes = [2, 32], strides = [1, 1]} : vector<2x128xf32> to vector<2x32xf32>
    %641 = arith.negf %640 : vector<2x32xf32>
    %642 = math.exp %641 : vector<2x32xf32>
    %cst_233 = arith.constant 1.000000e+00 : f32
    %643 = vector.broadcast %cst_233 : f32 to vector<2x32xf32>
    %644 = arith.addf %643, %642 : vector<2x32xf32>
    %645 = arith.divf %643, %644 : vector<2x32xf32>
    %646 = vector.extract_strided_slice %639 {offsets = [0, 32], sizes = [2, 32], strides = [1, 1]} : vector<2x128xf32> to vector<2x32xf32>
    %647 = arith.negf %646 : vector<2x32xf32>
    %648 = math.exp %647 : vector<2x32xf32>
    %cst_234 = arith.constant 1.000000e+00 : f32
    %649 = vector.broadcast %cst_234 : f32 to vector<2x32xf32>
    %650 = arith.addf %649, %648 : vector<2x32xf32>
    %651 = arith.divf %649, %650 : vector<2x32xf32>
    %652 = vector.extract_strided_slice %639 {offsets = [0, 64], sizes = [2, 32], strides = [1, 1]} : vector<2x128xf32> to vector<2x32xf32>
    %653 = math.tanh %652 : vector<2x32xf32>
    %654 = vector.extract_strided_slice %639 {offsets = [0, 96], sizes = [2, 32], strides = [1, 1]} : vector<2x128xf32> to vector<2x32xf32>
    %655 = arith.negf %654 : vector<2x32xf32>
    %656 = math.exp %655 : vector<2x32xf32>
    %cst_235 = arith.constant 1.000000e+00 : f32
    %657 = vector.broadcast %cst_235 : f32 to vector<2x32xf32>
    %658 = arith.addf %657, %656 : vector<2x32xf32>
    %659 = arith.divf %657, %658 : vector<2x32xf32>
    %660 = arith.mulf %651, %581 : vector<2x32xf32>
    %661 = arith.mulf %645, %653 : vector<2x32xf32>
    %662 = arith.addf %660, %661 : vector<2x32xf32>
    %663 = math.tanh %662 : vector<2x32xf32>
    %664 = arith.mulf %659, %663 : vector<2x32xf32>
    %c0_236 = arith.constant 0 : index
    %c0_237 = arith.constant 0 : index
    %665 = vector.load %arg10[%c0_236, %c0_237] : memref<32x128xf32, #tpu.memory_space<vmem>>, vector<32x128xf32>
    %cst_238 = arith.constant dense<0.000000e+00> : vector<2x128xf32>
    %666 = tpu.matmul %664, %665, %cst_238 {dimension_numbers = #tpu.dot_dimension_numbers<[1], [0], [0], [1], [0, 0, 1, 1], [], []>} : vector<2x32xf32>, vector<32x128xf32>, vector<2x128xf32> -> vector<2x128xf32>
    %c0_239 = arith.constant 0 : index
    %c0_240 = arith.constant 0 : index
    %667 = vector.load %arg11[%c0_239, %c0_240] : memref<32x128xf32, #tpu.memory_space<vmem>>, vector<32x128xf32>
    %cst_241 = arith.constant dense<0.000000e+00> : vector<2x128xf32>
    %668 = tpu.matmul %616, %667, %cst_241 {dimension_numbers = #tpu.dot_dimension_numbers<[1], [0], [0], [1], [0, 0, 1, 1], [], []>} : vector<2x32xf32>, vector<32x128xf32>, vector<2x128xf32> -> vector<2x128xf32>
    %669 = arith.addf %666, %668 : vector<2x128xf32>
    %c0_242 = arith.constant 0 : index
    %c0_243 = arith.constant 0 : index
    %670 = vector.load %arg12[%c0_242, %c0_243] : memref<1x128xf32, #tpu.memory_space<vmem>>, vector<1x128xf32>
    %671 = vector.broadcast %670 : vector<1x128xf32> to vector<2x128xf32>
    %672 = arith.addf %669, %671 : vector<2x128xf32>
    %673 = vector.extract_strided_slice %672 {offsets = [0, 0], sizes = [2, 32], strides = [1, 1]} : vector<2x128xf32> to vector<2x32xf32>
    %674 = arith.negf %673 : vector<2x32xf32>
    %675 = math.exp %674 : vector<2x32xf32>
    %cst_244 = arith.constant 1.000000e+00 : f32
    %676 = vector.broadcast %cst_244 : f32 to vector<2x32xf32>
    %677 = arith.addf %676, %675 : vector<2x32xf32>
    %678 = arith.divf %676, %677 : vector<2x32xf32>
    %679 = vector.extract_strided_slice %672 {offsets = [0, 32], sizes = [2, 32], strides = [1, 1]} : vector<2x128xf32> to vector<2x32xf32>
    %680 = arith.negf %679 : vector<2x32xf32>
    %681 = math.exp %680 : vector<2x32xf32>
    %cst_245 = arith.constant 1.000000e+00 : f32
    %682 = vector.broadcast %cst_245 : f32 to vector<2x32xf32>
    %683 = arith.addf %682, %681 : vector<2x32xf32>
    %684 = arith.divf %682, %683 : vector<2x32xf32>
    %685 = vector.extract_strided_slice %672 {offsets = [0, 64], sizes = [2, 32], strides = [1, 1]} : vector<2x128xf32> to vector<2x32xf32>
    %686 = math.tanh %685 : vector<2x32xf32>
    %687 = vector.extract_strided_slice %672 {offsets = [0, 96], sizes = [2, 32], strides = [1, 1]} : vector<2x128xf32> to vector<2x32xf32>
    %688 = arith.negf %687 : vector<2x32xf32>
    %689 = math.exp %688 : vector<2x32xf32>
    %cst_246 = arith.constant 1.000000e+00 : f32
    %690 = vector.broadcast %cst_246 : f32 to vector<2x32xf32>
    %691 = arith.addf %690, %689 : vector<2x32xf32>
    %692 = arith.divf %690, %691 : vector<2x32xf32>
    %693 = arith.mulf %684, %614 : vector<2x32xf32>
    %694 = arith.mulf %678, %686 : vector<2x32xf32>
    %695 = arith.addf %693, %694 : vector<2x32xf32>
    %696 = math.tanh %695 : vector<2x32xf32>
    %697 = arith.mulf %692, %696 : vector<2x32xf32>
    %c0_247 = arith.constant 0 : index
    %c0_248 = arith.constant 0 : index
    %698 = vector.load %arg13[%c0_247, %c0_248] : memref<1x32xf32, #tpu.memory_space<vmem>>, vector<1x32xf32>
    %699 = vector.broadcast %698 : vector<1x32xf32> to vector<2x32xf32>
    %700 = arith.mulf %697, %699 : vector<2x32xf32>
    %cst_249 = arith.constant dense<0.000000e+00> : vector<2xf32>
    %701 = vector.multi_reduction <add>, %700, %cst_249 [1] : vector<2x32xf32> to vector<2xf32>
    %702 = vector.shape_cast %701 : vector<2xf32> to vector<2x1xf32>
    %c0_250 = arith.constant 0 : index
    %c0_251 = arith.constant 0 : index
    %703 = vector.load %arg14[%c0_250, %c0_251] : memref<1x1xf32, #tpu.memory_space<vmem>>, vector<1x1xf32>
    %704 = vector.broadcast %703 : vector<1x1xf32> to vector<2x1xf32>
    %705 = arith.addf %702, %704 : vector<2x1xf32>
    %c1_i32 = arith.constant 1 : i32
    %706 = vector.broadcast %c1_i32 : i32 to vector<2x5xi32>
    %707 = arith.cmpi eq, %548, %706 : vector<2x5xi32>
    %cst_252 = arith.constant 0.000000e+00 : f32
    %708 = vector.shape_cast %705 : vector<2x1xf32> to vector<2x1xf32>
    %709 = vector.broadcast %708 : vector<2x1xf32> to vector<2x5xf32>
    %710 = vector.broadcast %cst_252 : f32 to vector<2x5xf32>
    %711 = arith.select %707, %709, %710 : vector<2x5xi1>, vector<2x5xf32>
    %712 = arith.addf %631, %711 : vector<2x5xf32>
    %c0_253 = arith.constant 0 : index
    %c0_254 = arith.constant 0 : index
    %713 = vector.load %arg7[%c0_253, %c0_254] : memref<32x128xf32, #tpu.memory_space<vmem>>, vector<32x128xf32>
    %cst_255 = arith.constant dense<0.000000e+00> : vector<2x128xf32>
    %714 = tpu.matmul %697, %713, %cst_255 {dimension_numbers = #tpu.dot_dimension_numbers<[1], [0], [0], [1], [0, 0, 1, 1], [], []>} : vector<2x32xf32>, vector<32x128xf32>, vector<2x128xf32> -> vector<2x128xf32>
    %c0_256 = arith.constant 0 : index
    %c0_257 = arith.constant 0 : index
    %715 = vector.load %arg8[%c0_256, %c0_257] : memref<32x128xf32, #tpu.memory_space<vmem>>, vector<32x128xf32>
    %cst_258 = arith.constant dense<0.000000e+00> : vector<2x128xf32>
    %716 = tpu.matmul %664, %715, %cst_258 {dimension_numbers = #tpu.dot_dimension_numbers<[1], [0], [0], [1], [0, 0, 1, 1], [], []>} : vector<2x32xf32>, vector<32x128xf32>, vector<2x128xf32> -> vector<2x128xf32>
    %717 = arith.addf %714, %716 : vector<2x128xf32>
    %c0_259 = arith.constant 0 : index
    %c0_260 = arith.constant 0 : index
    %718 = vector.load %arg9[%c0_259, %c0_260] : memref<1x128xf32, #tpu.memory_space<vmem>>, vector<1x128xf32>
    %719 = vector.broadcast %718 : vector<1x128xf32> to vector<2x128xf32>
    %720 = arith.addf %717, %719 : vector<2x128xf32>
    %721 = vector.extract_strided_slice %720 {offsets = [0, 0], sizes = [2, 32], strides = [1, 1]} : vector<2x128xf32> to vector<2x32xf32>
    %722 = arith.negf %721 : vector<2x32xf32>
    %723 = math.exp %722 : vector<2x32xf32>
    %cst_261 = arith.constant 1.000000e+00 : f32
    %724 = vector.broadcast %cst_261 : f32 to vector<2x32xf32>
    %725 = arith.addf %724, %723 : vector<2x32xf32>
    %726 = arith.divf %724, %725 : vector<2x32xf32>
    %727 = vector.extract_strided_slice %720 {offsets = [0, 32], sizes = [2, 32], strides = [1, 1]} : vector<2x128xf32> to vector<2x32xf32>
    %728 = arith.negf %727 : vector<2x32xf32>
    %729 = math.exp %728 : vector<2x32xf32>
    %cst_262 = arith.constant 1.000000e+00 : f32
    %730 = vector.broadcast %cst_262 : f32 to vector<2x32xf32>
    %731 = arith.addf %730, %729 : vector<2x32xf32>
    %732 = arith.divf %730, %731 : vector<2x32xf32>
    %733 = vector.extract_strided_slice %720 {offsets = [0, 64], sizes = [2, 32], strides = [1, 1]} : vector<2x128xf32> to vector<2x32xf32>
    %734 = math.tanh %733 : vector<2x32xf32>
    %735 = vector.extract_strided_slice %720 {offsets = [0, 96], sizes = [2, 32], strides = [1, 1]} : vector<2x128xf32> to vector<2x32xf32>
    %736 = arith.negf %735 : vector<2x32xf32>
    %737 = math.exp %736 : vector<2x32xf32>
    %cst_263 = arith.constant 1.000000e+00 : f32
    %738 = vector.broadcast %cst_263 : f32 to vector<2x32xf32>
    %739 = arith.addf %738, %737 : vector<2x32xf32>
    %740 = arith.divf %738, %739 : vector<2x32xf32>
    %741 = arith.mulf %732, %662 : vector<2x32xf32>
    %742 = arith.mulf %726, %734 : vector<2x32xf32>
    %743 = arith.addf %741, %742 : vector<2x32xf32>
    %744 = math.tanh %743 : vector<2x32xf32>
    %745 = arith.mulf %740, %744 : vector<2x32xf32>
    %c0_264 = arith.constant 0 : index
    %c0_265 = arith.constant 0 : index
    %746 = vector.load %arg10[%c0_264, %c0_265] : memref<32x128xf32, #tpu.memory_space<vmem>>, vector<32x128xf32>
    %cst_266 = arith.constant dense<0.000000e+00> : vector<2x128xf32>
    %747 = tpu.matmul %745, %746, %cst_266 {dimension_numbers = #tpu.dot_dimension_numbers<[1], [0], [0], [1], [0, 0, 1, 1], [], []>} : vector<2x32xf32>, vector<32x128xf32>, vector<2x128xf32> -> vector<2x128xf32>
    %c0_267 = arith.constant 0 : index
    %c0_268 = arith.constant 0 : index
    %748 = vector.load %arg11[%c0_267, %c0_268] : memref<32x128xf32, #tpu.memory_space<vmem>>, vector<32x128xf32>
    %cst_269 = arith.constant dense<0.000000e+00> : vector<2x128xf32>
    %749 = tpu.matmul %697, %748, %cst_269 {dimension_numbers = #tpu.dot_dimension_numbers<[1], [0], [0], [1], [0, 0, 1, 1], [], []>} : vector<2x32xf32>, vector<32x128xf32>, vector<2x128xf32> -> vector<2x128xf32>
    %750 = arith.addf %747, %749 : vector<2x128xf32>
    %c0_270 = arith.constant 0 : index
    %c0_271 = arith.constant 0 : index
    %751 = vector.load %arg12[%c0_270, %c0_271] : memref<1x128xf32, #tpu.memory_space<vmem>>, vector<1x128xf32>
    %752 = vector.broadcast %751 : vector<1x128xf32> to vector<2x128xf32>
    %753 = arith.addf %750, %752 : vector<2x128xf32>
    %754 = vector.extract_strided_slice %753 {offsets = [0, 0], sizes = [2, 32], strides = [1, 1]} : vector<2x128xf32> to vector<2x32xf32>
    %755 = arith.negf %754 : vector<2x32xf32>
    %756 = math.exp %755 : vector<2x32xf32>
    %cst_272 = arith.constant 1.000000e+00 : f32
    %757 = vector.broadcast %cst_272 : f32 to vector<2x32xf32>
    %758 = arith.addf %757, %756 : vector<2x32xf32>
    %759 = arith.divf %757, %758 : vector<2x32xf32>
    %760 = vector.extract_strided_slice %753 {offsets = [0, 32], sizes = [2, 32], strides = [1, 1]} : vector<2x128xf32> to vector<2x32xf32>
    %761 = arith.negf %760 : vector<2x32xf32>
    %762 = math.exp %761 : vector<2x32xf32>
    %cst_273 = arith.constant 1.000000e+00 : f32
    %763 = vector.broadcast %cst_273 : f32 to vector<2x32xf32>
    %764 = arith.addf %763, %762 : vector<2x32xf32>
    %765 = arith.divf %763, %764 : vector<2x32xf32>
    %766 = vector.extract_strided_slice %753 {offsets = [0, 64], sizes = [2, 32], strides = [1, 1]} : vector<2x128xf32> to vector<2x32xf32>
    %767 = math.tanh %766 : vector<2x32xf32>
    %768 = vector.extract_strided_slice %753 {offsets = [0, 96], sizes = [2, 32], strides = [1, 1]} : vector<2x128xf32> to vector<2x32xf32>
    %769 = arith.negf %768 : vector<2x32xf32>
    %770 = math.exp %769 : vector<2x32xf32>
    %cst_274 = arith.constant 1.000000e+00 : f32
    %771 = vector.broadcast %cst_274 : f32 to vector<2x32xf32>
    %772 = arith.addf %771, %770 : vector<2x32xf32>
    %773 = arith.divf %771, %772 : vector<2x32xf32>
    %774 = arith.mulf %765, %695 : vector<2x32xf32>
    %775 = arith.mulf %759, %767 : vector<2x32xf32>
    %776 = arith.addf %774, %775 : vector<2x32xf32>
    %777 = math.tanh %776 : vector<2x32xf32>
    %778 = arith.mulf %773, %777 : vector<2x32xf32>
    %c0_275 = arith.constant 0 : index
    %c0_276 = arith.constant 0 : index
    %779 = vector.load %arg13[%c0_275, %c0_276] : memref<1x32xf32, #tpu.memory_space<vmem>>, vector<1x32xf32>
    %780 = vector.broadcast %779 : vector<1x32xf32> to vector<2x32xf32>
    %781 = arith.mulf %778, %780 : vector<2x32xf32>
    %cst_277 = arith.constant dense<0.000000e+00> : vector<2xf32>
    %782 = vector.multi_reduction <add>, %781, %cst_277 [1] : vector<2x32xf32> to vector<2xf32>
    %783 = vector.shape_cast %782 : vector<2xf32> to vector<2x1xf32>
    %c0_278 = arith.constant 0 : index
    %c0_279 = arith.constant 0 : index
    %784 = vector.load %arg14[%c0_278, %c0_279] : memref<1x1xf32, #tpu.memory_space<vmem>>, vector<1x1xf32>
    %785 = vector.broadcast %784 : vector<1x1xf32> to vector<2x1xf32>
    %786 = arith.addf %783, %785 : vector<2x1xf32>
    %c2_i32 = arith.constant 2 : i32
    %787 = vector.broadcast %c2_i32 : i32 to vector<2x5xi32>
    %788 = arith.cmpi eq, %548, %787 : vector<2x5xi32>
    %cst_280 = arith.constant 0.000000e+00 : f32
    %789 = vector.shape_cast %786 : vector<2x1xf32> to vector<2x1xf32>
    %790 = vector.broadcast %789 : vector<2x1xf32> to vector<2x5xf32>
    %791 = vector.broadcast %cst_280 : f32 to vector<2x5xf32>
    %792 = arith.select %788, %790, %791 : vector<2x5xi1>, vector<2x5xf32>
    %793 = arith.addf %712, %792 : vector<2x5xf32>
    %c0_281 = arith.constant 0 : index
    %c0_282 = arith.constant 0 : index
    %794 = vector.load %arg7[%c0_281, %c0_282] : memref<32x128xf32, #tpu.memory_space<vmem>>, vector<32x128xf32>
    %cst_283 = arith.constant dense<0.000000e+00> : vector<2x128xf32>
    %795 = tpu.matmul %778, %794, %cst_283 {dimension_numbers = #tpu.dot_dimension_numbers<[1], [0], [0], [1], [0, 0, 1, 1], [], []>} : vector<2x32xf32>, vector<32x128xf32>, vector<2x128xf32> -> vector<2x128xf32>
    %c0_284 = arith.constant 0 : index
    %c0_285 = arith.constant 0 : index
    %796 = vector.load %arg8[%c0_284, %c0_285] : memref<32x128xf32, #tpu.memory_space<vmem>>, vector<32x128xf32>
    %cst_286 = arith.constant dense<0.000000e+00> : vector<2x128xf32>
    %797 = tpu.matmul %745, %796, %cst_286 {dimension_numbers = #tpu.dot_dimension_numbers<[1], [0], [0], [1], [0, 0, 1, 1], [], []>} : vector<2x32xf32>, vector<32x128xf32>, vector<2x128xf32> -> vector<2x128xf32>
    %798 = arith.addf %795, %797 : vector<2x128xf32>
    %c0_287 = arith.constant 0 : index
    %c0_288 = arith.constant 0 : index
    %799 = vector.load %arg9[%c0_287, %c0_288] : memref<1x128xf32, #tpu.memory_space<vmem>>, vector<1x128xf32>
    %800 = vector.broadcast %799 : vector<1x128xf32> to vector<2x128xf32>
    %801 = arith.addf %798, %800 : vector<2x128xf32>
    %802 = vector.extract_strided_slice %801 {offsets = [0, 0], sizes = [2, 32], strides = [1, 1]} : vector<2x128xf32> to vector<2x32xf32>
    %803 = arith.negf %802 : vector<2x32xf32>
    %804 = math.exp %803 : vector<2x32xf32>
    %cst_289 = arith.constant 1.000000e+00 : f32
    %805 = vector.broadcast %cst_289 : f32 to vector<2x32xf32>
    %806 = arith.addf %805, %804 : vector<2x32xf32>
    %807 = arith.divf %805, %806 : vector<2x32xf32>
    %808 = vector.extract_strided_slice %801 {offsets = [0, 32], sizes = [2, 32], strides = [1, 1]} : vector<2x128xf32> to vector<2x32xf32>
    %809 = arith.negf %808 : vector<2x32xf32>
    %810 = math.exp %809 : vector<2x32xf32>
    %cst_290 = arith.constant 1.000000e+00 : f32
    %811 = vector.broadcast %cst_290 : f32 to vector<2x32xf32>
    %812 = arith.addf %811, %810 : vector<2x32xf32>
    %813 = arith.divf %811, %812 : vector<2x32xf32>
    %814 = vector.extract_strided_slice %801 {offsets = [0, 64], sizes = [2, 32], strides = [1, 1]} : vector<2x128xf32> to vector<2x32xf32>
    %815 = math.tanh %814 : vector<2x32xf32>
    %816 = vector.extract_strided_slice %801 {offsets = [0, 96], sizes = [2, 32], strides = [1, 1]} : vector<2x128xf32> to vector<2x32xf32>
    %817 = arith.negf %816 : vector<2x32xf32>
    %818 = math.exp %817 : vector<2x32xf32>
    %cst_291 = arith.constant 1.000000e+00 : f32
    %819 = vector.broadcast %cst_291 : f32 to vector<2x32xf32>
    %820 = arith.addf %819, %818 : vector<2x32xf32>
    %821 = arith.divf %819, %820 : vector<2x32xf32>
    %822 = arith.mulf %813, %743 : vector<2x32xf32>
    %823 = arith.mulf %807, %815 : vector<2x32xf32>
    %824 = arith.addf %822, %823 : vector<2x32xf32>
    %825 = math.tanh %824 : vector<2x32xf32>
    %826 = arith.mulf %821, %825 : vector<2x32xf32>
    %c0_292 = arith.constant 0 : index
    %c0_293 = arith.constant 0 : index
    %827 = vector.load %arg10[%c0_292, %c0_293] : memref<32x128xf32, #tpu.memory_space<vmem>>, vector<32x128xf32>
    %cst_294 = arith.constant dense<0.000000e+00> : vector<2x128xf32>
    %828 = tpu.matmul %826, %827, %cst_294 {dimension_numbers = #tpu.dot_dimension_numbers<[1], [0], [0], [1], [0, 0, 1, 1], [], []>} : vector<2x32xf32>, vector<32x128xf32>, vector<2x128xf32> -> vector<2x128xf32>
    %c0_295 = arith.constant 0 : index
    %c0_296 = arith.constant 0 : index
    %829 = vector.load %arg11[%c0_295, %c0_296] : memref<32x128xf32, #tpu.memory_space<vmem>>, vector<32x128xf32>
    %cst_297 = arith.constant dense<0.000000e+00> : vector<2x128xf32>
    %830 = tpu.matmul %778, %829, %cst_297 {dimension_numbers = #tpu.dot_dimension_numbers<[1], [0], [0], [1], [0, 0, 1, 1], [], []>} : vector<2x32xf32>, vector<32x128xf32>, vector<2x128xf32> -> vector<2x128xf32>
    %831 = arith.addf %828, %830 : vector<2x128xf32>
    %c0_298 = arith.constant 0 : index
    %c0_299 = arith.constant 0 : index
    %832 = vector.load %arg12[%c0_298, %c0_299] : memref<1x128xf32, #tpu.memory_space<vmem>>, vector<1x128xf32>
    %833 = vector.broadcast %832 : vector<1x128xf32> to vector<2x128xf32>
    %834 = arith.addf %831, %833 : vector<2x128xf32>
    %835 = vector.extract_strided_slice %834 {offsets = [0, 0], sizes = [2, 32], strides = [1, 1]} : vector<2x128xf32> to vector<2x32xf32>
    %836 = arith.negf %835 : vector<2x32xf32>
    %837 = math.exp %836 : vector<2x32xf32>
    %cst_300 = arith.constant 1.000000e+00 : f32
    %838 = vector.broadcast %cst_300 : f32 to vector<2x32xf32>
    %839 = arith.addf %838, %837 : vector<2x32xf32>
    %840 = arith.divf %838, %839 : vector<2x32xf32>
    %841 = vector.extract_strided_slice %834 {offsets = [0, 32], sizes = [2, 32], strides = [1, 1]} : vector<2x128xf32> to vector<2x32xf32>
    %842 = arith.negf %841 : vector<2x32xf32>
    %843 = math.exp %842 : vector<2x32xf32>
    %cst_301 = arith.constant 1.000000e+00 : f32
    %844 = vector.broadcast %cst_301 : f32 to vector<2x32xf32>
    %845 = arith.addf %844, %843 : vector<2x32xf32>
    %846 = arith.divf %844, %845 : vector<2x32xf32>
    %847 = vector.extract_strided_slice %834 {offsets = [0, 64], sizes = [2, 32], strides = [1, 1]} : vector<2x128xf32> to vector<2x32xf32>
    %848 = math.tanh %847 : vector<2x32xf32>
    %849 = vector.extract_strided_slice %834 {offsets = [0, 96], sizes = [2, 32], strides = [1, 1]} : vector<2x128xf32> to vector<2x32xf32>
    %850 = arith.negf %849 : vector<2x32xf32>
    %851 = math.exp %850 : vector<2x32xf32>
    %cst_302 = arith.constant 1.000000e+00 : f32
    %852 = vector.broadcast %cst_302 : f32 to vector<2x32xf32>
    %853 = arith.addf %852, %851 : vector<2x32xf32>
    %854 = arith.divf %852, %853 : vector<2x32xf32>
    %855 = arith.mulf %846, %776 : vector<2x32xf32>
    %856 = arith.mulf %840, %848 : vector<2x32xf32>
    %857 = arith.addf %855, %856 : vector<2x32xf32>
    %858 = math.tanh %857 : vector<2x32xf32>
    %859 = arith.mulf %854, %858 : vector<2x32xf32>
    %c0_303 = arith.constant 0 : index
    %c0_304 = arith.constant 0 : index
    %860 = vector.load %arg13[%c0_303, %c0_304] : memref<1x32xf32, #tpu.memory_space<vmem>>, vector<1x32xf32>
    %861 = vector.broadcast %860 : vector<1x32xf32> to vector<2x32xf32>
    %862 = arith.mulf %859, %861 : vector<2x32xf32>
    %cst_305 = arith.constant dense<0.000000e+00> : vector<2xf32>
    %863 = vector.multi_reduction <add>, %862, %cst_305 [1] : vector<2x32xf32> to vector<2xf32>
    %864 = vector.shape_cast %863 : vector<2xf32> to vector<2x1xf32>
    %c0_306 = arith.constant 0 : index
    %c0_307 = arith.constant 0 : index
    %865 = vector.load %arg14[%c0_306, %c0_307] : memref<1x1xf32, #tpu.memory_space<vmem>>, vector<1x1xf32>
    %866 = vector.broadcast %865 : vector<1x1xf32> to vector<2x1xf32>
    %867 = arith.addf %864, %866 : vector<2x1xf32>
    %c3_i32 = arith.constant 3 : i32
    %868 = vector.broadcast %c3_i32 : i32 to vector<2x5xi32>
    %869 = arith.cmpi eq, %548, %868 : vector<2x5xi32>
    %cst_308 = arith.constant 0.000000e+00 : f32
    %870 = vector.shape_cast %867 : vector<2x1xf32> to vector<2x1xf32>
    %871 = vector.broadcast %870 : vector<2x1xf32> to vector<2x5xf32>
    %872 = vector.broadcast %cst_308 : f32 to vector<2x5xf32>
    %873 = arith.select %869, %871, %872 : vector<2x5xi1>, vector<2x5xf32>
    %874 = arith.addf %793, %873 : vector<2x5xf32>
    %c0_309 = arith.constant 0 : index
    %c0_310 = arith.constant 0 : index
    %875 = vector.load %arg7[%c0_309, %c0_310] : memref<32x128xf32, #tpu.memory_space<vmem>>, vector<32x128xf32>
    %cst_311 = arith.constant dense<0.000000e+00> : vector<2x128xf32>
    %876 = tpu.matmul %859, %875, %cst_311 {dimension_numbers = #tpu.dot_dimension_numbers<[1], [0], [0], [1], [0, 0, 1, 1], [], []>} : vector<2x32xf32>, vector<32x128xf32>, vector<2x128xf32> -> vector<2x128xf32>
    %c0_312 = arith.constant 0 : index
    %c0_313 = arith.constant 0 : index
    %877 = vector.load %arg8[%c0_312, %c0_313] : memref<32x128xf32, #tpu.memory_space<vmem>>, vector<32x128xf32>
    %cst_314 = arith.constant dense<0.000000e+00> : vector<2x128xf32>
    %878 = tpu.matmul %826, %877, %cst_314 {dimension_numbers = #tpu.dot_dimension_numbers<[1], [0], [0], [1], [0, 0, 1, 1], [], []>} : vector<2x32xf32>, vector<32x128xf32>, vector<2x128xf32> -> vector<2x128xf32>
    %879 = arith.addf %876, %878 : vector<2x128xf32>
    %c0_315 = arith.constant 0 : index
    %c0_316 = arith.constant 0 : index
    %880 = vector.load %arg9[%c0_315, %c0_316] : memref<1x128xf32, #tpu.memory_space<vmem>>, vector<1x128xf32>
    %881 = vector.broadcast %880 : vector<1x128xf32> to vector<2x128xf32>
    %882 = arith.addf %879, %881 : vector<2x128xf32>
    %883 = vector.extract_strided_slice %882 {offsets = [0, 0], sizes = [2, 32], strides = [1, 1]} : vector<2x128xf32> to vector<2x32xf32>
    %884 = arith.negf %883 : vector<2x32xf32>
    %885 = math.exp %884 : vector<2x32xf32>
    %cst_317 = arith.constant 1.000000e+00 : f32
    %886 = vector.broadcast %cst_317 : f32 to vector<2x32xf32>
    %887 = arith.addf %886, %885 : vector<2x32xf32>
    %888 = arith.divf %886, %887 : vector<2x32xf32>
    %889 = vector.extract_strided_slice %882 {offsets = [0, 32], sizes = [2, 32], strides = [1, 1]} : vector<2x128xf32> to vector<2x32xf32>
    %890 = arith.negf %889 : vector<2x32xf32>
    %891 = math.exp %890 : vector<2x32xf32>
    %cst_318 = arith.constant 1.000000e+00 : f32
    %892 = vector.broadcast %cst_318 : f32 to vector<2x32xf32>
    %893 = arith.addf %892, %891 : vector<2x32xf32>
    %894 = arith.divf %892, %893 : vector<2x32xf32>
    %895 = vector.extract_strided_slice %882 {offsets = [0, 64], sizes = [2, 32], strides = [1, 1]} : vector<2x128xf32> to vector<2x32xf32>
    %896 = math.tanh %895 : vector<2x32xf32>
    %897 = vector.extract_strided_slice %882 {offsets = [0, 96], sizes = [2, 32], strides = [1, 1]} : vector<2x128xf32> to vector<2x32xf32>
    %898 = arith.negf %897 : vector<2x32xf32>
    %899 = math.exp %898 : vector<2x32xf32>
    %cst_319 = arith.constant 1.000000e+00 : f32
    %900 = vector.broadcast %cst_319 : f32 to vector<2x32xf32>
    %901 = arith.addf %900, %899 : vector<2x32xf32>
    %902 = arith.divf %900, %901 : vector<2x32xf32>
    %903 = arith.mulf %894, %824 : vector<2x32xf32>
    %904 = arith.mulf %888, %896 : vector<2x32xf32>
    %905 = arith.addf %903, %904 : vector<2x32xf32>
    %906 = math.tanh %905 : vector<2x32xf32>
    %907 = arith.mulf %902, %906 : vector<2x32xf32>
    %c0_320 = arith.constant 0 : index
    %c0_321 = arith.constant 0 : index
    %908 = vector.load %arg10[%c0_320, %c0_321] : memref<32x128xf32, #tpu.memory_space<vmem>>, vector<32x128xf32>
    %cst_322 = arith.constant dense<0.000000e+00> : vector<2x128xf32>
    %909 = tpu.matmul %907, %908, %cst_322 {dimension_numbers = #tpu.dot_dimension_numbers<[1], [0], [0], [1], [0, 0, 1, 1], [], []>} : vector<2x32xf32>, vector<32x128xf32>, vector<2x128xf32> -> vector<2x128xf32>
    %c0_323 = arith.constant 0 : index
    %c0_324 = arith.constant 0 : index
    %910 = vector.load %arg11[%c0_323, %c0_324] : memref<32x128xf32, #tpu.memory_space<vmem>>, vector<32x128xf32>
    %cst_325 = arith.constant dense<0.000000e+00> : vector<2x128xf32>
    %911 = tpu.matmul %859, %910, %cst_325 {dimension_numbers = #tpu.dot_dimension_numbers<[1], [0], [0], [1], [0, 0, 1, 1], [], []>} : vector<2x32xf32>, vector<32x128xf32>, vector<2x128xf32> -> vector<2x128xf32>
    %912 = arith.addf %909, %911 : vector<2x128xf32>
    %c0_326 = arith.constant 0 : index
    %c0_327 = arith.constant 0 : index
    %913 = vector.load %arg12[%c0_326, %c0_327] : memref<1x128xf32, #tpu.memory_space<vmem>>, vector<1x128xf32>
    %914 = vector.broadcast %913 : vector<1x128xf32> to vector<2x128xf32>
    %915 = arith.addf %912, %914 : vector<2x128xf32>
    %916 = vector.extract_strided_slice %915 {offsets = [0, 0], sizes = [2, 32], strides = [1, 1]} : vector<2x128xf32> to vector<2x32xf32>
    %917 = arith.negf %916 : vector<2x32xf32>
    %918 = math.exp %917 : vector<2x32xf32>
    %cst_328 = arith.constant 1.000000e+00 : f32
    %919 = vector.broadcast %cst_328 : f32 to vector<2x32xf32>
    %920 = arith.addf %919, %918 : vector<2x32xf32>
    %921 = arith.divf %919, %920 : vector<2x32xf32>
    %922 = vector.extract_strided_slice %915 {offsets = [0, 32], sizes = [2, 32], strides = [1, 1]} : vector<2x128xf32> to vector<2x32xf32>
    %923 = arith.negf %922 : vector<2x32xf32>
    %924 = math.exp %923 : vector<2x32xf32>
    %cst_329 = arith.constant 1.000000e+00 : f32
    %925 = vector.broadcast %cst_329 : f32 to vector<2x32xf32>
    %926 = arith.addf %925, %924 : vector<2x32xf32>
    %927 = arith.divf %925, %926 : vector<2x32xf32>
    %928 = vector.extract_strided_slice %915 {offsets = [0, 64], sizes = [2, 32], strides = [1, 1]} : vector<2x128xf32> to vector<2x32xf32>
    %929 = math.tanh %928 : vector<2x32xf32>
    %930 = vector.extract_strided_slice %915 {offsets = [0, 96], sizes = [2, 32], strides = [1, 1]} : vector<2x128xf32> to vector<2x32xf32>
    %931 = arith.negf %930 : vector<2x32xf32>
    %932 = math.exp %931 : vector<2x32xf32>
    %cst_330 = arith.constant 1.000000e+00 : f32
    %933 = vector.broadcast %cst_330 : f32 to vector<2x32xf32>
    %934 = arith.addf %933, %932 : vector<2x32xf32>
    %935 = arith.divf %933, %934 : vector<2x32xf32>
    %936 = arith.mulf %927, %857 : vector<2x32xf32>
    %937 = arith.mulf %921, %929 : vector<2x32xf32>
    %938 = arith.addf %936, %937 : vector<2x32xf32>
    %939 = math.tanh %938 : vector<2x32xf32>
    %940 = arith.mulf %935, %939 : vector<2x32xf32>
    %c0_331 = arith.constant 0 : index
    %c0_332 = arith.constant 0 : index
    %941 = vector.load %arg13[%c0_331, %c0_332] : memref<1x32xf32, #tpu.memory_space<vmem>>, vector<1x32xf32>
    %942 = vector.broadcast %941 : vector<1x32xf32> to vector<2x32xf32>
    %943 = arith.mulf %940, %942 : vector<2x32xf32>
    %cst_333 = arith.constant dense<0.000000e+00> : vector<2xf32>
    %944 = vector.multi_reduction <add>, %943, %cst_333 [1] : vector<2x32xf32> to vector<2xf32>
    %945 = vector.shape_cast %944 : vector<2xf32> to vector<2x1xf32>
    %c0_334 = arith.constant 0 : index
    %c0_335 = arith.constant 0 : index
    %946 = vector.load %arg14[%c0_334, %c0_335] : memref<1x1xf32, #tpu.memory_space<vmem>>, vector<1x1xf32>
    %947 = vector.broadcast %946 : vector<1x1xf32> to vector<2x1xf32>
    %948 = arith.addf %945, %947 : vector<2x1xf32>
    %c4_i32 = arith.constant 4 : i32
    %949 = vector.broadcast %c4_i32 : i32 to vector<2x5xi32>
    %950 = arith.cmpi eq, %548, %949 : vector<2x5xi32>
    %cst_336 = arith.constant 0.000000e+00 : f32
    %951 = vector.shape_cast %948 : vector<2x1xf32> to vector<2x1xf32>
    %952 = vector.broadcast %951 : vector<2x1xf32> to vector<2x5xf32>
    %953 = vector.broadcast %cst_336 : f32 to vector<2x5xf32>
    %954 = arith.select %950, %952, %953 : vector<2x5xi1>, vector<2x5xf32>
    %955 = arith.addf %874, %954 : vector<2x5xf32>
    %c0_337 = arith.constant 0 : index
    %c0_338 = arith.constant 0 : index
    %956 = vector.load %arg15[%c0_337, %c0_338] : memref<2x5xf32, #tpu.memory_space<vmem>>, vector<2x5xf32>
    tpu.vector_store %arg15[%c0_337, %c0_338], %955 {strides = array<i32>} : memref<2x5xf32, #tpu.memory_space<vmem>>, vector<2x5xf32>,
    return
  }
}

</mosaic_0001>

<bundles_post_ra>
// kernel: lstm_seq2seq_forward.1
= control target key start
LH: loop header
LB: loop body
LE: loop exit
PB: predicated region body
PF: predicated region fallthrough
CT: control target
= control target key end

     0   :  { %s7092_s0 = inlined_call_operand.vmem [shape: f32[8,2,4], index: 0, kind: input, shape index: {}]   ;;  %s7093_s1 = inlined_call_operand.vmem [shape: f32[4,128], index: 1, kind: input, shape index: {}]   ;;  %s7094_s2 = inlined_call_operand.vmem [shape: f32[32,128], index: 2, kind: input, shape index: {}]   ;;  %s7095_s3 = inlined_call_operand.vmem [shape: f32[1,128], index: 3, kind: input, shape index: {}]   ;;  %s7096_s4 = inlined_call_operand.hbm [shape: f32[32,128], index: 4, kind: input, shape index: {}]   ;;  %s7097_s5 = inlined_call_operand.hbm [shape: f32[32,128], index: 5, kind: input, shape index: {}]   ;;  %s7098_s6 = inlined_call_operand.vmem [shape: f32[1,128], index: 6, kind: input, shape index: {}]   ;;  %s7099_s7 = inlined_call_operand.hbm [shape: f32[32,128], index: 7, kind: input, shape index: {}]   ;;  %s7100_s8 = inlined_call_operand.hbm [shape: f32[32,128], index: 8, kind: input, shape index: {}]   ;;  %s7101_s9 = inlined_call_operand.vmem [shape: f32[1,128], index: 9, kind: input, shape index: {}]   ;;  %s7102_s10 = inlined_call_operand.hbm [shape: f32[32,128], index: 10, kind: input, shape index: {}]   ;;  %s7103_s11 = inlined_call_operand.hbm [shape: f32[32,128], index: 11, kind: input, shape index: {}]   ;;  %s7104_s12 = inlined_call_operand.vmem [shape: f32[1,128], index: 12, kind: input, shape index: {}]   ;;  %s7105_s13 = inlined_call_operand.vmem [shape: f32[1,32], index: 13, kind: input, shape index: {}]   ;;  %s7106_s14 = inlined_call_operand.<no memory space> [shape: f32[1,1], index: 14, kind: input, shape index: {}]   ;;  %s7107_s15 = inlined_call_operand.hbm [shape: f32[2,5], index: 15, kind: output, shape index: {}]  }
   0x1   :  { %v20_v0 = vstv %s7106_s14 }
   0x2   :  { %21 = vst [vmem:[#allocation2] sm:$0x1] %v20_v0 }
   0x3   :  { %22 = vsyncpa [#allocation4], 0 }
   0x4   :  { %23 = vsyncpa [#allocation7], 0 }
   0x5   :  { %24 = vsyncpa [#allocation10], 0 }
   0x6   :  { %25 = vsyncpa [#allocation13], 0 }
   0x7   :  { %26 = vsyncpa [#allocation5], 0  ;;  %s6025_s20 = smov [#allocation6]   ;;  %s6026_s22 = smov [#allocation9]  }
   0x8   :  { %s52_s21 = sshll.u32 %s6025_s20, 4  ;;  %s78_s23 = sshll.u32 %s6026_s22, 4  ;;  %s53_s21 = int_to_ptr.vmem [resolvable:$true] %s52_s21  ;;  %s79_s23 = int_to_ptr.vmem [resolvable:$true] %s78_s23 }
   0x9   :  { %s5883_s24 = scalar_lea.vmem %s53_s21, 512  ;;  %p5888_p1 = scmp.lt.s32.totalorder %s53_s21, %s53_s21 }
   0xa   :  { %p5884_p0 = scmp.ne.s32.totalorder %s53_s21, %s5883_s24  ;;  %p5889_p2 = scmp.lt.s32.totalorder %s5883_s24, %s5883_s24 }
   0xc   :  { %p5890_p3 = por %p5889_p2, %p5888_p1 }
   0xe   :  { %p5891_p4 = pnand %p5890_p3, %p5884_p0 }
  0x10   :  { %5894 = shalt.err (!%p5891_p4)
}
  0x11   :  { %s6027_s14 = smov 128   ;;  %s6028_s25 = smov 8  }
  0x12   :  { %58 = dma.hbm_to_vmem [thread:$0]  %s7097_s5, 512, %s53_s21, [#allocation7], %s6027_s14, %s6027_s14, %s6028_s25  }
  0x13   :  { %s5903_s28 = scalar_lea.vmem %s79_s23, 512  ;;  %p5908_p6 = scmp.lt.s32.totalorder %s79_s23, %s79_s23 }
  0x14   :  { %p5904_p5 = scmp.ne.s32.totalorder %s79_s23, %s5903_s28  ;;  %p5909_p7 = scmp.lt.s32.totalorder %s5903_s28, %s5903_s28 }
  0x16   :  { %p5910_p8 = por %p5909_p7, %p5908_p6 }
  0x18   :  { %p5911_p9 = pnand %p5910_p8, %p5904_p5 }
  0x1a   :  { %5914 = shalt.err (!%p5911_p9)
}
  0x1b   :  { %84 = dma.hbm_to_vmem [thread:$0]  %s7100_s8, 512, %s79_s23, [#allocation10], %s6027_s14, %s6027_s14, %s6028_s25  }
  0x1c   :  { %s6029_s16 = smov [#allocation3]   ;;  %s6030_s18 = smov [#allocation8]  }
  0x1d   :  { %s40_s17 = sshll.u32 %s6029_s16, 4  ;;  %s66_s19 = sshll.u32 %s6030_s18, 4  ;;  %s41_s17 = int_to_ptr.vmem [resolvable:$true] %s40_s17  ;;  %s67_s19 = int_to_ptr.vmem [resolvable:$true] %s66_s19 }
  0x1e   :  { %s5923_s5 = scalar_lea.vmem %s41_s17, 512  ;;  %p5928_p11 = scmp.lt.s32.totalorder %s41_s17, %s41_s17 }
  0x1f   :  { %p5924_p10 = scmp.ne.s32.totalorder %s41_s17, %s5923_s5  ;;  %p5929_p12 = scmp.lt.s32.totalorder %s5923_s5, %s5923_s5 }
  0x21   :  { %p5930_p13 = por %p5929_p12, %p5928_p11 }
  0x23   :  { %p5931_p0 = pnand %p5930_p13, %p5924_p10 }
  0x25   :  { %5934 = shalt.err (!%p5931_p0)
}
  0x26   :  { %46 = dma.hbm_to_vmem [thread:$0]  %s7096_s4, 512, %s41_s17, [#allocation4], %s6027_s14, %s6027_s14, %s6028_s25  }
  0x27   :  { %s5943_s8 = scalar_lea.vmem %s67_s19, 512  ;;  %p5948_p2 = scmp.lt.s32.totalorder %s67_s19, %s67_s19 }
  0x28   :  { %p5944_p1 = scmp.ne.s32.totalorder %s67_s19, %s5943_s8  ;;  %p5949_p3 = scmp.lt.s32.totalorder %s5943_s8, %s5943_s8 }
  0x2a   :  { %p5950_p4 = por %p5949_p3, %p5948_p2 }
  0x2c   :  { %p5951_p5 = pnand %p5950_p4, %p5944_p1 }
  0x2e   :  { %5954 = shalt.err (!%p5951_p5)
}
  0x2f   :  { %72 = dma.hbm_to_vmem [thread:$0]  %s7099_s7, 512, %s67_s19, [#allocation7], %s6027_s14, %s6027_s14, %s6028_s25  }
  0x30   :  { %s6031_s24 = smov [#allocation11]   ;;  %s6032_s27 = smov [#allocation12]  }
  0x31   :  { %s92_s26 = sshll.u32 %s6031_s24, 4  ;;  %s104_s28 = sshll.u32 %s6032_s27, 4  ;;  %s93_s26 = int_to_ptr.vmem [resolvable:$true] %s92_s26  ;;  %s105_s28 = int_to_ptr.vmem [resolvable:$true] %s104_s28 }
  0x32   :  { %s5963_s4 = scalar_lea.vmem %s93_s26, 512  ;;  %p5968_p7 = scmp.lt.s32.totalorder %s93_s26, %s93_s26 }
  0x33   :  { %p5964_p6 = scmp.ne.s32.totalorder %s93_s26, %s5963_s4  ;;  %p5969_p8 = scmp.lt.s32.totalorder %s5963_s4, %s5963_s4 }
  0x35   :  { %p5970_p9 = por %p5969_p8, %p5968_p7 }
  0x37   :  { %p5971_p10 = pnand %p5970_p9, %p5964_p6 }
  0x39   :  { %5974 = shalt.err (!%p5971_p10)
}
  0x3a   :  { %98 = dma.hbm_to_vmem [thread:$0]  %s7102_s10, 512, %s93_s26, [#allocation10], %s6027_s14, %s6027_s14, %s6028_s25  }
  0x3b   :  { %s5983_s7 = scalar_lea.vmem %s105_s28, 512  ;;  %p5988_p12 = scmp.lt.s32.totalorder %s105_s28, %s105_s28 }
  0x3c   :  { %p5984_p11 = scmp.ne.s32.totalorder %s105_s28, %s5983_s7  ;;  %p5989_p13 = scmp.lt.s32.totalorder %s5983_s7, %s5983_s7 }
  0x3e   :  { %p5990_p0 = por %p5989_p13, %p5988_p12 }
  0x40   :  { %p5991_p1 = pnand %p5990_p0, %p5984_p11 }
  0x42   :  { %5994 = shalt.err (!%p5991_p1)
}
  0x43   :  { %110 = dma.hbm_to_vmem [thread:$0]  %s7103_s11, 512, %s105_s28, [#allocation13], %s6027_s14, %s6027_s14, %s6028_s25  }
  0x44   :  { %6015 = dma.done.wait [#allocation4], 512  }
  0x45   :  { %6016 = vsyncadd [#allocation4], 4294966784 }
  0x46   :  { %6017 = dma.done.wait [#allocation7], 1024  }
  0x47   :  { %6018 = vsyncadd [#allocation7], 4294966272 }
  0x48   :  { %6019 = dma.done.wait [#allocation10], 1024  }
  0x49   :  { %6020 = vsyncadd [#allocation10], 4294966272 }
  0x4a   :  { %6021 = dma.done.wait [#allocation13], 512  }
  0x4b   :  { %6022 = vsyncadd [#allocation13], 4294966784  ;;  %v6033_v1 = vmov 0.0   ;;  %vm6034_vm0 = vmmov 0   ;;  %vm219_vm1 = vcmask 1043456   ;;  %v6168_v2 = vld [vmem:[%s7094_s2 + $0x18] sm:$0xff] }
  0x4c   :  { %5111 = vmatprep.subr.mxu0 %v6033_v1  ;;  %5122 = vmatprep.subr.mxu1 %v6033_v1  ;;  %v6173_v3 = vld [vmem:[%s7094_s2 + $0x10] sm:$0xff]  ;;  %vm215_vm2 = vcmask 31744   ;;  %v6179_v4 = vld [vmem:[%s7093_s1] sm:$0xf]  ;;  %v6188_v6 = vld [vmem:[%s7094_s2 + $0x8] sm:$0xff]  ;;  %s6035_s27 = smov 64  }
  0x4d   :  { %5124 = vmatprep.mubr.msk.f32.mxu1 %vm6034_vm0, %v6033_v1  ;;  %5119 = vmatprep.mubr.msk.f32.mxu0 %vm6034_vm0, %v6033_v1  ;;  %v135_v5 = vld [vmem:[%s7092_s0] sm:$0x3]  ;;  %s6036_s28 = smov 32   ;;  %v6223_v26 = vld [vmem:[#allocation6 + $0x10] sm:$0xff]  ;;  %v6231_v29 = vld [vmem:[#allocation6 + $0x8] sm:$0xff]  ;;  %vm141_vm3 = vcmask 261120  }
  0x4e   :  { %5112 = vmatpush3.msra.mxu0 %v6168_v2  ;;  %5123 = vmatpush3.msk.msra.mxu1 %vm219_vm1, %v6179_v4  ;;  %v6198_v7 = vld [vmem:[%s7094_s2] sm:$0xff]  ;;  %v6228_v28 = vld [vmem:[#allocation3 + $0x10] sm:$0xff]  ;;  %v6236_v30 = vld [vmem:[#allocation3 + $0x8] sm:$0xff]  ;;  %s6037_s25 = smov 96   ;;  %vm3311_vm4 = vcmask 254976   ;;  %vm4759_vm10 = vcmask 33792  }
  0x4f   :  { %5113 = vmatprep.subr.mxu0 %v6033_v1  ;;  %5125 = vmatmul.mubr.msk.f32.vlgmr.msra.gmra.mxu1 %vm215_vm2, %v135_v5  ;;  %v6213_v11 = vld [vmem:[%s7095_s3] ss:$0 sm:$0xff]  ;;  %v6239_v31 = vld [vmem:[#allocation6] sm:$0xff] }
  0x50   :  { %5114 = vmatpush3.msra.mxu0 %v6173_v3  ;;  %5127 = vmatprep.subr.mxu1 %v6033_v1  ;;  %v6221_v25 = vld [vmem:[#allocation6 + $0x18] sm:$0xff]  ;;  %v6246_v32 = vld [vmem:[#allocation3] sm:$0xff] }
  0x51   :  { %5115 = vmatprep.subr.mxu0 %v6033_v1  ;;  %5135 = vmatprep.mubr.msk.f32.mxu1 %vm6034_vm0, %v6033_v1  ;;  %v6226_v27 = vld [vmem:[#allocation3 + $0x18] sm:$0xff]  ;;  %v4786_v39 = vld [vmem:[%s7092_s0 + $0x2] sm:$0x3] }
  0x52   :  { %5116 = vmatpush3.msra.mxu0 %v6188_v6  ;;  %5128 = vmatpush3.msra.mxu1 %v6221_v25  ;;  %v6300_v41 = vld [vmem:[%s7098_s6] ss:$0 sm:$0xff] }
  0x53   :  { %5117 = vmatprep.subr.mxu0 %v6033_v1  ;;  %5129 = vmatprep.subr.mxu1 %v6033_v1 }
  0x54   :  { %5118 = vmatpush3.msra.mxu0 %v6198_v7  ;;  %5130 = vmatpush3.msra.mxu1 %v6223_v26 }
  0x55   :  { %5120 = vmatmul.mubr.f32.vlgmr.msra.gmra.mxu0 %v6033_v1  ;;  %5138 = vmatprep.subr.mxu0 %v6033_v1 }
  0x56   :  { %5146 = vmatprep.mubr.msk.f32.mxu0 %vm6034_vm0, %v6033_v1  ;;  %5139 = vmatpush3.msra.mxu0 %v6226_v27 }
  0x57   :  { %5140 = vmatprep.subr.mxu0 %v6033_v1  ;;  %5131 = vmatprep.subr.mxu1 %v6033_v1 }
  0x58   :  { %5141 = vmatpush3.msra.mxu0 %v6228_v28  ;;  %5132 = vmatpush3.msra.mxu1 %v6231_v29 }
  0x59   :  { %5142 = vmatprep.subr.mxu0 %v6033_v1  ;;  %5133 = vmatprep.subr.mxu1 %v6033_v1 }
  0x5a   :  { %5143 = vmatpush3.msra.mxu0 %v6236_v30  ;;  %5134 = vmatpush3.msra.mxu1 %v6239_v31 }
  0x5b   :  { %5144 = vmatprep.subr.mxu0 %v6033_v1  ;;  %5149 = vmatprep.subr.mxu1 %v6033_v1 }
  0x5c   :  { %5136 = vmatmul.mubr.f32.vlgmr.msra.gmra.mxu1 %v6033_v1  ;;  %5145 = vmatpush3.msra.mxu0 %v6246_v32 }
  0x5d   :  { %5150 = vmatpush3.msra.mxu1 %v6168_v2  ;;  %5157 = vmatprep.mubr.msk.f32.mxu1 %vm6034_vm0, %v6033_v1 }
  0x5e   :  { %5151 = vmatprep.subr.mxu1 %v6033_v1  ;;  %5160 = vmatprep.subr.mxu0 %v6033_v1 }
  0x5f   :  { %5152 = vmatpush3.msra.mxu1 %v6173_v3 }
  0x60   :  { %5153 = vmatprep.subr.mxu1 %v6033_v1 }
  0x61   :  { %5154 = vmatpush3.msra.mxu1 %v6188_v6 }
  0x62   :  { %5155 = vmatprep.subr.mxu1 %v6033_v1 }
  0x63   :  { %5156 = vmatpush3.msra.mxu1 %v6198_v7 }
  0x64   :  { %5165 = vmatprep.subr.mxu1 %v6033_v1 }
 0x10f   :  { %v289_v8 = vpop.f32.mrf.mxu1 }
 0x111   :  { %v5126_v9 = vpop.f32.mrf.mxu1 }
 0x115   :  { %v211_v10 = vpop.f32.mrf.mxu0 }
 0x116   :  { %v290_v12 = vadd.f32 %v289_v8, %v211_v10 }
 0x117   :  { %v5121_v13 = vpop.f32.mrf.mxu0 }
 0x118   :  { %v300_v14 = vadd.f32 %v6213_v11, %v290_v12 }
 0x11a   :  { %5652 = vtanh.f32 %v300_v14  ;;  %v4782_v16 = vmul.f32 -1.442695, %v300_v14 }
 0x11c   :  { %5654 = vpow2.f32 %v4782_v16  ;;  %v399_v36 = vpop.f32.mrf.mxu1 }
 0x11e   :  { %v5137_v37 = vpop.f32.mrf.mxu1 }
 0x127   :  { %v5653_v15 = vpop.eup %5652 }
 0x128   :  { %310 = vrot.lane.b32.xlu0 %v5653_v15, %s6035_s27 }
 0x129   :  { %v5655_v17 = vpop.eup %5654 }
 0x12a   :  { %v304_v18 = vadd.f32 1.0, %v5655_v17 }
 0x12c   :  { %5656 = vrcp.f32 %v304_v18 }
 0x139   :  { %v5657_v19 = vpop.eup %5656 }
 0x13a   :  { %v308_v22 = vmul.f32 0.0, %v5657_v19 }
 0x19a   :  { %v311_v20 = vpop.permute.xlu0 %310 }
 0x19b   :  { %v313_v21 = vmul.f32 %v5657_v19, %v311_v20 }
 0x19d   :  { %315 = vrot.lane.b32.xlu0 %v313_v21, %s6036_s28 }
 0x20f   :  { %v316_v23 = vpop.permute.xlu0 %315 }
 0x210   :  { %v6218_v24 = vadd.f32 %v316_v23, %v308_v22  ;;  %v4794_v22 = vld [vmem:[%s7092_s0 + $0x4] sm:$0x3] }
 0x212   :  { %5658 = vtanh.f32 %v6218_v24 }
 0x21f   :  { %v5659_v33 = vpop.eup %5658 }
 0x220   :  { %321 = vrot.lane.b32.xlu1 %v5659_v33, %s6035_s27 }
 0x292   :  { %v322_v34 = vpop.permute.xlu1 %321 }
 0x293   :  { %v324_v35 = vmul.f32 %v5657_v19, %v322_v34 }
 0x295   :  { %404 = vrot.lane.b32.xlu1 %v324_v35, %s6036_s28 }
 0x307   :  { %v405_v38 = vpop.permute.xlu1 %404 }
 0x308   :  { %5147 = vmatmul.mubr.msk.f32.vlgmr.msra.gmra.mxu0 %vm141_vm3, %v405_v38  ;;  %5158 = vmatmul.mubr.msk.f32.vlgmr.msra.gmra.mxu1 %vm141_vm3, %v405_v38 }
 0x309   :  { %5161 = vmatpush3.msk.msra.mxu0 %vm219_vm1, %v6179_v4  ;;  %5162 = vmatprep.mubr.msk.f32.mxu0 %vm6034_vm0, %v6033_v1 }
 0x30a   :  { %5166 = vmatpush3.msra.mxu1 %v6221_v25  ;;  %5176 = vmatprep.subr.mxu0 %v6033_v1 }
 0x30b   :  { %5167 = vmatprep.subr.mxu1 %v6033_v1  ;;  %5173 = vmatprep.mubr.msk.f32.mxu1 %vm6034_vm0, %v6033_v1 }
 0x30c   :  { %5163 = vmatmul.mubr.msk.f32.vlgmr.msra.gmra.mxu0 %vm215_vm2, %v4786_v39  ;;  %5168 = vmatpush3.msra.mxu1 %v6223_v26 }
 0x30d   :  { %5169 = vmatprep.subr.mxu1 %v6033_v1  ;;  %5177 = vmatpush3.msra.mxu0 %v6226_v27 }
 0x30e   :  { %5170 = vmatpush3.msra.mxu1 %v6231_v29  ;;  %5178 = vmatprep.subr.mxu0 %v6033_v1 }
 0x30f   :  { %5171 = vmatprep.subr.mxu1 %v6033_v1  ;;  %5179 = vmatpush3.msra.mxu0 %v6228_v28 }
 0x310   :  { %5172 = vmatpush3.msra.mxu1 %v6239_v31  ;;  %5180 = vmatprep.subr.mxu0 %v6033_v1 }
 0x311   :  { %5187 = vmatprep.subr.mxu1 %v6033_v1  ;;  %5181 = vmatpush3.msra.mxu0 %v6236_v30 }
 0x312   :  { %5182 = vmatprep.subr.mxu0 %v6033_v1  ;;  %5184 = vmatprep.mubr.msk.f32.mxu0 %vm6034_vm0, %v6033_v1 }
 0x313   :  { %5183 = vmatpush3.msra.mxu0 %v6246_v32 }
 0x314   :  { %5198 = vmatprep.subr.mxu0 %v6033_v1 }
 0x3c8   :  { %v474_v40 = vpop.f32.mrf.mxu0  ;;  %v578_v42 = vpop.f32.mrf.mxu1 }
 0x3c9   :  { %v475_v43 = vadd.f32 %v474_v40, %v399_v36 }
 0x3ca   :  { %v5148_v44 = vpop.f32.mrf.mxu0  ;;  %v5159_v45 = vpop.f32.mrf.mxu1 }
 0x3cb   :  { %v485_v46 = vadd.f32 %v6300_v41, %v475_v43 }
 0x3cc   :  { %v651_v47 = vpop.f32.mrf.mxu0 }
 0x3cd   :  { %5660 = vtanh.f32 %v485_v46  ;;  %v652_v48 = vadd.f32 %v651_v47, %v578_v42  ;;  %v4785_v53 = vmul.f32 -1.442695, %v485_v46 }
 0x3ce   :  { %v5164_v49 = vpop.f32.mrf.mxu0 }
 0x3cf   :  { %v655_v50 = vadd.f32 %v6213_v11, %v652_v48 }
 0x3d1   :  { %5662 = vtanh.f32 %v655_v50  ;;  %v4790_v54 = vmul.f32 -1.442695, %v655_v50 }
 0x3d2   :  { %5664 = vpow2.f32 %v4785_v53 }
 0x3d3   :  { %5666 = vpow2.f32 %v4790_v54 }
 0x3da   :  { %v5661_v51 = vpop.eup %5660 }
 0x3db   :  { %495 = vrot.lane.b32.xlu0 %v5661_v51, %s6035_s27 }
 0x3de   :  { %v5663_v52 = vpop.eup %5662 }
 0x3df   :  { %665 = vrot.lane.b32.xlu1 %v5663_v52, %s6035_s27  ;;  %v5665_v55 = vpop.eup %5664 }
 0x3e0   :  { %v489_v56 = vadd.f32 1.0, %v5665_v55  ;;  %v5667_v57 = vpop.eup %5666 }
 0x3e1   :  { %v659_v58 = vadd.f32 1.0, %v5667_v57 }
 0x3e2   :  { %5668 = vrcp.f32 %v489_v56 }
 0x3e3   :  { %5670 = vrcp.f32 %v659_v58 }
 0x3ef   :  { %v5669_v59 = vpop.eup %5668 }
 0x3f0   :  { %v5671_v62 = vpop.eup %5670  ;;  %v493_v5 = vmul.f32 0.0, %v5669_v59 }
 0x3f1   :  { %v663_v10 = vmul.f32 %v5671_v62, %v6218_v24 }
 0x44d   :  { %v496_v60 = vpop.permute.xlu0 %495 }
 0x44e   :  { %v498_v61 = vmul.f32 %v5669_v59, %v496_v60 }
 0x450   :  { %500 = vrot.lane.b32.xlu0 %v498_v61, %s6036_s28 }
 0x451   :  { %v666_v63 = vpop.permute.xlu1 %665 }
 0x452   :  { %v668_v0 = vmul.f32 %v5671_v62, %v666_v63 }
 0x454   :  { %670 = vrot.lane.b32.xlu1 %v668_v0, %s6036_s28 }
 0x4c2   :  { %v501_v8 = vpop.permute.xlu0 %500 }
 0x4c3   :  { %v6308_v9 = vadd.f32 %v501_v8, %v493_v5 }
 0x4c5   :  { %5672 = vtanh.f32 %v6308_v9 }
 0x4c6   :  { %v671_v12 = vpop.permute.xlu1 %670 }
 0x4c7   :  { %v6312_v13 = vadd.f32 %v671_v12, %v663_v10 }
 0x4c9   :  { %5674 = vtanh.f32 %v6312_v13 }
 0x4d2   :  { %v5673_v14 = vpop.eup %5672 }
 0x4d3   :  { %506 = vrot.lane.b32.xlu0 %v5673_v14, %s6035_s27 }
 0x4d6   :  { %v5675_v15 = vpop.eup %5674 }
 0x4d7   :  { %676 = vrot.lane.b32.xlu1 %v5675_v15, %s6035_s27  ;;  %v4802_v15 = vld [vmem:[%s7092_s0 + $0x6] sm:$0x3] }
 0x545   :  { %v507_v16 = vpop.permute.xlu0 %506 }
 0x546   :  { %v509_v17 = vmul.f32 %v5669_v59, %v507_v16 }
 0x548   :  { %681 = vrot.lane.b32.xlu0 %v509_v17, %s6036_s28 }
 0x549   :  { %v677_v18 = vpop.permute.xlu1 %676 }
 0x54a   :  { %v679_v19 = vmul.f32 %v5671_v62, %v677_v18 }
 0x54c   :  { %756 = vrot.lane.b32.xlu1 %v679_v19, %s6036_s28 }
 0x5ba   :  { %v682_v20 = vpop.permute.xlu0 %681 }
 0x5bb   :  { %5174 = vmatmul.mubr.msk.f32.vlgmr.msra.gmra.mxu1 %vm141_vm3, %v682_v20 }
 0x5bc   :  { %5188 = vmatpush3.msra.mxu1 %v6168_v2  ;;  %5195 = vmatprep.mubr.msk.f32.mxu1 %vm6034_vm0, %v6033_v1 }
 0x5bd   :  { %5189 = vmatprep.subr.mxu1 %v6033_v1 }
 0x5be   :  { %5190 = vmatpush3.msra.mxu1 %v6173_v3  ;;  %v757_v21 = vpop.permute.xlu1 %756 }
 0x5bf   :  { %5191 = vmatprep.subr.mxu1 %v6033_v1  ;;  %5185 = vmatmul.mubr.msk.f32.vlgmr.msra.gmra.mxu0 %vm141_vm3, %v757_v21 }
 0x5c0   :  { %5192 = vmatpush3.msra.mxu1 %v6188_v6  ;;  %5199 = vmatpush3.msk.msra.mxu0 %vm219_vm1, %v6179_v4 }
 0x5c1   :  { %5193 = vmatprep.subr.mxu1 %v6033_v1  ;;  %5200 = vmatprep.mubr.msk.f32.mxu0 %vm6034_vm0, %v6033_v1 }
 0x5c2   :  { %5194 = vmatpush3.msra.mxu1 %v6198_v7  ;;  %5203 = vmatprep.subr.mxu0 %v6033_v1 }
 0x5c3   :  { %5196 = vmatmul.mubr.msk.f32.vlgmr.msra.gmra.mxu1 %vm141_vm3, %v757_v21  ;;  %5201 = vmatmul.mubr.msk.f32.vlgmr.msra.gmra.mxu0 %vm215_vm2, %v4794_v22 }
 0x5c4   :  { %5204 = vmatpush3.msra.mxu0 %v6221_v25  ;;  %5214 = vmatprep.subr.mxu1 %v6033_v1 }
 0x5c5   :  { %5205 = vmatprep.subr.mxu0 %v6033_v1  ;;  %5215 = vmatpush3.msra.mxu1 %v6226_v27 }
 0x5c6   :  { %5206 = vmatpush3.msra.mxu0 %v6223_v26  ;;  %5216 = vmatprep.subr.mxu1 %v6033_v1 }
 0x5c7   :  { %5207 = vmatprep.subr.mxu0 %v6033_v1  ;;  %5217 = vmatpush3.msra.mxu1 %v6228_v28 }
 0x5c8   :  { %5208 = vmatpush3.msra.mxu0 %v6231_v29  ;;  %5211 = vmatprep.mubr.msk.f32.mxu0 %vm6034_vm0, %v6033_v1 }
 0x5c9   :  { %5209 = vmatprep.subr.mxu0 %v6033_v1  ;;  %5218 = vmatprep.subr.mxu1 %v6033_v1 }
 0x5ca   :  { %5210 = vmatpush3.msra.mxu0 %v6239_v31  ;;  %5219 = vmatpush3.msra.mxu1 %v6236_v30 }
 0x5cb   :  { %5225 = vmatprep.subr.mxu0 %v6033_v1  ;;  %5220 = vmatprep.subr.mxu1 %v6033_v1 }
 0x5cc   :  { %5221 = vmatpush3.msra.mxu1 %v6246_v32  ;;  %5222 = vmatprep.mubr.msk.f32.mxu1 %vm6034_vm0, %v6033_v1 }
 0x5cd   :  { %5236 = vmatprep.subr.mxu1 %v6033_v1 }
 0x67b   :  { %v751_v23 = vpop.f32.mrf.mxu1 }
 0x67d   :  { %v5175_v24 = vpop.f32.mrf.mxu1 }
 0x67f   :  { %v826_v33 = vpop.f32.mrf.mxu0 }
 0x680   :  { %v827_v34 = vadd.f32 %v826_v33, %v751_v23 }
 0x681   :  { %v5186_v35 = vpop.f32.mrf.mxu0 }
 0x682   :  { %v830_v36 = vadd.f32 %v6300_v41, %v827_v34 }
 0x683   :  { %v923_v37 = vpop.f32.mrf.mxu1  ;;  %v996_v38 = vpop.f32.mrf.mxu0 }
 0x684   :  { %5676 = vtanh.f32 %v830_v36  ;;  %v997_v39 = vadd.f32 %v996_v38, %v923_v37  ;;  %v4793_v46 = vmul.f32 -1.442695, %v830_v36 }
 0x685   :  { %v5197_v40 = vpop.f32.mrf.mxu1  ;;  %v5202_v42 = vpop.f32.mrf.mxu0 }
 0x686   :  { %v1000_v43 = vadd.f32 %v6213_v11, %v997_v39 }
 0x688   :  { %5678 = vtanh.f32 %v1000_v43  ;;  %v4798_v47 = vmul.f32 -1.442695, %v1000_v43 }
 0x689   :  { %5680 = vpow2.f32 %v4793_v46 }
 0x68a   :  { %5682 = vpow2.f32 %v4798_v47 }
 0x691   :  { %v5677_v44 = vpop.eup %5676 }
 0x692   :  { %840 = vrot.lane.b32.xlu0 %v5677_v44, %s6035_s27 }
 0x695   :  { %v5679_v45 = vpop.eup %5678 }
 0x696   :  { %1010 = vrot.lane.b32.xlu1 %v5679_v45, %s6035_s27  ;;  %v5681_v48 = vpop.eup %5680 }
 0x697   :  { %v834_v49 = vadd.f32 1.0, %v5681_v48  ;;  %v5683_v50 = vpop.eup %5682 }
 0x698   :  { %v1004_v51 = vadd.f32 1.0, %v5683_v50 }
 0x699   :  { %5684 = vrcp.f32 %v834_v49 }
 0x69a   :  { %5686 = vrcp.f32 %v1004_v51 }
 0x6a6   :  { %v5685_v52 = vpop.eup %5684 }
 0x6a7   :  { %v5687_v55 = vpop.eup %5686  ;;  %v838_v58 = vmul.f32 %v5685_v52, %v6308_v9 }
 0x6a8   :  { %v1008_v61 = vmul.f32 %v5687_v55, %v6312_v13 }
 0x704   :  { %v841_v53 = vpop.permute.xlu0 %840 }
 0x705   :  { %v843_v54 = vmul.f32 %v5685_v52, %v841_v53 }
 0x707   :  { %845 = vrot.lane.b32.xlu0 %v843_v54, %s6036_s28 }
 0x708   :  { %v1011_v56 = vpop.permute.xlu1 %1010 }
 0x709   :  { %v1013_v57 = vmul.f32 %v5687_v55, %v1011_v56 }
 0x70b   :  { %1015 = vrot.lane.b32.xlu1 %v1013_v57, %s6036_s28 }
 0x779   :  { %v846_v59 = vpop.permute.xlu0 %845 }
 0x77a   :  { %v6368_v60 = vadd.f32 %v846_v59, %v838_v58 }
 0x77c   :  { %5688 = vtanh.f32 %v6368_v60 }
 0x77d   :  { %v1016_v62 = vpop.permute.xlu1 %1015 }
 0x77e   :  { %v6372_v63 = vadd.f32 %v1016_v62, %v1008_v61 }
 0x780   :  { %5690 = vtanh.f32 %v6372_v63 }
 0x789   :  { %v5689_v0 = vpop.eup %5688 }
 0x78a   :  { %851 = vrot.lane.b32.xlu0 %v5689_v0, %s6035_s27 }
 0x78d   :  { %v5691_v5 = vpop.eup %5690 }
 0x78e   :  { %1021 = vrot.lane.b32.xlu1 %v5691_v5, %s6035_s27  ;;  %v4810_v5 = vld [vmem:[%s7092_s0 + $0x8] sm:$0x3] }
 0x7fc   :  { %v852_v8 = vpop.permute.xlu0 %851 }
 0x7fd   :  { %v854_v9 = vmul.f32 %v5685_v52, %v852_v8 }
 0x7ff   :  { %1026 = vrot.lane.b32.xlu0 %v854_v9, %s6036_s28 }
 0x800   :  { %v1022_v10 = vpop.permute.xlu1 %1021 }
 0x801   :  { %v1024_v12 = vmul.f32 %v5687_v55, %v1022_v10 }
 0x803   :  { %1101 = vrot.lane.b32.xlu1 %v1024_v12, %s6036_s28 }
 0x871   :  { %v1027_v13 = vpop.permute.xlu0 %1026 }
 0x872   :  { %5212 = vmatmul.mubr.msk.f32.vlgmr.msra.gmra.mxu0 %vm141_vm3, %v1027_v13 }
 0x873   :  { %5226 = vmatpush3.msra.mxu0 %v6168_v2  ;;  %5233 = vmatprep.mubr.msk.f32.mxu0 %vm6034_vm0, %v6033_v1 }
 0x874   :  { %5227 = vmatprep.subr.mxu0 %v6033_v1 }
 0x875   :  { %5228 = vmatpush3.msra.mxu0 %v6173_v3  ;;  %v1102_v14 = vpop.permute.xlu1 %1101 }
 0x876   :  { %5229 = vmatprep.subr.mxu0 %v6033_v1  ;;  %5223 = vmatmul.mubr.msk.f32.vlgmr.msra.gmra.mxu1 %vm141_vm3, %v1102_v14 }
 0x877   :  { %5230 = vmatpush3.msra.mxu0 %v6188_v6  ;;  %5237 = vmatpush3.msk.msra.mxu1 %vm219_vm1, %v6179_v4 }
 0x878   :  { %5231 = vmatprep.subr.mxu0 %v6033_v1  ;;  %5238 = vmatprep.mubr.msk.f32.mxu1 %vm6034_vm0, %v6033_v1 }
 0x879   :  { %5232 = vmatpush3.msra.mxu0 %v6198_v7  ;;  %5241 = vmatprep.subr.mxu1 %v6033_v1 }
 0x87a   :  { %5234 = vmatmul.mubr.msk.f32.vlgmr.msra.gmra.mxu0 %vm141_vm3, %v1102_v14  ;;  %5239 = vmatmul.mubr.msk.f32.vlgmr.msra.gmra.mxu1 %vm215_vm2, %v4802_v15 }
 0x87b   :  { %5242 = vmatpush3.msra.mxu1 %v6221_v25  ;;  %5252 = vmatprep.subr.mxu0 %v6033_v1 }
 0x87c   :  { %5243 = vmatprep.subr.mxu1 %v6033_v1  ;;  %5253 = vmatpush3.msra.mxu0 %v6226_v27 }
 0x87d   :  { %5244 = vmatpush3.msra.mxu1 %v6223_v26  ;;  %5254 = vmatprep.subr.mxu0 %v6033_v1 }
 0x87e   :  { %5245 = vmatprep.subr.mxu1 %v6033_v1  ;;  %5255 = vmatpush3.msra.mxu0 %v6228_v28 }
 0x87f   :  { %5246 = vmatpush3.msra.mxu1 %v6231_v29  ;;  %5249 = vmatprep.mubr.msk.f32.mxu1 %vm6034_vm0, %v6033_v1 }
 0x880   :  { %5247 = vmatprep.subr.mxu1 %v6033_v1  ;;  %5256 = vmatprep.subr.mxu0 %v6033_v1 }
 0x881   :  { %5248 = vmatpush3.msra.mxu1 %v6239_v31  ;;  %5257 = vmatpush3.msra.mxu0 %v6236_v30 }
 0x882   :  { %5263 = vmatprep.subr.mxu1 %v6033_v1  ;;  %5258 = vmatprep.subr.mxu0 %v6033_v1 }
 0x883   :  { %5259 = vmatpush3.msra.mxu0 %v6246_v32  ;;  %5260 = vmatprep.mubr.msk.f32.mxu0 %vm6034_vm0, %v6033_v1 }
 0x884   :  { %5274 = vmatprep.subr.mxu0 %v6033_v1 }
 0x932   :  { %v1096_v16 = vpop.f32.mrf.mxu0 }
 0x934   :  { %v5213_v17 = vpop.f32.mrf.mxu0 }
 0x936   :  { %v1171_v18 = vpop.f32.mrf.mxu1 }
 0x937   :  { %v1172_v19 = vadd.f32 %v1171_v18, %v1096_v16 }
 0x938   :  { %v5224_v20 = vpop.f32.mrf.mxu1 }
 0x939   :  { %v1175_v21 = vadd.f32 %v6300_v41, %v1172_v19 }
 0x93a   :  { %v1268_v22 = vpop.f32.mrf.mxu0  ;;  %v1341_v23 = vpop.f32.mrf.mxu1 }
 0x93b   :  { %5692 = vtanh.f32 %v1175_v21  ;;  %v1342_v24 = vadd.f32 %v1341_v23, %v1268_v22  ;;  %v4801_v38 = vmul.f32 -1.442695, %v1175_v21 }
 0x93c   :  { %v5235_v33 = vpop.f32.mrf.mxu0  ;;  %v5240_v34 = vpop.f32.mrf.mxu1 }
 0x93d   :  { %v1345_v35 = vadd.f32 %v6213_v11, %v1342_v24 }
 0x93f   :  { %5694 = vtanh.f32 %v1345_v35  ;;  %v4806_v39 = vmul.f32 -1.442695, %v1345_v35 }
 0x940   :  { %5696 = vpow2.f32 %v4801_v38 }
 0x941   :  { %5698 = vpow2.f32 %v4806_v39 }
 0x948   :  { %v5693_v36 = vpop.eup %5692 }
 0x949   :  { %1185 = vrot.lane.b32.xlu0 %v5693_v36, %s6035_s27 }
 0x94c   :  { %v5695_v37 = vpop.eup %5694 }
 0x94d   :  { %1355 = vrot.lane.b32.xlu1 %v5695_v37, %s6035_s27  ;;  %v5697_v40 = vpop.eup %5696 }
 0x94e   :  { %v1179_v42 = vadd.f32 1.0, %v5697_v40  ;;  %v5699_v43 = vpop.eup %5698 }
 0x94f   :  { %v1349_v44 = vadd.f32 1.0, %v5699_v43 }
 0x950   :  { %5700 = vrcp.f32 %v1179_v42 }
 0x951   :  { %5702 = vrcp.f32 %v1349_v44 }
 0x95d   :  { %v5701_v45 = vpop.eup %5700 }
 0x95e   :  { %v5703_v48 = vpop.eup %5702  ;;  %v1183_v51 = vmul.f32 %v5701_v45, %v6368_v60 }
 0x95f   :  { %v1353_v54 = vmul.f32 %v5703_v48, %v6372_v63 }
 0x9bb   :  { %v1186_v46 = vpop.permute.xlu0 %1185 }
 0x9bc   :  { %v1188_v47 = vmul.f32 %v5701_v45, %v1186_v46 }
 0x9be   :  { %1190 = vrot.lane.b32.xlu0 %v1188_v47, %s6036_s28 }
 0x9bf   :  { %v1356_v49 = vpop.permute.xlu1 %1355 }
 0x9c0   :  { %v1358_v50 = vmul.f32 %v5703_v48, %v1356_v49 }
 0x9c2   :  { %1360 = vrot.lane.b32.xlu1 %v1358_v50, %s6036_s28 }
 0xa30   :  { %v1191_v52 = vpop.permute.xlu0 %1190 }
 0xa31   :  { %v6428_v53 = vadd.f32 %v1191_v52, %v1183_v51 }
 0xa33   :  { %5704 = vtanh.f32 %v6428_v53 }
 0xa34   :  { %v1361_v55 = vpop.permute.xlu1 %1360 }
 0xa35   :  { %v6432_v56 = vadd.f32 %v1361_v55, %v1353_v54 }
 0xa37   :  { %5706 = vtanh.f32 %v6432_v56 }
 0xa40   :  { %v5705_v57 = vpop.eup %5704 }
 0xa41   :  { %1196 = vrot.lane.b32.xlu0 %v5705_v57, %s6035_s27 }
 0xa44   :  { %v5707_v58 = vpop.eup %5706 }
 0xa45   :  { %1366 = vrot.lane.b32.xlu1 %v5707_v58, %s6035_s27 }
 0xab3   :  { %v1197_v59 = vpop.permute.xlu0 %1196 }
 0xab4   :  { %v1199_v60 = vmul.f32 %v5701_v45, %v1197_v59 }
 0xab6   :  { %1371 = vrot.lane.b32.xlu0 %v1199_v60, %s6036_s28 }
 0xab7   :  { %v1367_v61 = vpop.permute.xlu1 %1366 }
 0xab8   :  { %v1369_v62 = vmul.f32 %v5703_v48, %v1367_v61 }
 0xaba   :  { %1446 = vrot.lane.b32.xlu1 %v1369_v62, %s6036_s28 }
 0xb28   :  { %v1372_v63 = vpop.permute.xlu0 %1371 }
 0xb29   :  { %5250 = vmatmul.mubr.msk.f32.vlgmr.msra.gmra.mxu1 %vm141_vm3, %v1372_v63 }
 0xb2a   :  { %5264 = vmatpush3.msra.mxu1 %v6168_v2  ;;  %5271 = vmatprep.mubr.msk.f32.mxu1 %vm6034_vm0, %v6033_v1 }
 0xb2b   :  { %5265 = vmatprep.subr.mxu1 %v6033_v1 }
 0xb2c   :  { %5266 = vmatpush3.msra.mxu1 %v6173_v3  ;;  %v1447_v0 = vpop.permute.xlu1 %1446 }
 0xb2d   :  { %5267 = vmatprep.subr.mxu1 %v6033_v1  ;;  %5261 = vmatmul.mubr.msk.f32.vlgmr.msra.gmra.mxu0 %vm141_vm3, %v1447_v0 }
 0xb2e   :  { %5268 = vmatpush3.msra.mxu1 %v6188_v6  ;;  %5275 = vmatpush3.msk.msra.mxu0 %vm219_vm1, %v6179_v4 }
 0xb2f   :  { %5269 = vmatprep.subr.mxu1 %v6033_v1  ;;  %5276 = vmatprep.mubr.msk.f32.mxu0 %vm6034_vm0, %v6033_v1 }
 0xb30   :  { %5270 = vmatpush3.msra.mxu1 %v6198_v7  ;;  %5279 = vmatprep.subr.mxu0 %v6033_v1 }
 0xb31   :  { %5272 = vmatmul.mubr.msk.f32.vlgmr.msra.gmra.mxu1 %vm141_vm3, %v1447_v0  ;;  %5277 = vmatmul.mubr.msk.f32.vlgmr.msra.gmra.mxu0 %vm215_vm2, %v4810_v5 }
 0xb32   :  { %5280 = vmatpush3.msra.mxu0 %v6221_v25  ;;  %5290 = vmatprep.subr.mxu1 %v6033_v1 }
 0xb33   :  { %5281 = vmatprep.subr.mxu0 %v6033_v1  ;;  %5291 = vmatpush3.msra.mxu1 %v6226_v27 }
 0xb34   :  { %5282 = vmatpush3.msra.mxu0 %v6223_v26  ;;  %5292 = vmatprep.subr.mxu1 %v6033_v1 }
 0xb35   :  { %5283 = vmatprep.subr.mxu0 %v6033_v1  ;;  %5293 = vmatpush3.msra.mxu1 %v6228_v28 }
 0xb36   :  { %5284 = vmatpush3.msra.mxu0 %v6231_v29  ;;  %5287 = vmatprep.mubr.msk.f32.mxu0 %vm6034_vm0, %v6033_v1 }
 0xb37   :  { %5285 = vmatprep.subr.mxu0 %v6033_v1  ;;  %5294 = vmatprep.subr.mxu1 %v6033_v1 }
 0xb38   :  { %5286 = vmatpush3.msra.mxu0 %v6239_v31  ;;  %5295 = vmatpush3.msra.mxu1 %v6236_v30 }
 0xb39   :  { %5301 = vmatprep.subr.mxu0 %v6033_v1  ;;  %5296 = vmatprep.subr.mxu1 %v6033_v1 }
 0xb3a   :  { %5297 = vmatpush3.msra.mxu1 %v6246_v32  ;;  %5298 = vmatprep.mubr.msk.f32.mxu1 %vm6034_vm0, %v6033_v1 }
 0xb3b   :  { %5312 = vmatprep.subr.mxu1 %v6033_v1 }
 0xbe9   :  { %v1441_v8 = vpop.f32.mrf.mxu1 }
 0xbeb   :  { %v5251_v9 = vpop.f32.mrf.mxu1 }
 0xbed   :  { %v1516_v10 = vpop.f32.mrf.mxu0 }
 0xbee   :  { %v1517_v12 = vadd.f32 %v1516_v10, %v1441_v8 }
 0xbef   :  { %v5262_v13 = vpop.f32.mrf.mxu0 }
 0xbf0   :  { %v1520_v14 = vadd.f32 %v6300_v41, %v1517_v12 }
 0xbf1   :  { %v1613_v15 = vpop.f32.mrf.mxu1  ;;  %v1686_v16 = vpop.f32.mrf.mxu0 }
 0xbf2   :  { %5708 = vtanh.f32 %v1520_v14  ;;  %v1687_v17 = vadd.f32 %v1686_v16, %v1613_v15  ;;  %v4809_v23 = vmul.f32 -1.442695, %v1520_v14 }
 0xbf3   :  { %v5273_v18 = vpop.f32.mrf.mxu1  ;;  %v5278_v19 = vpop.f32.mrf.mxu0 }
 0xbf4   :  { %v1690_v20 = vadd.f32 %v6213_v11, %v1687_v17 }
 0xbf6   :  { %5710 = vtanh.f32 %v1690_v20  ;;  %v4814_v24 = vmul.f32 -1.442695, %v1690_v20 }
 0xbf7   :  { %5712 = vpow2.f32 %v4809_v23 }
 0xbf8   :  { %5714 = vpow2.f32 %v4814_v24 }
 0xbff   :  { %v5709_v21 = vpop.eup %5708 }
 0xc00   :  { %1530 = vrot.lane.b32.xlu0 %v5709_v21, %s6035_s27 }
 0xc03   :  { %v5711_v22 = vpop.eup %5710 }
 0xc04   :  { %1700 = vrot.lane.b32.xlu1 %v5711_v22, %s6035_s27  ;;  %v5713_v33 = vpop.eup %5712 }
 0xc05   :  { %v1524_v34 = vadd.f32 1.0, %v5713_v33  ;;  %v5715_v35 = vpop.eup %5714 }
 0xc06   :  { %v1694_v36 = vadd.f32 1.0, %v5715_v35 }
 0xc07   :  { %5716 = vrcp.f32 %v1524_v34 }
 0xc08   :  { %5718 = vrcp.f32 %v1694_v36 }
 0xc14   :  { %v5717_v37 = vpop.eup %5716 }
 0xc15   :  { %v5719_v40 = vpop.eup %5718  ;;  %v1528_v44 = vmul.f32 %v5717_v37, %v6428_v53 }
 0xc16   :  { %v1698_v47 = vmul.f32 %v5719_v40, %v6432_v56 }
 0xc72   :  { %v1531_v38 = vpop.permute.xlu0 %1530 }
 0xc73   :  { %v1533_v39 = vmul.f32 %v5717_v37, %v1531_v38 }
 0xc75   :  { %1535 = vrot.lane.b32.xlu0 %v1533_v39, %s6036_s28 }
 0xc76   :  { %v1701_v42 = vpop.permute.xlu1 %1700 }
 0xc77   :  { %v1703_v43 = vmul.f32 %v5719_v40, %v1701_v42 }
 0xc79   :  { %1705 = vrot.lane.b32.xlu1 %v1703_v43, %s6036_s28 }
 0xce7   :  { %v1536_v45 = vpop.permute.xlu0 %1535 }
 0xce8   :  { %v6488_v46 = vadd.f32 %v1536_v45, %v1528_v44  ;;  %v6563_v44 = vld [vmem:[%s7094_s2 + $0x18] sm:$0xff]  ;;  %v6572_v45 = vld [vmem:[%s7094_s2 + $0x10] sm:$0xff] }
 0xcea   :  { %5720 = vtanh.f32 %v6488_v46 }
 0xceb   :  { %v1706_v48 = vpop.permute.xlu1 %1705 }
 0xcec   :  { %v6492_v49 = vadd.f32 %v1706_v48, %v1698_v47  ;;  %v6580_v47 = vld [vmem:[%s7094_s2 + $0x8] sm:$0xff]  ;;  %v6586_v48 = vld [vmem:[%s7093_s1] sm:$0xf] }
 0xcee   :  { %5722 = vtanh.f32 %v6492_v49 }
 0xcf7   :  { %v5721_v50 = vpop.eup %5720 }
 0xcf8   :  { %1541 = vrot.lane.b32.xlu0 %v5721_v50, %s6035_s27  ;;  %v6599_v50 = vld [vmem:[%s7094_s2] sm:$0xff] }
 0xcfb   :  { %v5723_v51 = vpop.eup %5722 }
 0xcfc   :  { %1711 = vrot.lane.b32.xlu1 %v5723_v51, %s6035_s27 }
 0xd6a   :  { %v1542_v52 = vpop.permute.xlu0 %1541 }
 0xd6b   :  { %v1544_v53 = vmul.f32 %v5717_v37, %v1542_v52 }
 0xd6d   :  { %1716 = vrot.lane.b32.xlu0 %v1544_v53, %s6036_s28 }
 0xd6e   :  { %v1712_v54 = vpop.permute.xlu1 %1711 }
 0xd6f   :  { %v1714_v55 = vmul.f32 %v5719_v40, %v1712_v54 }
 0xd71   :  { %1791 = vrot.lane.b32.xlu1 %v1714_v55, %s6036_s28 }
 0xddf   :  { %v1717_v56 = vpop.permute.xlu0 %1716 }
 0xde0   :  { %5288 = vmatmul.mubr.msk.f32.vlgmr.msra.gmra.mxu0 %vm141_vm3, %v1717_v56 }
 0xde1   :  { %5302 = vmatpush3.msra.mxu0 %v6168_v2  ;;  %5309 = vmatprep.mubr.msk.f32.mxu0 %vm6034_vm0, %v6033_v1  ;;  %v4818_v2 = vld [vmem:[%s7092_s0 + $0xa] sm:$0x3] }
 0xde2   :  { %5303 = vmatprep.subr.mxu0 %v6033_v1 }
 0xde3   :  { %5304 = vmatpush3.msra.mxu0 %v6173_v3  ;;  %v1792_v57 = vpop.permute.xlu1 %1791 }
 0xde4   :  { %5305 = vmatprep.subr.mxu0 %v6033_v1  ;;  %5299 = vmatmul.mubr.msk.f32.vlgmr.msra.gmra.mxu1 %vm141_vm3, %v1792_v57 }
 0xde5   :  { %5306 = vmatpush3.msra.mxu0 %v6188_v6  ;;  %5313 = vmatpush3.msk.msra.mxu1 %vm219_vm1, %v6179_v4 }
 0xde6   :  { %5307 = vmatprep.subr.mxu0 %v6033_v1  ;;  %5314 = vmatprep.mubr.msk.f32.mxu1 %vm6034_vm0, %v6033_v1 }
 0xde7   :  { %5308 = vmatpush3.msra.mxu0 %v6198_v7  ;;  %5317 = vmatprep.subr.mxu1 %v6033_v1 }
 0xde8   :  { %5310 = vmatmul.mubr.msk.f32.vlgmr.msra.gmra.mxu0 %vm141_vm3, %v1792_v57  ;;  %5315 = vmatmul.mubr.msk.f32.vlgmr.msra.gmra.mxu1 %vm215_vm2, %v4818_v2 }
 0xde9   :  { %5318 = vmatpush3.msra.mxu1 %v6221_v25  ;;  %5328 = vmatprep.subr.mxu0 %v6033_v1 }
 0xdea   :  { %5319 = vmatprep.subr.mxu1 %v6033_v1  ;;  %5329 = vmatpush3.msra.mxu0 %v6226_v27 }
 0xdeb   :  { %5320 = vmatpush3.msra.mxu1 %v6223_v26  ;;  %5330 = vmatprep.subr.mxu0 %v6033_v1 }
 0xdec   :  { %5321 = vmatprep.subr.mxu1 %v6033_v1  ;;  %5331 = vmatpush3.msra.mxu0 %v6228_v28 }
 0xded   :  { %5322 = vmatpush3.msra.mxu1 %v6231_v29  ;;  %5325 = vmatprep.mubr.msk.f32.mxu1 %vm6034_vm0, %v6033_v1 }
 0xdee   :  { %5323 = vmatprep.subr.mxu1 %v6033_v1  ;;  %5332 = vmatprep.subr.mxu0 %v6033_v1 }
 0xdef   :  { %5324 = vmatpush3.msra.mxu1 %v6239_v31  ;;  %5333 = vmatpush3.msra.mxu0 %v6236_v30 }
 0xdf0   :  { %5339 = vmatprep.subr.mxu1 %v6033_v1  ;;  %5334 = vmatprep.subr.mxu0 %v6033_v1 }
 0xdf1   :  { %5335 = vmatpush3.msra.mxu0 %v6246_v32  ;;  %5336 = vmatprep.mubr.msk.f32.mxu0 %vm6034_vm0, %v6033_v1 }
 0xdf2   :  { %5350 = vmatprep.subr.mxu0 %v6033_v1 }
 0xea0   :  { %v1786_v3 = vpop.f32.mrf.mxu0 }
 0xea2   :  { %v5289_v4 = vpop.f32.mrf.mxu0 }
 0xea4   :  { %v1861_v6 = vpop.f32.mrf.mxu1 }
 0xea5   :  { %v1862_v7 = vadd.f32 %v1861_v6, %v1786_v3 }
 0xea6   :  { %v5300_v58 = vpop.f32.mrf.mxu1 }
 0xea7   :  { %v1865_v59 = vadd.f32 %v6300_v41, %v1862_v7 }
 0xea8   :  { %v1958_v60 = vpop.f32.mrf.mxu0  ;;  %v2031_v61 = vpop.f32.mrf.mxu1 }
 0xea9   :  { %5724 = vtanh.f32 %v1865_v59  ;;  %v2032_v62 = vadd.f32 %v2031_v61, %v1958_v60  ;;  %v4817_v10 = vmul.f32 -1.442695, %v1865_v59 }
 0xeaa   :  { %v5311_v63 = vpop.f32.mrf.mxu0  ;;  %v5316_v0 = vpop.f32.mrf.mxu1 }
 0xeab   :  { %v2035_v5 = vadd.f32 %v6213_v11, %v2032_v62 }
 0xead   :  { %5726 = vtanh.f32 %v2035_v5  ;;  %v4822_v12 = vmul.f32 -1.442695, %v2035_v5 }
 0xeae   :  { %5728 = vpow2.f32 %v4817_v10 }
 0xeaf   :  { %5730 = vpow2.f32 %v4822_v12 }
 0xeb6   :  { %v5725_v8 = vpop.eup %5724 }
 0xeb7   :  { %1875 = vrot.lane.b32.xlu0 %v5725_v8, %s6035_s27 }
 0xeba   :  { %v5727_v9 = vpop.eup %5726 }
 0xebb   :  { %2045 = vrot.lane.b32.xlu1 %v5727_v9, %s6035_s27  ;;  %v5729_v13 = vpop.eup %5728 }
 0xebc   :  { %v1869_v14 = vadd.f32 1.0, %v5729_v13  ;;  %v5731_v15 = vpop.eup %5730 }
 0xebd   :  { %v2039_v16 = vadd.f32 1.0, %v5731_v15 }
 0xebe   :  { %5732 = vrcp.f32 %v1869_v14 }
 0xebf   :  { %5734 = vrcp.f32 %v2039_v16 }
 0xecb   :  { %v5733_v17 = vpop.eup %5732 }
 0xecc   :  { %v5735_v19 = vpop.eup %5734  ;;  %v1873_v22 = vmul.f32 %v5733_v17, %v6488_v46 }
 0xecd   :  { %v2043_v33 = vmul.f32 %v5735_v19, %v6492_v49  ;;  %v4826_v49 = vld [vmem:[%s7092_s0 + $0xc] sm:$0x3] }
 0xf29   :  { %v1876_v18 = vpop.permute.xlu0 %1875 }
 0xf2a   :  { %v1878_v11 = vmul.f32 %v5733_v17, %v1876_v18 }
 0xf2c   :  { %1880 = vrot.lane.b32.xlu0 %v1878_v11, %s6036_s28 }
 0xf2d   :  { %v2046_v20 = vpop.permute.xlu1 %2045 }
 0xf2e   :  { %v2048_v21 = vmul.f32 %v5735_v19, %v2046_v20  ;;  %v4834_v20 = vld [vmem:[%s7092_s0 + $0xe] sm:$0x3] }
 0xf30   :  { %2050 = vrot.lane.b32.xlu1 %v2048_v21, %s6036_s28  ;;  %v5866_v21 = vld [vmem:[#allocation6 + $0x18] sm:$0xff] }
 0xf9e   :  { %v1881_v23 = vpop.permute.xlu0 %1880 }
 0xf9f   :  { %v6548_v24 = vadd.f32 %v1881_v23, %v1873_v22  ;;  %v5867_v22 = vld [vmem:[#allocation3 + $0x18] sm:$0xff]  ;;  %v5868_v23 = vld [vmem:[#allocation6 + $0x10] sm:$0xff] }
 0xfa1   :  { %5736 = vtanh.f32 %v6548_v24 }
 0xfa2   :  { %v2051_v34 = vpop.permute.xlu1 %2050 }
 0xfa3   :  { %v6552_v35 = vadd.f32 %v2051_v34, %v2043_v33  ;;  %v5870_v33 = vld [vmem:[#allocation6 + $0x8] sm:$0xff]  ;;  %v5871_v34 = vld [vmem:[#allocation6] sm:$0xff] }
 0xfa5   :  { %5738 = vtanh.f32 %v6552_v35 }
 0xfae   :  { %v5737_v36 = vpop.eup %5736 }
 0xfaf   :  { %1886 = vrot.lane.b32.xlu0 %v5737_v36, %s6035_s27  ;;  %v5873_v36 = vld [vmem:[#allocation3] sm:$0xff] }
 0xfb2   :  { %v5739_v37 = vpop.eup %5738 }
 0xfb3   :  { %2056 = vrot.lane.b32.xlu1 %v5739_v37, %s6035_s27 }
0x1021   :  { %v1887_v38 = vpop.permute.xlu0 %1886 }
0x1022   :  { %v1889_v39 = vmul.f32 %v5733_v17, %v1887_v38 }
0x1024   :  { %2061 = vrot.lane.b32.xlu0 %v1889_v39, %s6036_s28 }
0x1025   :  { %v2057_v40 = vpop.permute.xlu1 %2056 }
0x1026   :  { %v2059_v42 = vmul.f32 %v5735_v19, %v2057_v40 }
0x1028   :  { %2136 = vrot.lane.b32.xlu1 %v2059_v42, %s6036_s28 }
0x1096   :  { %v2062_v43 = vpop.permute.xlu0 %2061 }
0x1097   :  { %5326 = vmatmul.mubr.msk.f32.vlgmr.msra.gmra.mxu1 %vm141_vm3, %v2062_v43  ;;  %v6686_v43 = vld [vmem:[%s7098_s6] ss:$0 sm:$0xff] }
0x1098   :  { %5340 = vmatpush3.msra.mxu1 %v6563_v44  ;;  %5347 = vmatprep.mubr.msk.f32.mxu1 %vm6034_vm0, %v6033_v1 }
0x1099   :  { %5341 = vmatprep.subr.mxu1 %v6033_v1 }
0x109a   :  { %5342 = vmatpush3.msra.mxu1 %v6572_v45  ;;  %v2137_v46 = vpop.permute.xlu1 %2136 }
0x109b   :  { %5343 = vmatprep.subr.mxu1 %v6033_v1  ;;  %5337 = vmatmul.mubr.msk.f32.vlgmr.msra.gmra.mxu0 %vm141_vm3, %v2137_v46 }
0x109c   :  { %5344 = vmatpush3.msra.mxu1 %v6580_v47  ;;  %5351 = vmatpush3.msk.msra.mxu0 %vm219_vm1, %v6586_v48 }
0x109d   :  { %5345 = vmatprep.subr.mxu1 %v6033_v1  ;;  %5352 = vmatprep.mubr.msk.f32.mxu0 %vm6034_vm0, %v6033_v1 }
0x109e   :  { %5346 = vmatpush3.msra.mxu1 %v6599_v50  ;;  %5355 = vmatprep.subr.mxu0 %v6033_v1 }
0x109f   :  { %5348 = vmatmul.mubr.msk.f32.vlgmr.msra.gmra.mxu1 %vm141_vm3, %v2137_v46  ;;  %5353 = vmatmul.mubr.msk.f32.vlgmr.msra.gmra.mxu0 %vm215_vm2, %v4826_v49 }
0x10a0   :  { %5356 = vmatpush3.msra.mxu0 %v6221_v25  ;;  %5366 = vmatprep.subr.mxu1 %v6033_v1 }
0x10a1   :  { %5357 = vmatprep.subr.mxu0 %v6033_v1  ;;  %5367 = vmatpush3.msra.mxu1 %v6226_v27 }
0x10a2   :  { %5358 = vmatpush3.msra.mxu0 %v6223_v26  ;;  %5368 = vmatprep.subr.mxu1 %v6033_v1 }
0x10a3   :  { %5359 = vmatprep.subr.mxu0 %v6033_v1  ;;  %5369 = vmatpush3.msra.mxu1 %v6228_v28 }
0x10a4   :  { %5360 = vmatpush3.msra.mxu0 %v6231_v29  ;;  %5363 = vmatprep.mubr.msk.f32.mxu0 %vm6034_vm0, %v6033_v1 }
0x10a5   :  { %5361 = vmatprep.subr.mxu0 %v6033_v1  ;;  %5370 = vmatprep.subr.mxu1 %v6033_v1 }
0x10a6   :  { %5362 = vmatpush3.msra.mxu0 %v6239_v31  ;;  %5371 = vmatpush3.msra.mxu1 %v6236_v30 }
0x10a7   :  { %5377 = vmatprep.subr.mxu0 %v6033_v1  ;;  %5372 = vmatprep.subr.mxu1 %v6033_v1 }
0x10a8   :  { %5373 = vmatpush3.msra.mxu1 %v6246_v32  ;;  %5374 = vmatprep.mubr.msk.f32.mxu1 %vm6034_vm0, %v6033_v1  ;;  %v6630_v32 = vld [vmem:[%s7095_s3] ss:$0 sm:$0xff] }
0x10a9   :  { %5388 = vmatprep.subr.mxu1 %v6033_v1 }
0x1157   :  { %v2131_v25 = vpop.f32.mrf.mxu1 }
0x1159   :  { %v5327_v26 = vpop.f32.mrf.mxu1 }
0x115b   :  { %v2206_v27 = vpop.f32.mrf.mxu0 }
0x115c   :  { %v2207_v28 = vadd.f32 %v2206_v27, %v2131_v25 }
0x115d   :  { %v5338_v29 = vpop.f32.mrf.mxu0 }
0x115e   :  { %v2210_v31 = vadd.f32 %v6300_v41, %v2207_v28 }
0x115f   :  { %v2303_v51 = vpop.f32.mrf.mxu1  ;;  %v2376_v30 = vpop.f32.mrf.mxu0 }
0x1160   :  { %5740 = vtanh.f32 %v2210_v31  ;;  %v2377_v52 = vadd.f32 %v2376_v30, %v2303_v51  ;;  %v4825_v41 = vmul.f32 -1.442695, %v2210_v31 }
0x1161   :  { %v5349_v53 = vpop.f32.mrf.mxu1  ;;  %v5354_v54 = vpop.f32.mrf.mxu0 }
0x1162   :  { %v2380_v55 = vadd.f32 %v6630_v32, %v2377_v52 }
0x1164   :  { %5742 = vtanh.f32 %v2380_v55  ;;  %v4830_v2 = vmul.f32 -1.442695, %v2380_v55 }
0x1165   :  { %5744 = vpow2.f32 %v4825_v41 }
0x1166   :  { %5746 = vpow2.f32 %v4830_v2 }
0x116d   :  { %v5741_v56 = vpop.eup %5740 }
0x116e   :  { %2220 = vrot.lane.b32.xlu0 %v5741_v56, %s6035_s27 }
0x1171   :  { %v5743_v57 = vpop.eup %5742 }
0x1172   :  { %2390 = vrot.lane.b32.xlu1 %v5743_v57, %s6035_s27  ;;  %v5745_v3 = vpop.eup %5744 }
0x1173   :  { %v2214_v4 = vadd.f32 1.0, %v5745_v3  ;;  %v5747_v6 = vpop.eup %5746 }
0x1174   :  { %v2384_v7 = vadd.f32 1.0, %v5747_v6 }
0x1175   :  { %5748 = vrcp.f32 %v2214_v4 }
0x1176   :  { %5750 = vrcp.f32 %v2384_v7 }
0x1182   :  { %v5749_v58 = vpop.eup %5748 }
0x1183   :  { %v5751_v61 = vpop.eup %5750  ;;  %v2218_v0 = vmul.f32 %v5749_v58, %v6548_v24  ;;  %v5869_v24 = vld [vmem:[#allocation3 + $0x10] sm:$0xff] }
0x1184   :  { %v2388_v9 = vmul.f32 %v5751_v61, %v6552_v35  ;;  %v5872_v35 = vld [vmem:[#allocation3 + $0x8] sm:$0xff] }
0x11e0   :  { %v2221_v59 = vpop.permute.xlu0 %2220 }
0x11e1   :  { %v2223_v60 = vmul.f32 %v5749_v58, %v2221_v59 }
0x11e3   :  { %2225 = vrot.lane.b32.xlu0 %v2223_v60, %s6036_s28 }
0x11e4   :  { %v2391_v62 = vpop.permute.xlu1 %2390 }
0x11e5   :  { %v2393_v63 = vmul.f32 %v5751_v61, %v2391_v62 }
0x11e7   :  { %2395 = vrot.lane.b32.xlu1 %v2393_v63, %s6036_s28  ;;  %v6706_v63 = vld [vmem:[#allocation9 + $0x18] sm:$0xff] }
0x1255   :  { %v2226_v5 = vpop.permute.xlu0 %2225 }
0x1256   :  { %v6638_v8 = vadd.f32 %v2226_v5, %v2218_v0  ;;  %v6709_v5 = vld [vmem:[#allocation9 + $0x10] sm:$0xff] }
0x1258   :  { %5752 = vtanh.f32 %v6638_v8 }
0x1259   :  { %v2396_v10 = vpop.permute.xlu1 %2395 }
0x125a   :  { %v6642_v12 = vadd.f32 %v2396_v10, %v2388_v9  ;;  %v6717_v9 = vld [vmem:[#allocation8 + $0x18] sm:$0xff] }
0x125c   :  { %5754 = vtanh.f32 %v6642_v12 }
0x1265   :  { %v5753_v13 = vpop.eup %5752 }
0x1266   :  { %2231 = vrot.lane.b32.xlu0 %v5753_v13, %s6035_s27  ;;  %v6724_v13 = vld [vmem:[#allocation8 + $0x10] sm:$0xff] }
0x1269   :  { %v5755_v14 = vpop.eup %5754 }
0x126a   :  { %2401 = vrot.lane.b32.xlu1 %v5755_v14, %s6035_s27  ;;  %v6730_v14 = vld [vmem:[#allocation8 + $0x8] sm:$0xff] }
0x12d8   :  { %v2232_v15 = vpop.permute.xlu0 %2231 }
0x12d9   :  { %v2234_v16 = vmul.f32 %v5749_v58, %v2232_v15  ;;  %v6736_v15 = vld [vmem:[#allocation8] sm:$0xff] }
0x12db   :  { %2406 = vrot.lane.b32.xlu0 %v2234_v16, %s6036_s28 }
0x12dc   :  { %v2402_v17 = vpop.permute.xlu1 %2401 }
0x12dd   :  { %v2404_v18 = vmul.f32 %v5751_v61, %v2402_v17 }
0x12df   :  { %2481 = vrot.lane.b32.xlu1 %v2404_v18, %s6036_s28 }
0x134d   :  { %v2407_v11 = vpop.permute.xlu0 %2406 }
0x134e   :  { %5364 = vmatmul.mubr.msk.f32.vlgmr.msra.gmra.mxu0 %vm141_vm3, %v2407_v11 }
0x134f   :  { %5378 = vmatpush3.msra.mxu0 %v6563_v44  ;;  %5385 = vmatprep.mubr.msk.f32.mxu0 %vm6034_vm0, %v6033_v1 }
0x1350   :  { %5379 = vmatprep.subr.mxu0 %v6033_v1 }
0x1351   :  { %5380 = vmatpush3.msra.mxu0 %v6572_v45  ;;  %v2482_v19 = vpop.permute.xlu1 %2481 }
0x1352   :  { %5381 = vmatprep.subr.mxu0 %v6033_v1  ;;  %5375 = vmatmul.mubr.msk.f32.vlgmr.msra.gmra.mxu1 %vm141_vm3, %v2482_v19 }
0x1353   :  { %5382 = vmatpush3.msra.mxu0 %v6580_v47  ;;  %5389 = vmatpush3.msk.msra.mxu1 %vm219_vm1, %v6586_v48 }
0x1354   :  { %5383 = vmatprep.subr.mxu0 %v6033_v1  ;;  %5390 = vmatprep.mubr.msk.f32.mxu1 %vm6034_vm0, %v6033_v1 }
0x1355   :  { %5384 = vmatpush3.msra.mxu0 %v6599_v50  ;;  %5393 = vmatprep.subr.mxu1 %v6033_v1 }
0x1356   :  { %5386 = vmatmul.mubr.msk.f32.vlgmr.msra.gmra.mxu0 %vm141_vm3, %v2482_v19  ;;  %5391 = vmatmul.mubr.msk.f32.vlgmr.msra.gmra.mxu1 %vm215_vm2, %v4834_v20 }
0x1357   :  { %5394 = vmatpush3.msra.mxu1 %v5866_v21  ;;  %5404 = vmatprep.subr.mxu0 %v6033_v1 }
0x1358   :  { %5395 = vmatprep.subr.mxu1 %v6033_v1  ;;  %5405 = vmatpush3.msra.mxu0 %v5867_v22 }
0x1359   :  { %5396 = vmatpush3.msra.mxu1 %v5868_v23  ;;  %5406 = vmatprep.subr.mxu0 %v6033_v1 }
0x135a   :  { %5397 = vmatprep.subr.mxu1 %v6033_v1  ;;  %5407 = vmatpush3.msra.mxu0 %v5869_v24  ;;  %v6754_v24 = vld [vmem:[%s7101_s9] ss:$0 sm:$0xff] }
0x135b   :  { %5398 = vmatpush3.msra.mxu1 %v5870_v33  ;;  %5401 = vmatprep.mubr.msk.f32.mxu1 %vm6034_vm0, %v6033_v1 }
0x135c   :  { %5399 = vmatprep.subr.mxu1 %v6033_v1  ;;  %5408 = vmatprep.subr.mxu0 %v6033_v1 }
0x135d   :  { %5400 = vmatpush3.msra.mxu1 %v5871_v34  ;;  %5409 = vmatpush3.msra.mxu0 %v5872_v35 }
0x135e   :  { %5415 = vmatprep.subr.mxu1 %v6033_v1  ;;  %5410 = vmatprep.subr.mxu0 %v6033_v1 }
0x135f   :  { %5411 = vmatpush3.msra.mxu0 %v5873_v36  ;;  %5412 = vmatprep.mubr.msk.f32.mxu0 %vm6034_vm0, %v6033_v1 }
0x1360   :  { %5426 = vmatprep.subr.mxu0 %v6033_v1 }
0x140e   :  { %v2476_v37 = vpop.f32.mrf.mxu0 }
0x1410   :  { %v5365_v38 = vpop.f32.mrf.mxu0 }
0x1412   :  { %v2551_v39 = vpop.f32.mrf.mxu1 }
0x1413   :  { %v2552_v40 = vadd.f32 %v2551_v39, %v2476_v37 }
0x1414   :  { %v5376_v42 = vpop.f32.mrf.mxu1 }
0x1415   :  { %v2555_v44 = vadd.f32 %v6686_v43, %v2552_v40 }
0x1416   :  { %v2648_v45 = vpop.f32.mrf.mxu0  ;;  %v2721_v46 = vpop.f32.mrf.mxu1 }
0x1417   :  { %5756 = vtanh.f32 %v2555_v44  ;;  %v2722_v47 = vadd.f32 %v2721_v46, %v2648_v45  ;;  %v4833_v27 = vmul.f32 -1.442695, %v2555_v44 }
0x1418   :  { %v5387_v48 = vpop.f32.mrf.mxu0  ;;  %v5392_v49 = vpop.f32.mrf.mxu1 }
0x1419   :  { %v2725_v50 = vadd.f32 %v6630_v32, %v2722_v47 }
0x141b   :  { %5758 = vtanh.f32 %v2725_v50  ;;  %v4838_v28 = vmul.f32 -1.442695, %v2725_v50 }
0x141c   :  { %5760 = vpow2.f32 %v4833_v27 }
0x141d   :  { %5762 = vpow2.f32 %v4838_v28 }
0x1424   :  { %v5757_v25 = vpop.eup %5756 }
0x1425   :  { %2565 = vrot.lane.b32.xlu0 %v5757_v25, %s6035_s27 }
0x1428   :  { %v5759_v26 = vpop.eup %5758 }
0x1429   :  { %2735 = vrot.lane.b32.xlu1 %v5759_v26, %s6035_s27  ;;  %v5761_v29 = vpop.eup %5760 }
0x142a   :  { %v2559_v31 = vadd.f32 1.0, %v5761_v29  ;;  %v5763_v51 = vpop.eup %5762 }
0x142b   :  { %v2729_v30 = vadd.f32 1.0, %v5763_v51  ;;  %v6769_v51 = vld [vmem:[#allocation12 + $0x18] sm:$0xff] }
0x142c   :  { %5764 = vrcp.f32 %v2559_v31 }
0x142d   :  { %5766 = vrcp.f32 %v2729_v30  ;;  %v6771_v30 = vld [vmem:[#allocation12 + $0x10] sm:$0xff] }
0x1439   :  { %v5765_v52 = vpop.eup %5764 }
0x143a   :  { %v5767_v32 = vpop.eup %5766  ;;  %v2563_v57 = vmul.f32 %v5765_v52, %v6638_v8  ;;  %v6715_v8 = vld [vmem:[#allocation9 + $0x8] sm:$0xff] }
0x143b   :  { %v2733_v3 = vmul.f32 %v5767_v32, %v6642_v12  ;;  %v6722_v12 = vld [vmem:[#allocation9] sm:$0xff] }
0x1497   :  { %v2566_v53 = vpop.permute.xlu0 %2565 }
0x1498   :  { %v2568_v54 = vmul.f32 %v5765_v52, %v2566_v53  ;;  %v6775_v53 = vld [vmem:[#allocation12 + $0x8] sm:$0xff] }
0x149a   :  { %2570 = vrot.lane.b32.xlu0 %v2568_v54, %s6036_s28  ;;  %v6780_v54 = vld [vmem:[#allocation12] sm:$0xff] }
0x149b   :  { %v2736_v55 = vpop.permute.xlu1 %2735 }
0x149c   :  { %v2738_v56 = vmul.f32 %v5767_v32, %v2736_v55  ;;  %v6787_v55 = vld [vmem:[#allocation11 + $0x18] sm:$0xff] }
0x149e   :  { %2740 = vrot.lane.b32.xlu1 %v2738_v56, %s6036_s28  ;;  %v6791_v56 = vld [vmem:[#allocation11 + $0x10] sm:$0xff] }
0x150c   :  { %v2571_v41 = vpop.permute.xlu0 %2570 }
0x150d   :  { %v6695_v2 = vadd.f32 %v2571_v41, %v2563_v57  ;;  %v6795_v57 = vld [vmem:[#allocation11 + $0x8] sm:$0xff]  ;;  %v6799_v41 = vld [vmem:[#allocation11] sm:$0xff] }
0x150f   :  { %5768 = vtanh.f32 %v6695_v2 }
0x1510   :  { %v2741_v4 = vpop.permute.xlu1 %2740 }
0x1511   :  { %v6699_v6 = vadd.f32 %v2741_v4, %v2733_v3 }
0x1513   :  { %5770 = vtanh.f32 %v6699_v6 }
0x151c   :  { %v5769_v7 = vpop.eup %5768 }
0x151d   :  { %2576 = vrot.lane.b32.xlu0 %v5769_v7, %s6035_s27 }
0x1520   :  { %v5771_v58 = vpop.eup %5770 }
0x1521   :  { %2746 = vrot.lane.b32.xlu1 %v5771_v58, %s6035_s27 }
0x158f   :  { %v2577_v59 = vpop.permute.xlu0 %2576 }
0x1590   :  { %v2579_v60 = vmul.f32 %v5765_v52, %v2577_v59 }
0x1592   :  { %2751 = vrot.lane.b32.xlu0 %v2579_v60, %s6036_s28 }
0x1593   :  { %v2747_v61 = vpop.permute.xlu1 %2746 }
0x1594   :  { %v2749_v62 = vmul.f32 %v5767_v32, %v2747_v61 }
0x1596   :  { %2826 = vrot.lane.b32.xlu1 %v2749_v62, %s6036_s28  ;;  %v6841_v62 = vld [vmem:[%s7104_s12] ss:$0 sm:$0xff] }
0x1604   :  { %v2752_v0 = vpop.permute.xlu0 %2751 }
0x1605   :  { %5402 = vmatmul.mubr.msk.f32.vlgmr.msra.gmra.mxu1 %vm141_vm3, %v2752_v0 }
0x1606   :  { %5416 = vmatpush3.msra.mxu1 %v6706_v63  ;;  %5423 = vmatprep.mubr.msk.f32.mxu1 %vm6034_vm0, %v6033_v1 }
0x1607   :  { %5417 = vmatprep.subr.mxu1 %v6033_v1 }
0x1608   :  { %5418 = vmatpush3.msra.mxu1 %v6709_v5  ;;  %v2827_v10 = vpop.permute.xlu1 %2826 }
0x1609   :  { %5419 = vmatprep.subr.mxu1 %v6033_v1  ;;  %5413 = vmatmul.mubr.msk.f32.vlgmr.msra.gmra.mxu0 %vm141_vm3, %v2827_v10 }
0x160a   :  { %5420 = vmatpush3.msra.mxu1 %v6715_v8  ;;  %5427 = vmatpush3.msra.mxu0 %v6717_v9 }
0x160b   :  { %5421 = vmatprep.subr.mxu1 %v6033_v1  ;;  %5428 = vmatprep.subr.mxu0 %v6033_v1 }
0x160c   :  { %5422 = vmatpush3.msra.mxu1 %v6722_v12  ;;  %5429 = vmatpush3.msra.mxu0 %v6724_v13 }
0x160d   :  { %5424 = vmatmul.mubr.msk.f32.vlgmr.msra.gmra.mxu1 %vm141_vm3, %v2827_v10  ;;  %5430 = vmatprep.subr.mxu0 %v6033_v1 }
0x160e   :  { %5431 = vmatpush3.msra.mxu0 %v6730_v14  ;;  %5434 = vmatprep.mubr.msk.f32.mxu0 %vm6034_vm0, %v6033_v1 }
0x160f   :  { %5432 = vmatprep.subr.mxu0 %v6033_v1  ;;  %5437 = vmatprep.subr.mxu1 %v6033_v1 }
0x1610   :  { %5433 = vmatpush3.msra.mxu0 %v6736_v15  ;;  %5445 = vmatprep.mubr.msk.f32.mxu1 %vm6034_vm0, %v6033_v1 }
0x1611   :  { %5435 = vmatmul.mubr.f32.vlgmr.msra.gmra.mxu0 %v6033_v1  ;;  %5448 = vmatprep.subr.mxu0 %v6033_v1 }
0x1612   :  { %5456 = vmatprep.mubr.msk.f32.mxu0 %vm6034_vm0, %v6033_v1  ;;  %5438 = vmatpush3.msra.mxu1 %v6769_v51 }
0x1613   :  { %5439 = vmatprep.subr.mxu1 %v6033_v1  ;;  %5449 = vmatpush3.msra.mxu0 %v6787_v55 }
0x1614   :  { %5440 = vmatpush3.msra.mxu1 %v6771_v30  ;;  %5450 = vmatprep.subr.mxu0 %v6033_v1 }
0x1615   :  { %5441 = vmatprep.subr.mxu1 %v6033_v1  ;;  %5451 = vmatpush3.msra.mxu0 %v6791_v56 }
0x1616   :  { %5442 = vmatpush3.msra.mxu1 %v6775_v53  ;;  %5452 = vmatprep.subr.mxu0 %v6033_v1 }
0x1617   :  { %5443 = vmatprep.subr.mxu1 %v6033_v1  ;;  %5453 = vmatpush3.msra.mxu0 %v6795_v57 }
0x1618   :  { %5444 = vmatpush3.msra.mxu1 %v6780_v54  ;;  %5454 = vmatprep.subr.mxu0 %v6033_v1 }
0x1619   :  { %5459 = vmatprep.subr.mxu1 %v6033_v1  ;;  %5455 = vmatpush3.msra.mxu0 %v6799_v41 }
0x161a   :  { %5470 = vmatprep.subr.mxu0 %v6033_v1 }
0x16c5   :  { %v2821_v16 = vpop.f32.mrf.mxu1 }
0x16c7   :  { %v5403_v17 = vpop.f32.mrf.mxu1 }
0x16c9   :  { %v2896_v18 = vpop.f32.mrf.mxu0 }
0x16ca   :  { %v2897_v11 = vadd.f32 %v2896_v18, %v2821_v16 }
0x16cb   :  { %v5414_v19 = vpop.f32.mrf.mxu0 }
0x16cc   :  { %v2900_v20 = vadd.f32 %v6686_v43, %v2897_v11 }
0x16cd   :  { %v3001_v21 = vpop.f32.mrf.mxu1 }
0x16ce   :  { %5772 = vtanh.f32 %v2900_v20  ;;  %v4841_v38 = vmul.f32 -1.442695, %v2900_v20 }
0x16cf   :  { %v5425_v22 = vpop.f32.mrf.mxu1 }
0x16d1   :  { %v3071_v23 = vpop.f32.mrf.mxu0 }
0x16d2   :  { %v3072_v33 = vadd.f32 %v3071_v23, %v3001_v21 }
0x16d3   :  { %v5436_v34 = vpop.f32.mrf.mxu0 }
0x16d4   :  { %v3082_v35 = vadd.f32 %v6754_v24, %v3072_v33 }
0x16d6   :  { %5774 = vtanh.f32 %v3082_v35  ;;  %v4844_v39 = vmul.f32 -1.442695, %v3082_v35 }
0x16d7   :  { %5776 = vpow2.f32 %v4841_v38 }
0x16d8   :  { %5778 = vpow2.f32 %v4844_v39 }
0x16db   :  { %v5773_v36 = vpop.eup %5772 }
0x16dc   :  { %2910 = vrot.lane.b32.xlu0 %v5773_v36, %s6035_s27 }
0x16e3   :  { %v5775_v37 = vpop.eup %5774 }
0x16e4   :  { %3092 = vrot.lane.b32.xlu1 %v5775_v37, %s6035_s27  ;;  %v5777_v40 = vpop.eup %5776 }
0x16e5   :  { %v2904_v42 = vadd.f32 1.0, %v5777_v40  ;;  %v5779_v43 = vpop.eup %5778 }
0x16e6   :  { %v3086_v44 = vadd.f32 1.0, %v5779_v43 }
0x16e7   :  { %5780 = vrcp.f32 %v2904_v42 }
0x16e8   :  { %5782 = vrcp.f32 %v3086_v44 }
0x16f4   :  { %v5781_v45 = vpop.eup %5780 }
0x16f5   :  { %v5783_v48 = vpop.eup %5782  ;;  %v2908_v25 = vmul.f32 %v5781_v45, %v6695_v2 }
0x16f6   :  { %v3090_v28 = vmul.f32 %v5783_v48, %v6699_v6 }
0x174e   :  { %v2911_v46 = vpop.permute.xlu0 %2910 }
0x174f   :  { %v2913_v47 = vmul.f32 %v5781_v45, %v2911_v46 }
0x1751   :  { %2915 = vrot.lane.b32.xlu0 %v2913_v47, %s6036_s28 }
0x1756   :  { %v3093_v49 = vpop.permute.xlu1 %3092 }
0x1757   :  { %v3095_v50 = vmul.f32 %v5783_v48, %v3093_v49 }
0x1759   :  { %3097 = vrot.lane.b32.xlu1 %v3095_v50, %s6036_s28 }
0x17c3   :  { %v2916_v26 = vpop.permute.xlu0 %2915 }
0x17c4   :  { %v6762_v27 = vadd.f32 %v2916_v26, %v2908_v25 }
0x17c6   :  { %5784 = vtanh.f32 %v6762_v27 }
0x17cb   :  { %v3098_v29 = vpop.permute.xlu1 %3097 }
0x17cc   :  { %v6766_v31 = vadd.f32 %v3098_v29, %v3090_v28 }
0x17ce   :  { %5786 = vtanh.f32 %v6766_v31 }
0x17d3   :  { %v5785_v52 = vpop.eup %5784 }
0x17d4   :  { %2921 = vrot.lane.b32.xlu0 %v5785_v52, %s6035_s27 }
0x17db   :  { %v5787_v32 = vpop.eup %5786 }
0x17dc   :  { %3103 = vrot.lane.b32.xlu1 %v5787_v32, %s6035_s27 }
0x1846   :  { %v2922_v2 = vpop.permute.xlu0 %2921 }
0x1847   :  { %v2924_v3 = vmul.f32 %v5781_v45, %v2922_v2 }
0x1849   :  { %3116 = vrot.lane.b32.xlu0 %v2924_v3, %s6036_s28 }
0x184e   :  { %v3104_v4 = vpop.permute.xlu1 %3103 }
0x184f   :  { %v3106_v6 = vmul.f32 %v5783_v48, %v3104_v4 }
0x1851   :  { %3191 = vrot.lane.b32.xlu1 %v3106_v6, %s6036_s28 }
0x18bb   :  { %v3117_v7 = vpop.permute.xlu0 %3116 }
0x18bc   :  { %5446 = vmatmul.mubr.msk.f32.vlgmr.msra.gmra.mxu1 %vm141_vm3, %v3117_v7 }
0x18bd   :  { %5460 = vmatpush3.msra.mxu1 %v6706_v63  ;;  %5467 = vmatprep.mubr.msk.f32.mxu1 %vm6034_vm0, %v6033_v1 }
0x18be   :  { %5461 = vmatprep.subr.mxu1 %v6033_v1 }
0x18bf   :  { %5462 = vmatpush3.msra.mxu1 %v6709_v5 }
0x18c0   :  { %5463 = vmatprep.subr.mxu1 %v6033_v1 }
0x18c1   :  { %5464 = vmatpush3.msra.mxu1 %v6715_v8 }
0x18c2   :  { %5465 = vmatprep.subr.mxu1 %v6033_v1 }
0x18c3   :  { %5466 = vmatpush3.msra.mxu1 %v6722_v12  ;;  %v3192_v58 = vpop.permute.xlu1 %3191 }
0x18c4   :  { %5457 = vmatmul.mubr.msk.f32.vlgmr.msra.gmra.mxu0 %vm141_vm3, %v3192_v58  ;;  %5468 = vmatmul.mubr.msk.f32.vlgmr.msra.gmra.mxu1 %vm141_vm3, %v3192_v58 }
0x18c5   :  { %5481 = vmatprep.subr.mxu1 %v6033_v1  ;;  %5471 = vmatpush3.msra.mxu0 %v6717_v9 }
0x18c6   :  { %5482 = vmatpush3.msra.mxu1 %v6769_v51  ;;  %5472 = vmatprep.subr.mxu0 %v6033_v1 }
0x18c7   :  { %5483 = vmatprep.subr.mxu1 %v6033_v1  ;;  %5473 = vmatpush3.msra.mxu0 %v6724_v13 }
0x18c8   :  { %5484 = vmatpush3.msra.mxu1 %v6771_v30  ;;  %5474 = vmatprep.subr.mxu0 %v6033_v1 }
0x18c9   :  { %5485 = vmatprep.subr.mxu1 %v6033_v1  ;;  %5475 = vmatpush3.msra.mxu0 %v6730_v14 }
0x18ca   :  { %5486 = vmatpush3.msra.mxu1 %v6775_v53  ;;  %5476 = vmatprep.subr.mxu0 %v6033_v1 }
0x18cb   :  { %5487 = vmatprep.subr.mxu1 %v6033_v1  ;;  %5477 = vmatpush3.msra.mxu0 %v6736_v15 }
0x18cc   :  { %5478 = vmatprep.mubr.msk.f32.mxu0 %vm6034_vm0, %v6033_v1  ;;  %5488 = vmatpush3.msra.mxu1 %v6780_v54 }
0x18cd   :  { %5489 = vmatprep.mubr.msk.f32.mxu1 %vm6034_vm0, %v6033_v1  ;;  %5492 = vmatprep.subr.mxu0 %v6033_v1 }
0x18ce   :  { %5503 = vmatprep.subr.mxu1 %v6033_v1 }
0x197c   :  { %v3186_v59 = vpop.f32.mrf.mxu1 }
0x197e   :  { %v5447_v60 = vpop.f32.mrf.mxu1 }
0x1984   :  { %v3261_v61 = vpop.f32.mrf.mxu0  ;;  %v3397_v0 = vpop.f32.mrf.mxu1 }
0x1985   :  { %v3262_v10 = vadd.f32 %v3261_v61, %v3186_v59 }
0x1986   :  { %v5458_v16 = vpop.f32.mrf.mxu0  ;;  %v5469_v17 = vpop.f32.mrf.mxu1 }
0x1987   :  { %v3272_v18 = vadd.f32 %v6841_v62, %v3262_v10 }
0x1989   :  { %5788 = vtanh.f32 %v3272_v18  ;;  %v4848_v19 = vmul.f32 -1.442695, %v3272_v18 }
0x198b   :  { %5790 = vpow2.f32 %v4848_v19 }
0x1996   :  { %v5789_v11 = vpop.eup %5788 }
0x1997   :  { %3282 = vrot.lane.b32.xlu0 %v5789_v11, %s6035_s27 }
0x1998   :  { %v5791_v20 = vpop.eup %5790 }
0x1999   :  { %v3276_v21 = vadd.f32 1.0, %v5791_v20 }
0x199b   :  { %5792 = vrcp.f32 %v3276_v21 }
0x19a8   :  { %v5793_v22 = vpop.eup %5792 }
0x19a9   :  { %v3280_v34 = vmul.f32 %v5793_v22, %v6762_v27 }
0x1a09   :  { %v3283_v23 = vpop.permute.xlu0 %3282 }
0x1a0a   :  { %v3285_v33 = vmul.f32 %v5793_v22, %v3283_v23 }
0x1a0c   :  { %3287 = vrot.lane.b32.xlu1 %v3285_v33, %s6036_s28 }
0x1a7e   :  { %v3288_v35 = vpop.permute.xlu1 %3287 }
0x1a7f   :  { %v6847_v36 = vadd.f32 %v3288_v35, %v3280_v34 }
0x1a81   :  { %5794 = vtanh.f32 %v6847_v36 }
0x1a8e   :  { %v5795_v37 = vpop.eup %5794 }
0x1a8f   :  { %3293 = vrot.lane.b32.xlu0 %v5795_v37, %s6035_s27 }
0x1b01   :  { %v3294_v38 = vpop.permute.xlu0 %3293 }
0x1b02   :  { %v6851_v39 = vmul.f32 %v5793_v22, %v3294_v38 }
0x1b04   :  { %3402 = vrot.lane.b32.xlu1 %v6851_v39, %s6036_s28 }
0x1b76   :  { %v3403_v40 = vpop.permute.xlu1 %3402 }
0x1b77   :  { %5479 = vmatmul.mubr.msk.f32.vlgmr.msra.gmra.mxu0 %vm141_vm3, %v3403_v40  ;;  %5490 = vmatmul.mubr.msk.f32.vlgmr.msra.gmra.mxu1 %vm141_vm3, %v3403_v40 }
0x1b78   :  { %5493 = vmatpush3.msra.mxu0 %v6787_v55  ;;  %5504 = vmatpush3.msra.mxu1 %v6706_v63 }
0x1b79   :  { %5494 = vmatprep.subr.mxu0 %v6033_v1  ;;  %5505 = vmatprep.subr.mxu1 %v6033_v1 }
0x1b7a   :  { %5495 = vmatpush3.msra.mxu0 %v6791_v56  ;;  %5506 = vmatpush3.msra.mxu1 %v6709_v5 }
0x1b7b   :  { %5496 = vmatprep.subr.mxu0 %v6033_v1  ;;  %5507 = vmatprep.subr.mxu1 %v6033_v1 }
0x1b7c   :  { %5497 = vmatpush3.msra.mxu0 %v6795_v57  ;;  %5508 = vmatpush3.msra.mxu1 %v6715_v8 }
0x1b7d   :  { %5498 = vmatprep.subr.mxu0 %v6033_v1  ;;  %5509 = vmatprep.subr.mxu1 %v6033_v1 }
0x1b7e   :  { %5499 = vmatpush3.msra.mxu0 %v6799_v41  ;;  %5500 = vmatprep.mubr.msk.f32.mxu0 %vm6034_vm0, %v6033_v1 }
0x1b7f   :  { %5510 = vmatpush3.msra.mxu1 %v6722_v12  ;;  %5511 = vmatprep.mubr.msk.f32.mxu1 %vm6034_vm0, %v6033_v1 }
0x1b80   :  { %5514 = vmatprep.subr.mxu0 %v6033_v1  ;;  %5525 = vmatprep.subr.mxu1 %v6033_v1 }
0x1c37   :  { %v3472_v42 = vpop.f32.mrf.mxu0  ;;  %v3567_v43 = vpop.f32.mrf.mxu1 }
0x1c38   :  { %v3473_v44 = vadd.f32 %v3472_v42, %v3397_v0 }
0x1c39   :  { %v5480_v45 = vpop.f32.mrf.mxu0  ;;  %v5491_v46 = vpop.f32.mrf.mxu1 }
0x1c3a   :  { %v3476_v47 = vadd.f32 %v6754_v24, %v3473_v44 }
0x1c3c   :  { %5796 = vtanh.f32 %v3476_v47  ;;  %v4853_v49 = vmul.f32 -1.442695, %v3476_v47 }
0x1c3e   :  { %5798 = vpow2.f32 %v4853_v49 }
0x1c49   :  { %v5797_v48 = vpop.eup %5796 }
0x1c4a   :  { %3486 = vrot.lane.b32.xlu0 %v5797_v48, %s6035_s27 }
0x1c4b   :  { %v5799_v50 = vpop.eup %5798 }
0x1c4c   :  { %v3480_v25 = vadd.f32 1.0, %v5799_v50 }
0x1c4e   :  { %5800 = vrcp.f32 %v3480_v25 }
0x1c5b   :  { %v5801_v26 = vpop.eup %5800 }
0x1c5c   :  { %v3484_v29 = vmul.f32 %v5801_v26, %v6766_v31 }
0x1cbc   :  { %v3487_v27 = vpop.permute.xlu0 %3486 }
0x1cbd   :  { %v3489_v28 = vmul.f32 %v5801_v26, %v3487_v27 }
0x1cbf   :  { %3491 = vrot.lane.b32.xlu1 %v3489_v28, %s6036_s28 }
0x1d31   :  { %v3492_v52 = vpop.permute.xlu1 %3491 }
0x1d32   :  { %v6881_v32 = vadd.f32 %v3492_v52, %v3484_v29 }
0x1d34   :  { %5802 = vtanh.f32 %v6881_v32 }
0x1d41   :  { %v5803_v2 = vpop.eup %5802 }
0x1d42   :  { %3497 = vrot.lane.b32.xlu0 %v5803_v2, %s6035_s27 }
0x1db4   :  { %v3498_v3 = vpop.permute.xlu0 %3497 }
0x1db5   :  { %v3500_v4 = vmul.f32 %v5801_v26, %v3498_v3 }
0x1db7   :  { %3572 = vrot.lane.b32.xlu1 %v3500_v4, %s6036_s28 }
0x1e29   :  { %v3573_v6 = vpop.permute.xlu1 %3572 }
0x1e2a   :  { %5501 = vmatmul.mubr.msk.f32.vlgmr.msra.gmra.mxu0 %vm141_vm3, %v3573_v6  ;;  %5512 = vmatmul.mubr.msk.f32.vlgmr.msra.gmra.mxu1 %vm141_vm3, %v3573_v6 }
0x1e2b   :  { %5515 = vmatpush3.msra.mxu0 %v6717_v9  ;;  %5526 = vmatpush3.msra.mxu1 %v6769_v51 }
0x1e2c   :  { %5516 = vmatprep.subr.mxu0 %v6033_v1  ;;  %5527 = vmatprep.subr.mxu1 %v6033_v1 }
0x1e2d   :  { %5517 = vmatpush3.msra.mxu0 %v6724_v13  ;;  %5528 = vmatpush3.msra.mxu1 %v6771_v30 }
0x1e2e   :  { %5518 = vmatprep.subr.mxu0 %v6033_v1  ;;  %5529 = vmatprep.subr.mxu1 %v6033_v1 }
0x1e2f   :  { %5519 = vmatpush3.msra.mxu0 %v6730_v14  ;;  %5530 = vmatpush3.msra.mxu1 %v6775_v53 }
0x1e30   :  { %5520 = vmatprep.subr.mxu0 %v6033_v1  ;;  %5531 = vmatprep.subr.mxu1 %v6033_v1 }
0x1e31   :  { %5521 = vmatpush3.msra.mxu0 %v6736_v15  ;;  %5522 = vmatprep.mubr.msk.f32.mxu0 %vm6034_vm0, %v6033_v1 }
0x1e32   :  { %5532 = vmatpush3.msra.mxu1 %v6780_v54  ;;  %5533 = vmatprep.mubr.msk.f32.mxu1 %vm6034_vm0, %v6033_v1 }
0x1e33   :  { %5536 = vmatprep.subr.mxu0 %v6033_v1  ;;  %5547 = vmatprep.subr.mxu1 %v6033_v1 }
0x1eea   :  { %v3642_v31 = vpop.f32.mrf.mxu0  ;;  %v3754_v7 = vpop.f32.mrf.mxu1 }
0x1eeb   :  { %v3643_v58 = vadd.f32 %v3642_v31, %v3567_v43 }
0x1eec   :  { %v5502_v59 = vpop.f32.mrf.mxu0  ;;  %v5513_v60 = vpop.f32.mrf.mxu1 }
0x1eed   :  { %v3646_v61 = vadd.f32 %v6841_v62, %v3643_v58 }
0x1eef   :  { %5804 = vtanh.f32 %v3646_v61  ;;  %v4856_v10 = vmul.f32 -1.442695, %v3646_v61 }
0x1ef1   :  { %5806 = vpow2.f32 %v4856_v10 }
0x1efc   :  { %v5805_v0 = vpop.eup %5804 }
0x1efd   :  { %3656 = vrot.lane.b32.xlu0 %v5805_v0, %s6035_s27 }
0x1efe   :  { %v5807_v16 = vpop.eup %5806 }
0x1eff   :  { %v3650_v17 = vadd.f32 1.0, %v5807_v16 }
0x1f01   :  { %5808 = vrcp.f32 %v3650_v17 }
0x1f0e   :  { %v5809_v18 = vpop.eup %5808 }
0x1f0f   :  { %v3654_v20 = vmul.f32 %v5809_v18, %v6847_v36 }
0x1f6f   :  { %v3657_v11 = vpop.permute.xlu0 %3656 }
0x1f70   :  { %v3659_v19 = vmul.f32 %v5809_v18, %v3657_v11 }
0x1f72   :  { %3661 = vrot.lane.b32.xlu1 %v3659_v19, %s6036_s28 }
0x1fe4   :  { %v3662_v21 = vpop.permute.xlu1 %3661 }
0x1fe5   :  { %v6912_v22 = vadd.f32 %v3662_v21, %v3654_v20 }
0x1fe7   :  { %5810 = vtanh.f32 %v6912_v22 }
0x1ff4   :  { %v5811_v23 = vpop.eup %5810 }
0x1ff5   :  { %3667 = vrot.lane.b32.xlu0 %v5811_v23, %s6035_s27 }
0x2067   :  { %v3668_v33 = vpop.permute.xlu0 %3667 }
0x2068   :  { %v6916_v34 = vmul.f32 %v5809_v18, %v3668_v33 }
0x206a   :  { %3759 = vrot.lane.b32.xlu1 %v6916_v34, %s6036_s28 }
0x20dc   :  { %v3760_v35 = vpop.permute.xlu1 %3759 }
0x20dd   :  { %5523 = vmatmul.mubr.msk.f32.vlgmr.msra.gmra.mxu0 %vm141_vm3, %v3760_v35  ;;  %5534 = vmatmul.mubr.msk.f32.vlgmr.msra.gmra.mxu1 %vm141_vm3, %v3760_v35 }
0x20de   :  { %5537 = vmatpush3.msra.mxu0 %v6787_v55  ;;  %5548 = vmatpush3.msra.mxu1 %v6706_v63 }
0x20df   :  { %5538 = vmatprep.subr.mxu0 %v6033_v1  ;;  %5549 = vmatprep.subr.mxu1 %v6033_v1 }
0x20e0   :  { %5539 = vmatpush3.msra.mxu0 %v6791_v56  ;;  %5550 = vmatpush3.msra.mxu1 %v6709_v5 }
0x20e1   :  { %5540 = vmatprep.subr.mxu0 %v6033_v1  ;;  %5551 = vmatprep.subr.mxu1 %v6033_v1 }
0x20e2   :  { %5541 = vmatpush3.msra.mxu0 %v6795_v57  ;;  %5552 = vmatpush3.msra.mxu1 %v6715_v8 }
0x20e3   :  { %5542 = vmatprep.subr.mxu0 %v6033_v1  ;;  %5553 = vmatprep.subr.mxu1 %v6033_v1 }
0x20e4   :  { %5543 = vmatpush3.msra.mxu0 %v6799_v41  ;;  %5544 = vmatprep.mubr.msk.f32.mxu0 %vm6034_vm0, %v6033_v1 }
0x20e5   :  { %5554 = vmatpush3.msra.mxu1 %v6722_v12  ;;  %5555 = vmatprep.mubr.msk.f32.mxu1 %vm6034_vm0, %v6033_v1 }
0x20e6   :  { %5558 = vmatprep.subr.mxu0 %v6033_v1  ;;  %5569 = vmatprep.subr.mxu1 %v6033_v1 }
0x219d   :  { %v3829_v36 = vpop.f32.mrf.mxu0  ;;  %v3924_v37 = vpop.f32.mrf.mxu1 }
0x219e   :  { %v3830_v38 = vadd.f32 %v3829_v36, %v3754_v7 }
0x219f   :  { %v5524_v40 = vpop.f32.mrf.mxu0  ;;  %v5535_v42 = vpop.f32.mrf.mxu1 }
0x21a0   :  { %v3833_v43 = vadd.f32 %v6754_v24, %v3830_v38 }
0x21a2   :  { %5812 = vtanh.f32 %v3833_v43  ;;  %v4859_v45 = vmul.f32 -1.442695, %v3833_v43 }
0x21a4   :  { %5814 = vpow2.f32 %v4859_v45 }
0x21af   :  { %v5813_v44 = vpop.eup %5812 }
0x21b0   :  { %3843 = vrot.lane.b32.xlu0 %v5813_v44, %s6035_s27 }
0x21b1   :  { %v5815_v46 = vpop.eup %5814 }
0x21b2   :  { %v3837_v47 = vadd.f32 1.0, %v5815_v46 }
0x21b4   :  { %5816 = vrcp.f32 %v3837_v47 }
0x21c1   :  { %v5817_v48 = vpop.eup %5816 }
0x21c2   :  { %v3841_v25 = vmul.f32 %v5817_v48, %v6881_v32 }
0x2222   :  { %v3844_v49 = vpop.permute.xlu0 %3843 }
0x2223   :  { %v3846_v50 = vmul.f32 %v5817_v48, %v3844_v49 }
0x2225   :  { %3848 = vrot.lane.b32.xlu1 %v3846_v50, %s6036_s28 }
0x2297   :  { %v3849_v26 = vpop.permute.xlu1 %3848 }
0x2298   :  { %v6946_v27 = vadd.f32 %v3849_v26, %v3841_v25 }
0x229a   :  { %5818 = vtanh.f32 %v6946_v27 }
0x22a7   :  { %v5819_v28 = vpop.eup %5818 }
0x22a8   :  { %3854 = vrot.lane.b32.xlu0 %v5819_v28, %s6035_s27 }
0x231a   :  { %v3855_v29 = vpop.permute.xlu0 %3854 }
0x231b   :  { %v3857_v52 = vmul.f32 %v5817_v48, %v3855_v29 }
0x231d   :  { %3929 = vrot.lane.b32.xlu1 %v3857_v52, %s6036_s28 }
0x238f   :  { %v3930_v2 = vpop.permute.xlu1 %3929 }
0x2390   :  { %5545 = vmatmul.mubr.msk.f32.vlgmr.msra.gmra.mxu0 %vm141_vm3, %v3930_v2  ;;  %5556 = vmatmul.mubr.msk.f32.vlgmr.msra.gmra.mxu1 %vm141_vm3, %v3930_v2 }
0x2391   :  { %5559 = vmatpush3.msra.mxu0 %v6717_v9  ;;  %5570 = vmatpush3.msra.mxu1 %v6769_v51 }
0x2392   :  { %5560 = vmatprep.subr.mxu0 %v6033_v1  ;;  %5571 = vmatprep.subr.mxu1 %v6033_v1 }
0x2393   :  { %5561 = vmatpush3.msra.mxu0 %v6724_v13  ;;  %5572 = vmatpush3.msra.mxu1 %v6771_v30 }
0x2394   :  { %5562 = vmatprep.subr.mxu0 %v6033_v1  ;;  %5573 = vmatprep.subr.mxu1 %v6033_v1 }
0x2395   :  { %5563 = vmatpush3.msra.mxu0 %v6730_v14  ;;  %5574 = vmatpush3.msra.mxu1 %v6775_v53 }
0x2396   :  { %5564 = vmatprep.subr.mxu0 %v6033_v1  ;;  %5575 = vmatprep.subr.mxu1 %v6033_v1 }
0x2397   :  { %5565 = vmatpush3.msra.mxu0 %v6736_v15  ;;  %5566 = vmatprep.mubr.msk.f32.mxu0 %vm6034_vm0, %v6033_v1 }
0x2398   :  { %5576 = vmatpush3.msra.mxu1 %v6780_v54  ;;  %5577 = vmatprep.mubr.msk.f32.mxu1 %vm6034_vm0, %v6033_v1 }
0x2399   :  { %5580 = vmatprep.subr.mxu0 %v6033_v1  ;;  %5591 = vmatprep.subr.mxu1 %v6033_v1 }
0x2450   :  { %v3999_v32 = vpop.f32.mrf.mxu0  ;;  %v4111_v3 = vpop.f32.mrf.mxu1 }
0x2451   :  { %v4000_v4 = vadd.f32 %v3999_v32, %v3924_v37 }
0x2452   :  { %v5546_v6 = vpop.f32.mrf.mxu0  ;;  %v5557_v31 = vpop.f32.mrf.mxu1 }
0x2453   :  { %v4003_v7 = vadd.f32 %v6841_v62, %v4000_v4 }
0x2455   :  { %5820 = vtanh.f32 %v4003_v7  ;;  %v4862_v59 = vmul.f32 -1.442695, %v4003_v7 }
0x2457   :  { %5822 = vpow2.f32 %v4862_v59 }
0x2462   :  { %v5821_v58 = vpop.eup %5820 }
0x2463   :  { %4013 = vrot.lane.b32.xlu0 %v5821_v58, %s6035_s27 }
0x2464   :  { %v5823_v60 = vpop.eup %5822 }
0x2465   :  { %v4007_v61 = vadd.f32 1.0, %v5823_v60 }
0x2467   :  { %5824 = vrcp.f32 %v4007_v61 }
0x2474   :  { %v5825_v0 = vpop.eup %5824 }
0x2475   :  { %v4011_v17 = vmul.f32 %v5825_v0, %v6912_v22 }
0x24d5   :  { %v4014_v10 = vpop.permute.xlu0 %4013 }
0x24d6   :  { %v4016_v16 = vmul.f32 %v5825_v0, %v4014_v10 }
0x24d8   :  { %4018 = vrot.lane.b32.xlu1 %v4016_v16, %s6036_s28 }
0x254a   :  { %v4019_v18 = vpop.permute.xlu1 %4018 }
0x254b   :  { %v6977_v11 = vadd.f32 %v4019_v18, %v4011_v17 }
0x254d   :  { %5826 = vtanh.f32 %v6977_v11 }
0x255a   :  { %v5827_v19 = vpop.eup %5826 }
0x255b   :  { %4024 = vrot.lane.b32.xlu0 %v5827_v19, %s6035_s27 }
0x25cd   :  { %v4025_v20 = vpop.permute.xlu0 %4024 }
0x25ce   :  { %v6981_v21 = vmul.f32 %v5825_v0, %v4025_v20 }
0x25d0   :  { %4116 = vrot.lane.b32.xlu1 %v6981_v21, %s6036_s28 }
0x2642   :  { %v4117_v23 = vpop.permute.xlu1 %4116 }
0x2643   :  { %5567 = vmatmul.mubr.msk.f32.vlgmr.msra.gmra.mxu0 %vm141_vm3, %v4117_v23  ;;  %5578 = vmatmul.mubr.msk.f32.vlgmr.msra.gmra.mxu1 %vm141_vm3, %v4117_v23 }
0x2644   :  { %5581 = vmatpush3.msra.mxu0 %v6787_v55  ;;  %5592 = vmatpush3.msra.mxu1 %v6706_v63 }
0x2645   :  { %5582 = vmatprep.subr.mxu0 %v6033_v1  ;;  %5593 = vmatprep.subr.mxu1 %v6033_v1 }
0x2646   :  { %5583 = vmatpush3.msra.mxu0 %v6791_v56  ;;  %5594 = vmatpush3.msra.mxu1 %v6709_v5 }
0x2647   :  { %5584 = vmatprep.subr.mxu0 %v6033_v1  ;;  %5595 = vmatprep.subr.mxu1 %v6033_v1 }
0x2648   :  { %5585 = vmatpush3.msra.mxu0 %v6795_v57  ;;  %5596 = vmatpush3.msra.mxu1 %v6715_v8 }
0x2649   :  { %5586 = vmatprep.subr.mxu0 %v6033_v1  ;;  %5597 = vmatprep.subr.mxu1 %v6033_v1 }
0x264a   :  { %5587 = vmatpush3.msra.mxu0 %v6799_v41  ;;  %5588 = vmatprep.mubr.msk.f32.mxu0 %vm6034_vm0, %v6033_v1 }
0x264b   :  { %5598 = vmatpush3.msra.mxu1 %v6722_v12  ;;  %5599 = vmatprep.mubr.msk.f32.mxu1 %vm6034_vm0, %v6033_v1 }
0x264c   :  { %5602 = vmatprep.subr.mxu0 %v6033_v1  ;;  %5613 = vmatprep.subr.mxu1 %v6033_v1 }
0x2703   :  { %v4186_v63 = vpop.f32.mrf.mxu0  ;;  %v4281_v5 = vpop.f32.mrf.mxu1 }
0x2704   :  { %v4187_v8 = vadd.f32 %v4186_v63, %v4111_v3 }
0x2705   :  { %v5568_v22 = vpop.f32.mrf.mxu0  ;;  %v5579_v33 = vpop.f32.mrf.mxu1 }
0x2706   :  { %v4190_v35 = vadd.f32 %v6754_v24, %v4187_v8 }
0x2708   :  { %5828 = vtanh.f32 %v4190_v35  ;;  %v4865_v37 = vmul.f32 -1.442695, %v4190_v35  ;;  %v4849_v35 = vld [vmem:[%s7105_s13] ss:$0 sm:$0xff]  ;;  %s6039_s13 = smov [#allocation14]  }
0x270a   :  { %5830 = vpow2.f32 %v4865_v37 }
0x2715   :  { %v5829_v36 = vpop.eup %5828 }
0x2716   :  { %4200 = vrot.lane.b32.xlu0 %v5829_v36, %s6035_s27 }
0x2717   :  { %v5831_v12 = vpop.eup %5830 }
0x2718   :  { %v4194_v38 = vadd.f32 1.0, %v5831_v12 }
0x271a   :  { %5832 = vrcp.f32 %v4194_v38 }
0x2727   :  { %v5833_v40 = vpop.eup %5832 }
0x2728   :  { %v4198_v44 = vmul.f32 %v5833_v40, %v6946_v27 }
0x2788   :  { %v4201_v42 = vpop.permute.xlu0 %4200 }
0x2789   :  { %v4203_v43 = vmul.f32 %v5833_v40, %v4201_v42 }
0x278b   :  { %4205 = vrot.lane.b32.xlu1 %v4203_v43, %s6036_s28 }
0x27fd   :  { %v4206_v45 = vpop.permute.xlu1 %4205 }
0x27fe   :  { %v7011_v46 = vadd.f32 %v4206_v45, %v4198_v44 }
0x2800   :  { %5834 = vtanh.f32 %v7011_v46 }
0x280d   :  { %v5835_v47 = vpop.eup %5834 }
0x280e   :  { %4211 = vrot.lane.b32.xlu0 %v5835_v47, %s6035_s27 }
0x2880   :  { %v4212_v48 = vpop.permute.xlu0 %4211 }
0x2881   :  { %v4214_v49 = vmul.f32 %v5833_v40, %v4212_v48 }
0x2883   :  { %4286 = vrot.lane.b32.xlu1 %v4214_v49, %s6036_s28 }
0x28f5   :  { %v4287_v50 = vpop.permute.xlu1 %4286 }
0x28f6   :  { %5589 = vmatmul.mubr.msk.f32.vlgmr.msra.gmra.mxu0 %vm141_vm3, %v4287_v50  ;;  %5600 = vmatmul.mubr.msk.f32.vlgmr.msra.gmra.mxu1 %vm141_vm3, %v4287_v50 }
0x28f7   :  { %5603 = vmatpush3.msra.mxu0 %v6717_v9  ;;  %5614 = vmatpush3.msra.mxu1 %v6769_v51 }
0x28f8   :  { %5604 = vmatprep.subr.mxu0 %v6033_v1  ;;  %5615 = vmatprep.subr.mxu1 %v6033_v1 }
0x28f9   :  { %5605 = vmatpush3.msra.mxu0 %v6724_v13  ;;  %5616 = vmatpush3.msra.mxu1 %v6771_v30 }
0x28fa   :  { %5606 = vmatprep.subr.mxu0 %v6033_v1  ;;  %5617 = vmatprep.subr.mxu1 %v6033_v1 }
0x28fb   :  { %5607 = vmatpush3.msra.mxu0 %v6730_v14  ;;  %5618 = vmatpush3.msra.mxu1 %v6775_v53 }
0x28fc   :  { %5608 = vmatprep.subr.mxu0 %v6033_v1  ;;  %5619 = vmatprep.subr.mxu1 %v6033_v1 }
0x28fd   :  { %5609 = vmatpush3.msra.mxu0 %v6736_v15  ;;  %5610 = vmatprep.mubr.msk.f32.mxu0 %vm6034_vm0, %v6033_v1 }
0x28fe   :  { %5620 = vmatpush3.msra.mxu1 %v6780_v54  ;;  %5621 = vmatprep.mubr.msk.f32.mxu1 %vm6034_vm0, %v6033_v1 }
0x28ff   :  { %5624 = vmatprep.subr.mxu0 %v6033_v1 }
0x29b6   :  { %v4356_v9 = vpop.f32.mrf.mxu0  ;;  %v4468_v13 = vpop.f32.mrf.mxu1 }
0x29b7   :  { %v4357_v14 = vadd.f32 %v4356_v9, %v4281_v5 }
0x29b8   :  { %v5590_v51 = vpop.f32.mrf.mxu0  ;;  %v5601_v30 = vpop.f32.mrf.mxu1 }
0x29b9   :  { %v4360_v53 = vadd.f32 %v6841_v62, %v4357_v14  ;;  %v6038_v14 = vmov 0  }
0x29ba   :  { %5650 = vset.pattern.permute.xlu0 %v6038_v14  ;;  %5651 = vset.pattern.permute.xlu1 %v6038_v14 }
0x29bb   :  { %5836 = vtanh.f32 %v4360_v53  ;;  %v4868_v15 = vmul.f32 -1.442695, %v4360_v53 }
0x29bd   :  { %5838 = vpow2.f32 %v4868_v15 }
0x29c8   :  { %v5837_v25 = vpop.eup %5836 }
0x29c9   :  { %4370 = vrot.lane.b32.xlu0 %v5837_v25, %s6035_s27 }
0x29ca   :  { %v5839_v26 = vpop.eup %5838 }
0x29cb   :  { %v4364_v54 = vadd.f32 1.0, %v5839_v26 }
0x29cd   :  { %5840 = vrcp.f32 %v4364_v54 }
0x29da   :  { %v5841_v27 = vpop.eup %5840 }
0x29db   :  { %v4368_v52 = vmul.f32 %v5841_v27, %v6977_v11 }
0x2a3b   :  { %v4371_v28 = vpop.permute.xlu0 %4370 }
0x2a3c   :  { %v4373_v29 = vmul.f32 %v5841_v27, %v4371_v28 }
0x2a3e   :  { %4375 = vrot.lane.b32.xlu1 %v4373_v29, %s6036_s28  ;;  %v4850_v29 = vld [vmem:[#allocation2] ss:$0 sm:$0xff] }
0x2ab0   :  { %v4376_v2 = vpop.permute.xlu1 %4375 }
0x2ab1   :  { %v7041_v32 = vadd.f32 %v4376_v2, %v4368_v52 }
0x2ab3   :  { %5842 = vtanh.f32 %v7041_v32 }
0x2ac0   :  { %v5843_v3 = vpop.eup %5842 }
0x2ac1   :  { %4381 = vrot.lane.b32.xlu0 %v5843_v3, %s6035_s27 }
0x2b33   :  { %v4382_v4 = vpop.permute.xlu0 %4381 }
0x2b34   :  { %v7045_v6 = vmul.f32 %v5841_v27, %v4382_v4 }
0x2b36   :  { %4473 = vrot.lane.b32.xlu1 %v7045_v6, %s6036_s28 }
0x2ba8   :  { %v4474_v31 = vpop.permute.xlu1 %4473 }
0x2ba9   :  { %5611 = vmatmul.mubr.msk.f32.vlgmr.msra.gmra.mxu0 %vm141_vm3, %v4474_v31  ;;  %5622 = vmatmul.mubr.msk.f32.vlgmr.msra.gmra.mxu1 %vm141_vm3, %v4474_v31 }
0x2baa   :  { %5625 = vmatpush3.msra.mxu0 %v6787_v55  ;;  %5632 = vmatprep.mubr.msk.f32.mxu0 %vm6034_vm0, %v6033_v1 }
0x2bab   :  { %5626 = vmatprep.subr.mxu0 %v6033_v1 }
0x2bac   :  { %5627 = vmatpush3.msra.mxu0 %v6791_v56 }
0x2bad   :  { %5628 = vmatprep.subr.mxu0 %v6033_v1 }
0x2bae   :  { %5629 = vmatpush3.msra.mxu0 %v6795_v57 }
0x2baf   :  { %5630 = vmatprep.subr.mxu0 %v6033_v1 }
0x2bb0   :  { %5631 = vmatpush3.msra.mxu0 %v6799_v41 }
0x2c69   :  { %v4543_v7 = vpop.f32.mrf.mxu0  ;;  %v4638_v58 = vpop.f32.mrf.mxu1 }
0x2c6a   :  { %v4544_v59 = vadd.f32 %v4543_v7, %v4468_v13 }
0x2c6b   :  { %v5612_v60 = vpop.f32.mrf.mxu0  ;;  %v5623_v55 = vpop.f32.mrf.mxu1 }
0x2c6c   :  { %v4547_v61 = vadd.f32 %v6754_v24, %v4544_v59  ;;  %v2925_v59 = vlaneseq }
0x2c6e   :  { %5844 = vtanh.f32 %v4547_v61  ;;  %v4871_v56 = vmul.f32 -1.442695, %v4547_v61  ;;  %v2926_v60 = vand.u32 127, %v2925_v59 }
0x2c70   :  { %5846 = vpow2.f32 %v4871_v56  ;;  %vm3680_vm5 = vcmp.eq.s32.totalorder %v2926_v60, 1  ;;  %vm3323_vm6 = vcmp.eq.s32.totalorder %v2926_v60, 0  ;;  %vm4037_vm7 = vcmp.eq.s32.totalorder %v2926_v60, 2 }
0x2c71   :  { %vm4394_vm8 = vcmp.eq.s32.totalorder %v2926_v60, 3  ;;  %vm4751_vm9 = vcmp.eq.s32.totalorder %v2926_v60, 4 }
0x2c7b   :  { %v5845_v0 = vpop.eup %5844 }
0x2c7c   :  { %4557 = vrot.lane.b32.xlu0 %v5845_v0, %s6035_s27 }
0x2c7d   :  { %v5847_v10 = vpop.eup %5846 }
0x2c7e   :  { %v4551_v16 = vadd.f32 1.0, %v5847_v10 }
0x2c80   :  { %5848 = vrcp.f32 %v4551_v16 }
0x2c8d   :  { %v5849_v57 = vpop.eup %5848 }
0x2c8e   :  { %v4555_v41 = vmul.f32 %v5849_v57, %v7011_v46 }
0x2cee   :  { %v4558_v1 = vpop.permute.xlu0 %4557 }
0x2cef   :  { %v4560_v17 = vmul.f32 %v5849_v57, %v4558_v1 }
0x2cf1   :  { %4562 = vrot.lane.b32.xlu1 %v4560_v17, %s6036_s28 }
0x2d63   :  { %v4563_v18 = vpop.permute.xlu1 %4562 }
0x2d64   :  { %v4565_v11 = vadd.f32 %v4563_v18, %v4555_v41 }
0x2d66   :  { %5850 = vtanh.f32 %v4565_v11 }
0x2d73   :  { %v5851_v24 = vpop.eup %5850 }
0x2d74   :  { %4568 = vrot.lane.b32.xlu0 %v5851_v24, %s6035_s27 }
0x2de6   :  { %v4569_v19 = vpop.permute.xlu0 %4568 }
0x2de7   :  { %v4571_v20 = vmul.f32 %v5849_v57, %v4569_v19 }
0x2de9   :  { %4643 = vrot.lane.b32.xlu1 %v4571_v20, %s6036_s28 }
0x2e5b   :  { %v4644_v23 = vpop.permute.xlu1 %4643 }
0x2e5c   :  { %5633 = vmatmul.mubr.msk.f32.vlgmr.msra.gmra.mxu0 %vm141_vm3, %v4644_v23 }
0x2f1c   :  { %v4713_v63 = vpop.f32.mrf.mxu0 }
0x2f1d   :  { %v4714_v5 = vadd.f32 %v4713_v63, %v4638_v58 }
0x2f1e   :  { %v5634_v8 = vpop.f32.mrf.mxu0 }
0x2f1f   :  { %v4717_v22 = vadd.f32 %v6841_v62, %v4714_v5 }
0x2f21   :  { %5852 = vtanh.f32 %v4717_v22  ;;  %v4874_v36 = vmul.f32 -1.442695, %v4717_v22 }
0x2f23   :  { %5854 = vpow2.f32 %v4874_v36 }
0x2f2e   :  { %v5853_v33 = vpop.eup %5852 }
0x2f2f   :  { %4727 = vrot.lane.b32.xlu0 %v5853_v33, %s6035_s27 }
0x2f30   :  { %v5855_v37 = vpop.eup %5854 }
0x2f31   :  { %v4721_v12 = vadd.f32 1.0, %v5855_v37 }
0x2f33   :  { %3303 = vrot.lane.b32.xlu0 %v4849_v35, %s6037_s25  ;;  %5856 = vrcp.f32 %v4721_v12 }
0x2f40   :  { %v5857_v38 = vpop.eup %5856 }
0x2f41   :  { %v4725_v45 = vmul.f32 %v5857_v38, %v7041_v32 }
0x2fa1   :  { %v4728_v40 = vpop.permute.xlu0 %4727 }
0x2fa2   :  { %v4730_v42 = vmul.f32 %v5857_v38, %v4728_v40 }
0x2fa4   :  { %4732 = vrot.lane.b32.xlu1 %v4730_v42, %s6036_s28 }
0x2fa5   :  { %v3304_v62 = vpop.permute.xlu0 %3303 }
0x2fa6   :  { %v3306_v43 = vmul.f32 %v3304_v62, %v6851_v39  ;;  %v4028_v44 = vmul.f32 %v6981_v21, %v3304_v62  ;;  %v3671_v49 = vmul.f32 %v6916_v34, %v3304_v62  ;;  %v4385_v39 = vmul.f32 %v7045_v6, %v3304_v62 }
0x2fa8   :  { %3308 = vrot.lane.b32.xlu0 %v3306_v43, %s6036_s28 }
0x2fac   :  { %4030 = vrot.lane.b32.xlu0 %v4028_v44, %s6036_s28 }
0x3016   :  { %v4733_v46 = vpop.permute.xlu1 %4732 }
0x3017   :  { %v4735_v47 = vadd.f32 %v4733_v46, %v4725_v45 }
0x3019   :  { %5858 = vtanh.f32 %v4735_v47 }
0x301a   :  { %v3309_v50 = vpop.permute.xlu0 %3308 }
0x301b   :  { %v3312_v21 = vsel %vm3311_vm4, %v3309_v50, 0.0 }
0x301e   :  { %v4031_v9 = vpop.permute.xlu0 %4030 }
0x301f   :  { %v4033_v13 = vsel %vm3311_vm4, %v4031_v9, 0.0 }
0x3026   :  { %v5859_v48 = vpop.eup %5858 }
0x3027   :  { %4738 = vrot.lane.b32.xlu1 %v5859_v48, %s6035_s27  ;;  %s4767_s27 = sshll.u32 %s6039_s13, 4  ;;  %s4768_s27 = int_to_ptr.vmem [resolvable:$true] %s4767_s27 }
0x3028   :  { %p6000_p3 = scmp.lt.s32.totalorder %s4768_s27, %s4768_s27 }
0x302b   :  { %3673 = vrot.lane.b32.xlu1 %v3671_v49, %s6036_s28 }
0x302f   :  { %4387 = vrot.lane.b32.xlu1 %v4385_v39, %s6036_s28 }
0x3053   :  { %3313 = vadd.xlane.f32.xlu1 %v3312_v21 }
0x3057   :  { %4034 = vadd.xlane.f32.xlu1 %v4033_v13 }
0x3099   :  { %v4739_v51 = vpop.permute.xlu1 %4738 }
0x309a   :  { %v4741_v34 = vmul.f32 %v5857_v38, %v4739_v51 }
0x309c   :  { %v4742_v30 = vmul.f32 %v4741_v34, %v3304_v62 }
0x309d   :  { %v3674_v53 = vpop.permute.xlu1 %3673 }
0x309e   :  { %4744 = vrot.lane.b32.xlu0 %v4742_v30, %s6036_s28  ;;  %v3676_v26 = vsel %vm3311_vm4, %v3674_v53, 0.0  ;;  %s5995_s28 = scalar_lea.vmem %s4768_s27, 32 }
0x309f   :  { %p5996_p2 = scmp.ne.s32.totalorder %s4768_s27, %s5995_s28  ;;  %p6001_p4 = scmp.lt.s32.totalorder %s5995_s28, %s5995_s28 }
0x30a1   :  { %v4388_v25 = vpop.permute.xlu1 %4387  ;;  %p6002_p5 = por %p6001_p4, %p6000_p3 }
0x30a2   :  { %v4390_v15 = vsel %vm3311_vm4, %v4388_v25, 0.0 }
0x30a3   :  { %4391 = vadd.xlane.f32.xlu1 %v4390_v15  ;;  %p6003_p6 = pnand %p6002_p5, %p5996_p2 }
0x30bd   :  { %3677 = vadd.xlane.f32.xlu0 %v3676_v26 }
0x30dc   :  { %v3314_v28 = vpop.xlane.xlu1 %3313 }
0x30dd   :  { %v3322_v52 = vadd.f32 %v4850_v29, %v3314_v28 }
0x30e0   :  { %v4035_v2 = vpop.xlane.xlu1 %4034 }
0x30e1   :  { %v4036_v32 = vadd.f32 %v4850_v29, %v4035_v2 }
0x3110   :  { %v4745_v54 = vpop.permute.xlu0 %4744 }
0x3111   :  { %v4747_v27 = vsel %vm3311_vm4, %v4745_v54, 0.0 }
0x3112   :  { %4748 = vadd.xlane.f32.xlu0 %v4747_v27 }
0x3128   :  { %3326 = vperm.xlu0 %5650, %v3322_v52  }
0x312c   :  { %4040 = vperm.xlu0 %5650, %v4036_v32   ;;  %v4392_v6 = vpop.xlane.xlu1 %4391 }
0x312d   :  { %v4393_v31 = vadd.f32 %v4850_v29, %v4392_v6 }
0x3146   :  { %v3678_v3 = vpop.xlane.xlu0 %3677 }
0x3147   :  { %v3679_v4 = vadd.f32 %v4850_v29, %v3678_v3 }
0x3149   :  { %3683 = vperm.xlu1 %5651, %v3679_v4  }
0x314d   :  { %4397 = vperm.xlu1 %5651, %v4393_v31  }
0x319b   :  { %v4749_v7 = vpop.xlane.xlu0 %4748 }
0x319c   :  { %v4750_v58 = vadd.f32 %v4850_v29, %v4749_v7 }
0x319e   :  { %4754 = vperm.xlu1 %5651, %v4750_v58  }
0x31a3   :  { %v3327_v55 = vpop.permute.xlu0 %3326 }
0x31a4   :  { %v3329_v56 = vsel %vm3323_vm6, %v3327_v55, 0.0 }
0x31a7   :  { %v4041_v10 = vpop.permute.xlu0 %4040 }
0x31a8   :  { %v4043_v1 = vsel %vm4037_vm7, %v4041_v10, 0.0 }
0x31c4   :  { %v3684_v61 = vpop.permute.xlu1 %3683 }
0x31c5   :  { %v3686_v0 = vsel %vm3680_vm5, %v3684_v61, 0.0 }
0x31c6   :  { %v3687_v16 = vadd.f32 %v3686_v0, %v3329_v56 }
0x31c8   :  { %v4398_v57 = vpop.permute.xlu1 %4397  ;;  %v4044_v17 = vadd.f32 %v4043_v1, %v3687_v16 }
0x31c9   :  { %v4400_v41 = vsel %vm4394_vm8, %v4398_v57, 0.0 }
0x31ca   :  { %v4401_v18 = vadd.f32 %v4400_v41, %v4044_v17 }
0x3219   :  { %v4755_v11 = vpop.permute.xlu1 %4754 }
0x321a   :  { %v4757_v24 = vsel %vm4751_vm9, %v4755_v11, 0.0 }
0x321b   :  { %v4758_v19 = vadd.f32 %v4757_v24, %v4401_v18 }
0x321d   :  { %4760 = vst.msk [vmem:[#allocation14] sm:$0x3] %vm4759_vm10, %v4758_v19 }
0x321e   :  { %6006 = shalt.err (!%p6003_p6)
}
0x321f   :  { %4770 = dma.vmem_to_hbm [thread:$0]  %s4768_s27, 32, %s7107_s15, [#allocation5]  }
0x3220   :  { %6023 = dma.done.wait [#allocation5], 32  }
0x3221   :  { %6024 = vsyncadd [#allocation5], 4294967264 }
0x3222   :  { %4774 = vsyncpa [#allocation4], 1 }
0x3223   :  { %4775 = vsyncpa [#allocation7], 1 }
0x3224   :  { %4776 = vsyncpa [#allocation10], 1 }
0x3225   :  { %4777 = vsyncpa [#allocation13], 1 }
0x3226   :  { %4778 = vsyncpa [#allocation5], 1 }

</bundles_post_ra>
